<compile_context>
chip_gen: v6e
topology: v6e:2x2x1
jax: 0.10.0
libtpu: 0.0.40
codegen_flags: <defaults>
</compile_context>

<pallas_src>
import functools

import jax
import jax.numpy as jnp
from jax.experimental import pallas as pl
from jax.experimental.pallas import tpu as pltpu

# Logical layer sizes from the PyTorch module.
D_IN, D_H1, D_H2, D_H3, D_OUT = 100, 256, 512, 1024, 784
# Lane-dense padded K for the first matmul (100 -> 128).
D_IN_PAD = 128
# Preferred batch tile for large batches (fills the 256-wide MXU on v6e/v7x).
B_TILE_DEFAULT = 256


def generator_kernel(x_ref,
                     w1_ref, b1_ref,
                     w2_ref, b2_ref,
                     w3_ref, b3_ref,
                     w4_ref, b4_ref,
                     o_ref):
    """Fused 4-layer MLP for one batch tile. All weights stay VMEM-resident."""
    h = jnp.dot(x_ref[...], w1_ref[...],
                preferred_element_type=jnp.float32) + b1_ref[...]
    h = jnp.maximum(h, 0.0)

    h = jnp.dot(h.astype(jnp.bfloat16), w2_ref[...],
                preferred_element_type=jnp.float32) + b2_ref[...]
    h = jnp.maximum(h, 0.0)

    h = jnp.dot(h.astype(jnp.bfloat16), w3_ref[...],
                preferred_element_type=jnp.float32) + b3_ref[...]
    h = jnp.maximum(h, 0.0)

    h = jnp.dot(h.astype(jnp.bfloat16), w4_ref[...],
                preferred_element_type=jnp.float32) + b4_ref[...]
    o_ref[...] = jnp.tanh(h).astype(o_ref.dtype)


def _choose_tiling(batch, requested=B_TILE_DEFAULT):
    """Pick (b_tile, b_pad).

    Small batches: one tile, rounded up to a multiple of 8 (sublane).
    Large batches (>= 256 padded rows): 128/256-row tiles with >= 2 grid
    steps so both v7x TensorCores get work.
    """
    b8 = -(-batch // 8) * 8
    if b8 < 256:
        return b8, b8
    half = max(128, (b8 // 2) // 128 * 128)
    tile = min(requested, half)
    b_pad = -(-batch // tile) * tile
    return tile, b_pad


_WEIGHT_BYTES = 2 * (D_IN_PAD * D_H1 + D_H1 * D_H2 + D_H2 * D_H3 + D_H3 * D_OUT) \
    + 4 * (D_H1 + D_H2 + D_H3 + D_OUT)


def _build_call(b_pad, b_tile):
    """Build the pallas_call for a padded batch of b_pad rows."""
    cost = pl.CostEstimate(
        flops=2 * b_pad * (D_IN_PAD * D_H1 + D_H1 * D_H2
                           + D_H2 * D_H3 + D_H3 * D_OUT),
        transcendentals=b_pad * D_OUT,
        bytes_accessed=_WEIGHT_BYTES + b_pad * D_IN_PAD * 2 + b_pad * D_OUT * 4,
    )

    def wspec(shape):
        # Grid-invariant weights/biases: constant index_map keeps them resident
        # in VMEM without re-DMA per grid step.
        return pl.BlockSpec(shape, lambda i: tuple(0 for _ in shape))

    return pl.pallas_call(
        generator_kernel,
        out_shape=jax.ShapeDtypeStruct((b_pad, D_OUT), jnp.float32),
        grid_spec=pltpu.PrefetchScalarGridSpec(
            num_scalar_prefetch=0,
            grid=(b_pad // b_tile,),
            in_specs=[
                pl.BlockSpec((b_tile, D_IN_PAD), lambda i: (i, 0)),
                wspec((D_IN_PAD, D_H1)), wspec((1, D_H1)),
                wspec((D_H1, D_H2)),     wspec((1, D_H2)),
                wspec((D_H2, D_H3)),     wspec((1, D_H3)),
                wspec((D_H3, D_OUT)),    wspec((1, D_OUT)),
            ],
            out_specs=pl.BlockSpec((b_tile, D_OUT), lambda i: (i, 0)),
        ),
        compiler_params=pltpu.CompilerParams(
            # >=2 grid steps (large batches) shard across v7x's two TensorCores.
            dimension_semantics=("parallel",),
            # Actual working set is well under 16 MB even at b_tile=512.
            vmem_limit_bytes=32 << 20,
        ),
        cost_estimate=cost,
    )


def prepare_params(params):
    """One-time conversion of f32 (w, b) pairs to the kernel's layout.

    w1 is zero-padded along K (100 -> 128) and all weights are cast to bf16;
    biases stay f32 with shape (1, out_features). Do this once at param-load
    time, NOT per forward call.
    """
    (w1, b1), (w2, b2), (w3, b3), (w4, b4) = params
    w1_p = jnp.zeros((D_IN_PAD, D_H1), jnp.bfloat16)
    w1_p = w1_p.at[:D_IN, :].set(w1.astype(jnp.bfloat16))
    return (
        w1_p, b1.reshape(1, D_H1).astype(jnp.float32),
        w2.astype(jnp.bfloat16), b2.reshape(1, D_H2).astype(jnp.float32),
        w3.astype(jnp.bfloat16), b3.reshape(1, D_H3).astype(jnp.float32),
        w4.astype(jnp.bfloat16), b4.reshape(1, D_OUT).astype(jnp.float32),
    )


@functools.partial(jax.jit, static_argnames=("b_tile_hint",))
def generator_forward(x, prepared_params, *, b_tile_hint=B_TILE_DEFAULT):
    """Jitted forward. `prepared_params` is the output of prepare_params()."""
    B = x.shape[0]
    b_tile, b_pad = _choose_tiling(B, b_tile_hint)

    x_p = jnp.zeros((b_pad, D_IN_PAD), jnp.bfloat16)
    x_p = x_p.at[:B, :D_IN].set(x.astype(jnp.bfloat16))

    out = _build_call(b_pad, b_tile)(x_p, *prepared_params)
    if b_pad != B:
        out = out[:B]
    return out


def init_params(key):
    """Deterministic synthetic parameter init (small normal weights/biases)."""
    sizes = [(D_IN, D_H1), (D_H1, D_H2), (D_H2, D_H3), (D_H3, D_OUT)]
    params = []
    for i, (din, dout) in enumerate(sizes):
        k = jax.random.fold_in(key, i)
        w = jax.random.normal(k, (din, dout), dtype=jnp.float32) * 0.02
        b = jax.random.normal(jax.random.fold_in(k, 1), (1, dout),
                              dtype=jnp.float32) * 0.02
        params.append((w, b))
    return params


def reference_forward_f32(x, params):
    (w1, b1), (w2, b2), (w3, b3), (w4, b4) = params
    h = jnp.maximum(x @ w1 + b1, 0.0)
    h = jnp.maximum(h @ w2 + b2, 0.0)
    h = jnp.maximum(h @ w3 + b3, 0.0)
    return jnp.tanh(h @ w4 + b4)


def reference_forward_bf16(x, params):
    """Reference matching the kernel's numerics (bf16 matmul, f32 accum)."""
    (w1, b1), (w2, b2), (w3, b3), (w4, b4) = params

    def mm(a, w):
        return jnp.dot(a.astype(jnp.bfloat16), w.astype(jnp.bfloat16),
                       preferred_element_type=jnp.float32)

    h = jnp.maximum(mm(x, w1) + b1, 0.0)
    h = jnp.maximum(mm(h, w2) + b2, 0.0)
    h = jnp.maximum(mm(h, w3) + b3, 0.0)
    return jnp.tanh(mm(h, w4) + b4)


if __name__ == "__main__":
    key = jax.random.PRNGKey(0)
    params = init_params(key)
    prepared = prepare_params(params)          # one-time pad/cast to bf16

    B = 8  # small test batch; wrapper pads rows up to a multiple of 8
    x = jax.random.normal(jax.random.fold_in(key, 100), (B, D_IN),
                          dtype=jnp.float32)

    out = generator_forward(x, prepared)
    out = jax.block_until_ready(out)
    assert out.shape == (B, D_OUT)

    ref_bf16 = jax.block_until_ready(reference_forward_bf16(x, params))
    ref_f32 = jax.block_until_ready(reference_forward_f32(x, params))

    # Tight check vs. a reference with identical bf16-matmul numerics.
    assert jnp.allclose(out, ref_bf16, atol=2e-4, rtol=1e-2), \
        float(jnp.max(jnp.abs(out - ref_bf16)))
    # Loose check vs. the full-f32 PyTorch-equivalent math (bf16 matmul error).
    assert jnp.allclose(out, ref_f32, atol=5e-3, rtol=0.0), \
        float(jnp.max(jnp.abs(out - ref_f32)))

    print("KERNEL_OK")
</pallas_src>

<mosaic_0001>
module attributes {stable_mosaic.version = 11 : i64} {
  func.func @generator_kernel(%arg0: i32, %arg1: memref<8x128xbf16, #tpu.memory_space<vmem>>, %arg2: memref<128x256xbf16, #tpu.memory_space<vmem>>, %arg3: memref<1x256xf32, #tpu.memory_space<vmem>>, %arg4: memref<256x512xbf16, #tpu.memory_space<vmem>>, %arg5: memref<1x512xf32, #tpu.memory_space<vmem>>, %arg6: memref<512x1024xbf16, #tpu.memory_space<vmem>>, %arg7: memref<1x1024xf32, #tpu.memory_space<vmem>>, %arg8: memref<1024x784xbf16, #tpu.memory_space<vmem>>, %arg9: memref<1x784xf32, #tpu.memory_space<vmem>>, %arg10: memref<8x784xf32, #tpu.memory_space<vmem>>) attributes {dimension_semantics = [#tpu.dimension_semantics<parallel>], iteration_bounds = array<i64: 1>, scalar_prefetch = 0 : i64, scratch_operands = 0 : i64, tpu.core_type = #tpu.core_type<tc>, window_params = [{transform_indices = @transform_0, window_bounds = array<i64: 8, 128>}, {pipeline_mode = #tpu.pipeline_mode<synchronous>, transform_indices = @transform_1, window_bounds = array<i64: 128, 256>}, {pipeline_mode = #tpu.pipeline_mode<synchronous>, transform_indices = @transform_2, window_bounds = array<i64: 1, 256>}, {pipeline_mode = #tpu.pipeline_mode<synchronous>, transform_indices = @transform_3, window_bounds = array<i64: 256, 512>}, {pipeline_mode = #tpu.pipeline_mode<synchronous>, transform_indices = @transform_4, window_bounds = array<i64: 1, 512>}, {pipeline_mode = #tpu.pipeline_mode<synchronous>, transform_indices = @transform_5, window_bounds = array<i64: 512, 1024>}, {pipeline_mode = #tpu.pipeline_mode<synchronous>, transform_indices = @transform_6, window_bounds = array<i64: 1, 1024>}, {pipeline_mode = #tpu.pipeline_mode<synchronous>, transform_indices = @transform_7, window_bounds = array<i64: 1024, 784>}, {pipeline_mode = #tpu.pipeline_mode<synchronous>, transform_indices = @transform_8, window_bounds = array<i64: 1, 784>}, {transform_indices = @transform_9, window_bounds = array<i64: 8, 784>}]} {
    %c0 = arith.constant 0 : index
    %c0_0 = arith.constant 0 : index
    %0 = vector.load %arg1[%c0, %c0_0] : memref<8x128xbf16, #tpu.memory_space<vmem>>, vector<8x128xbf16>
    %c0_1 = arith.constant 0 : index
    %c0_2 = arith.constant 0 : index
    %1 = vector.load %arg2[%c0_1, %c0_2] : memref<128x256xbf16, #tpu.memory_space<vmem>>, vector<128x256xbf16>
    %cst = arith.constant dense<0.000000e+00> : vector<8x256xf32>
    %2 = tpu.matmul %0, %1, %cst {dimension_numbers = #tpu.dot_dimension_numbers<[1], [0], [0], [1], [0, 0, 1, 1], [], []>} : vector<8x128xbf16>, vector<128x256xbf16>, vector<8x256xf32> -> vector<8x256xf32>
    %c0_3 = arith.constant 0 : index
    %c0_4 = arith.constant 0 : index
    %3 = vector.load %arg3[%c0_3, %c0_4] : memref<1x256xf32, #tpu.memory_space<vmem>>, vector<1x256xf32>
    %4 = vector.broadcast %3 : vector<1x256xf32> to vector<8x256xf32>
    %5 = arith.addf %2, %4 : vector<8x256xf32>
    %cst_5 = arith.constant 0.000000e+00 : f32
    %6 = vector.broadcast %cst_5 : f32 to vector<8x256xf32>
    %7 = arith.maximumf %5, %6 : vector<8x256xf32>
    %8 = arith.truncf %7 : vector<8x256xf32> to vector<8x256xbf16>
    %c0_6 = arith.constant 0 : index
    %c0_7 = arith.constant 0 : index
    %9 = vector.load %arg4[%c0_6, %c0_7] : memref<256x512xbf16, #tpu.memory_space<vmem>>, vector<256x512xbf16>
    %cst_8 = arith.constant dense<0.000000e+00> : vector<8x512xf32>
    %10 = tpu.matmul %8, %9, %cst_8 {dimension_numbers = #tpu.dot_dimension_numbers<[1], [0], [0], [1], [0, 0, 1, 1], [], []>} : vector<8x256xbf16>, vector<256x512xbf16>, vector<8x512xf32> -> vector<8x512xf32>
    %c0_9 = arith.constant 0 : index
    %c0_10 = arith.constant 0 : index
    %11 = vector.load %arg5[%c0_9, %c0_10] : memref<1x512xf32, #tpu.memory_space<vmem>>, vector<1x512xf32>
    %12 = vector.broadcast %11 : vector<1x512xf32> to vector<8x512xf32>
    %13 = arith.addf %10, %12 : vector<8x512xf32>
    %cst_11 = arith.constant 0.000000e+00 : f32
    %14 = vector.broadcast %cst_11 : f32 to vector<8x512xf32>
    %15 = arith.maximumf %13, %14 : vector<8x512xf32>
    %16 = arith.truncf %15 : vector<8x512xf32> to vector<8x512xbf16>
    %c0_12 = arith.constant 0 : index
    %c0_13 = arith.constant 0 : index
    %17 = vector.load %arg6[%c0_12, %c0_13] : memref<512x1024xbf16, #tpu.memory_space<vmem>>, vector<512x1024xbf16>
    %cst_14 = arith.constant dense<0.000000e+00> : vector<8x1024xf32>
    %18 = tpu.matmul %16, %17, %cst_14 {dimension_numbers = #tpu.dot_dimension_numbers<[1], [0], [0], [1], [0, 0, 1, 1], [], []>} : vector<8x512xbf16>, vector<512x1024xbf16>, vector<8x1024xf32> -> vector<8x1024xf32>
    %c0_15 = arith.constant 0 : index
    %c0_16 = arith.constant 0 : index
    %19 = vector.load %arg7[%c0_15, %c0_16] : memref<1x1024xf32, #tpu.memory_space<vmem>>, vector<1x1024xf32>
    %20 = vector.broadcast %19 : vector<1x1024xf32> to vector<8x1024xf32>
    %21 = arith.addf %18, %20 : vector<8x1024xf32>
    %cst_17 = arith.constant 0.000000e+00 : f32
    %22 = vector.broadcast %cst_17 : f32 to vector<8x1024xf32>
    %23 = arith.maximumf %21, %22 : vector<8x1024xf32>
    %24 = arith.truncf %23 : vector<8x1024xf32> to vector<8x1024xbf16>
    %c0_18 = arith.constant 0 : index
    %c0_19 = arith.constant 0 : index
    %25 = vector.load %arg8[%c0_18, %c0_19] : memref<1024x784xbf16, #tpu.memory_space<vmem>>, vector<1024x784xbf16>
    %cst_20 = arith.constant dense<0.000000e+00> : vector<8x784xf32>
    %26 = tpu.matmul %24, %25, %cst_20 {dimension_numbers = #tpu.dot_dimension_numbers<[1], [0], [0], [1], [0, 0, 1, 1], [], []>} : vector<8x1024xbf16>, vector<1024x784xbf16>, vector<8x784xf32> -> vector<8x784xf32>
    %c0_21 = arith.constant 0 : index
    %c0_22 = arith.constant 0 : index
    %27 = vector.load %arg9[%c0_21, %c0_22] : memref<1x784xf32, #tpu.memory_space<vmem>>, vector<1x784xf32>
    %28 = vector.broadcast %27 : vector<1x784xf32> to vector<8x784xf32>
    %29 = arith.addf %26, %28 : vector<8x784xf32>
    %30 = math.tanh %29 : vector<8x784xf32>
    %c0_23 = arith.constant 0 : index
    %c0_24 = arith.constant 0 : index
    %31 = vector.load %arg10[%c0_23, %c0_24] : memref<8x784xf32, #tpu.memory_space<vmem>>, vector<8x784xf32>
    tpu.vector_store %arg10[%c0_23, %c0_24], %30 {strides = array<i32>} : memref<8x784xf32, #tpu.memory_space<vmem>>, vector<8x784xf32>,
    return
  }
  func.func @transform_0(%arg0: i32) -> (i32, i32) {
    %c0_i32 = arith.constant 0 : i32
    %c0_i32_0 = arith.constant 0 : i32
    return %arg0, %c0_i32 : i32, i32
  }
  func.func @transform_1(%arg0: i32) -> (i32, i32) {
    %c0_i32 = arith.constant 0 : i32
    %c0_i32_0 = arith.constant 0 : i32
    %c0_i32_1 = arith.constant 0 : i32
    return %c0_i32, %c0_i32_0 : i32, i32
  }
  func.func @transform_2(%arg0: i32) -> (i32, i32) {
    %c0_i32 = arith.constant 0 : i32
    %c0_i32_0 = arith.constant 0 : i32
    %c0_i32_1 = arith.constant 0 : i32
    return %c0_i32, %c0_i32_0 : i32, i32
  }
  func.func @transform_3(%arg0: i32) -> (i32, i32) {
    %c0_i32 = arith.constant 0 : i32
    %c0_i32_0 = arith.constant 0 : i32
    %c0_i32_1 = arith.constant 0 : i32
    return %c0_i32, %c0_i32_0 : i32, i32
  }
  func.func @transform_4(%arg0: i32) -> (i32, i32) {
    %c0_i32 = arith.constant 0 : i32
    %c0_i32_0 = arith.constant 0 : i32
    %c0_i32_1 = arith.constant 0 : i32
    return %c0_i32, %c0_i32_0 : i32, i32
  }
  func.func @transform_5(%arg0: i32) -> (i32, i32) {
    %c0_i32 = arith.constant 0 : i32
    %c0_i32_0 = arith.constant 0 : i32
    %c0_i32_1 = arith.constant 0 : i32
    return %c0_i32, %c0_i32_0 : i32, i32
  }
  func.func @transform_6(%arg0: i32) -> (i32, i32) {
    %c0_i32 = arith.constant 0 : i32
    %c0_i32_0 = arith.constant 0 : i32
    %c0_i32_1 = arith.constant 0 : i32
    return %c0_i32, %c0_i32_0 : i32, i32
  }
  func.func @transform_7(%arg0: i32) -> (i32, i32) {
    %c0_i32 = arith.constant 0 : i32
    %c0_i32_0 = arith.constant 0 : i32
    %c0_i32_1 = arith.constant 0 : i32
    return %c0_i32, %c0_i32_0 : i32, i32
  }
  func.func @transform_8(%arg0: i32) -> (i32, i32) {
    %c0_i32 = arith.constant 0 : i32
    %c0_i32_0 = arith.constant 0 : i32
    %c0_i32_1 = arith.constant 0 : i32
    return %c0_i32, %c0_i32_0 : i32, i32
  }
  func.func @transform_9(%arg0: i32) -> (i32, i32) {
    %c0_i32 = arith.constant 0 : i32
    %c0_i32_0 = arith.constant 0 : i32
    return %arg0, %c0_i32 : i32, i32
  }
}

</mosaic_0001>

<bundles_post_ra>
// kernel: generator_forward.1
= control target key start
LH: loop header
LB: loop body
LE: loop exit
PB: predicated region body
PF: predicated region fallthrough
CT: control target
= control target key end

     0   :  { %v7811_v2 = vmov 0   ;;  %s10409_s0 = inlined_call_operand.vmem [shape: bf16[8,128], index: 0, kind: input, shape index: {}]   ;;  %s10410_s1 = inlined_call_operand.vmem [shape: bf16[128,256], index: 1, kind: input, shape index: {}]   ;;  %s10411_s2 = inlined_call_operand.vmem [shape: f32[1,256], index: 2, kind: input, shape index: {}]   ;;  %s10412_s3 = inlined_call_operand.vmem [shape: bf16[256,512], index: 3, kind: input, shape index: {}]   ;;  %s10413_s4 = inlined_call_operand.vmem [shape: f32[1,512], index: 4, kind: input, shape index: {}]   ;;  %s10414_s5 = inlined_call_operand.vmem [shape: bf16[512,1024], index: 5, kind: input, shape index: {}]   ;;  %s10415_s6 = inlined_call_operand.vmem [shape: f32[1,1024], index: 6, kind: input, shape index: {}]   ;;  %s10416_s7 = inlined_call_operand.vmem [shape: bf16[1024,784], index: 7, kind: input, shape index: {}]   ;;  %s10417_s8 = inlined_call_operand.vmem [shape: f32[1,784], index: 8, kind: input, shape index: {}]   ;;  %s10418_s9 = inlined_call_operand.hbm [shape: f32[8,784], index: 9, kind: output, shape index: {}]  }
   0x1   :  { %v7014_v0 = vld [vmem:[%s10410_s1 + $0x74] ss:$8 sps:$4 sm:$0xff]   ;;  %v7016_v1 = vld [vmem:[%s10410_s1 + $0x70] ss:$8 sps:$4 sm:$0xff]   ;;  %175 = vmatprep.mubr.bf16.mxu0 %v7811_v2  ;;  %v7017_v3 = vld [vmem:[%s10410_s1 + $0x64] ss:$8 sps:$4 sm:$0xff]  }
   0x2   :  { %143 = vmatprep.subr.bf16.mxu0 %v7014_v0  ;;  %v7019_v4 = vld [vmem:[%s10410_s1 + $0x60] ss:$8 sps:$4 sm:$0xff]   ;;  %v7020_v5 = vld [vmem:[%s10410_s1 + $0x54] ss:$8 sps:$4 sm:$0xff]   ;;  %v7022_v6 = vld [vmem:[%s10410_s1 + $0x50] ss:$8 sps:$4 sm:$0xff]  }
   0x3   :  { %144 = vmatpush1.bf16.msra.mxu0 %v7016_v1  ;;  %v7023_v7 = vld [vmem:[%s10410_s1 + $0x44] ss:$8 sps:$4 sm:$0xff]   ;;  %v7025_v8 = vld [vmem:[%s10410_s1 + $0x40] ss:$8 sps:$4 sm:$0xff]   ;;  %v7026_v10 = vld [vmem:[%s10410_s1 + $0x34] ss:$8 sps:$4 sm:$0xff]  }
   0x4   :  { %145 = vmatprep.subr.bf16.mxu0 %v7017_v3  ;;  %v7038_v9 = vld [vmem:[%s10412_s3 + $0xe4] ss:$16 sps:$4 sm:$0xff]   ;;  %v7043_v11 = vld [vmem:[%s10412_s3 + $0xe0] ss:$16 sps:$4 sm:$0xff]   ;;  %v7042_v26 = vld [vmem:[%s10412_s3 + $0xec] ss:$16 sps:$4 sm:$0xff]  }
   0x5   :  { %594 = vmatprep.subr.bf16.mxu1 %v7038_v9  ;;  %v7044_v12 = vld [vmem:[%s10412_s3 + $0xc4] ss:$16 sps:$4 sm:$0xff]   ;;  %v7028_v13 = vld [vmem:[%s10410_s1 + $0x30] ss:$8 sps:$4 sm:$0xff]   ;;  %v7031_v17 = vld [vmem:[%s10410_s1 + $0x20] ss:$8 sps:$4 sm:$0xff]  }
   0x6   :  { %v7029_v14 = vld [vmem:[%s10410_s1 + $0x24] ss:$8 sps:$4 sm:$0xff]   ;;  %595 = vmatpush1.bf16.msra.mxu1 %v7043_v11  ;;  %v7049_v15 = vld [vmem:[%s10412_s3 + $0xc0] ss:$16 sps:$4 sm:$0xff]   ;;  %v7032_v18 = vld [vmem:[%s10410_s1 + $0x14] ss:$8 sps:$4 sm:$0xff]  }
   0x7   :  { %146 = vmatpush1.bf16.msra.mxu0 %v7019_v4  ;;  %596 = vmatprep.subr.bf16.mxu1 %v7044_v12  ;;  %v7050_v16 = vld [vmem:[%s10412_s3 + $0xa4] ss:$16 sps:$4 sm:$0xff]   ;;  %v7055_v19 = vld [vmem:[%s10412_s3 + $0xa0] ss:$16 sps:$4 sm:$0xff]   ;;  %v7040_v30 = vld [vmem:[%s10412_s3 + $0xe8] ss:$16 sps:$4 sm:$0xff]  }
   0x8   :  { %147 = vmatprep.subr.bf16.mxu0 %v7020_v5  ;;  %v7056_v20 = vld [vmem:[%s10412_s3 + $0x84] ss:$16 sps:$4 sm:$0xff]   ;;  %v7034_v21 = vld [vmem:[%s10410_s1 + $0x10] ss:$8 sps:$4 sm:$0xff]   ;;  %v7037_v25 = vld [vmem:[%s10410_s1] ss:$8 sps:$4 sm:$0xff]  }
   0x9   :  { %v7035_v22 = vld [vmem:[%s10410_s1 + $0x4] ss:$8 sps:$4 sm:$0xff]   ;;  %v7061_v23 = vld [vmem:[%s10412_s3 + $0x80] ss:$16 sps:$4 sm:$0xff]   ;;  %v7046_v34 = vld [vmem:[%s10412_s3 + $0xc8] ss:$16 sps:$4 sm:$0xff]  }
   0xa   :  { %597 = vmatpush1.bf16.msra.mxu1 %v7049_v15  ;;  %v7062_v24 = vld [vmem:[%s10412_s3 + $0x64] ss:$16 sps:$4 sm:$0xff]   ;;  %v7067_v27 = vld [vmem:[%s10412_s3 + $0x60] ss:$16 sps:$4 sm:$0xff]   ;;  %v7048_v31 = vld [vmem:[%s10412_s3 + $0xcc] ss:$16 sps:$4 sm:$0xff]  }
   0xb   :  { %148 = vmatpush1.bf16.msra.mxu0 %v7022_v6  ;;  %598 = vmatprep.subr.bf16.mxu1 %v7050_v16  ;;  %v7068_v28 = vld [vmem:[%s10412_s3 + $0x44] ss:$16 sps:$4 sm:$0xff]   ;;  %v34_v29 = vld [vmem:[%s10409_s0] sm:$0xf]  ;;  %v7054_v35 = vld [vmem:[%s10412_s3 + $0xac] ss:$16 sps:$4 sm:$0xff]  }
   0xc   :  { %149 = vmatprep.subr.bf16.mxu0 %v7023_v7  ;;  %v7073_v32 = vld [vmem:[%s10412_s3 + $0x40] ss:$16 sps:$4 sm:$0xff]   ;;  %v7074_v33 = vld [vmem:[%s10412_s3 + $0x24] ss:$16 sps:$4 sm:$0xff]   ;;  %v7052_v38 = vld [vmem:[%s10412_s3 + $0xa8] ss:$16 sps:$4 sm:$0xff]  }
   0xd   :  { %v7079_v36 = vld [vmem:[%s10412_s3 + $0x20] ss:$16 sps:$4 sm:$0xff]   ;;  %v7080_v37 = vld [vmem:[%s10412_s3 + $0x4] ss:$16 sps:$4 sm:$0xff]   ;;  %v7060_v39 = vld [vmem:[%s10412_s3 + $0x8c] ss:$16 sps:$4 sm:$0xff]  }
   0xe   :  { %599 = vmatpush1.bf16.msra.mxu1 %v7055_v19  ;;  %v7085_v40 = vld [vmem:[%s10412_s3] ss:$16 sps:$4 sm:$0xff]   ;;  %v7086_v41 = vld [vmem:[%s10412_s3 + $0x1e4] ss:$16 sps:$4 sm:$0xff]   ;;  %v7058_v42 = vld [vmem:[%s10412_s3 + $0x88] ss:$16 sps:$4 sm:$0xff]  }
   0xf   :  { %150 = vmatpush1.bf16.msra.mxu0 %v7025_v8  ;;  %600 = vmatprep.subr.bf16.mxu1 %v7056_v20  ;;  %v7066_v43 = vld [vmem:[%s10412_s3 + $0x6c] ss:$16 sps:$4 sm:$0xff]   ;;  %v7091_v44 = vld [vmem:[%s10412_s3 + $0x1e0] ss:$16 sps:$4 sm:$0xff]   ;;  %v7092_v45 = vld [vmem:[%s10412_s3 + $0x1c4] ss:$16 sps:$4 sm:$0xff]  }
  0x10   :  { %151 = vmatprep.subr.bf16.mxu0 %v7026_v10  ;;  %v7064_v46 = vld [vmem:[%s10412_s3 + $0x68] ss:$16 sps:$4 sm:$0xff]   ;;  %v7097_v47 = vld [vmem:[%s10412_s3 + $0x1c0] ss:$16 sps:$4 sm:$0xff]   ;;  %v7072_v48 = vld [vmem:[%s10412_s3 + $0x4c] ss:$16 sps:$4 sm:$0xff]  }
  0x11   :  { %v7098_v49 = vld [vmem:[%s10412_s3 + $0x1a4] ss:$16 sps:$4 sm:$0xff]   ;;  %v7070_v50 = vld [vmem:[%s10412_s3 + $0x48] ss:$16 sps:$4 sm:$0xff]   ;;  %v7103_v51 = vld [vmem:[%s10412_s3 + $0x1a0] ss:$16 sps:$4 sm:$0xff]  }
  0x12   :  { %601 = vmatpush1.bf16.msra.mxu1 %v7061_v23  ;;  %v7078_v52 = vld [vmem:[%s10412_s3 + $0x2c] ss:$16 sps:$4 sm:$0xff]   ;;  %v7104_v53 = vld [vmem:[%s10412_s3 + $0x184] ss:$16 sps:$4 sm:$0xff]   ;;  %v7076_v54 = vld [vmem:[%s10412_s3 + $0x28] ss:$16 sps:$4 sm:$0xff]  }
  0x13   :  { %152 = vmatpush1.bf16.msra.mxu0 %v7028_v13  ;;  %602 = vmatprep.subr.bf16.mxu1 %v7062_v24  ;;  %v7109_v55 = vld [vmem:[%s10412_s3 + $0x180] ss:$16 sps:$4 sm:$0xff]   ;;  %v7084_v56 = vld [vmem:[%s10412_s3 + $0xc] ss:$16 sps:$4 sm:$0xff]   ;;  %v7110_v57 = vld [vmem:[%s10412_s3 + $0x164] ss:$16 sps:$4 sm:$0xff]  }
  0x14   :  { %153 = vmatprep.subr.bf16.mxu0 %v7029_v14  ;;  %v7082_v58 = vld [vmem:[%s10412_s3 + $0x8] ss:$16 sps:$4 sm:$0xff]   ;;  %v7115_v59 = vld [vmem:[%s10412_s3 + $0x160] ss:$16 sps:$4 sm:$0xff]   ;;  %v7090_v60 = vld [vmem:[%s10412_s3 + $0x1ec] ss:$16 sps:$4 sm:$0xff]  }
  0x15   :  { %v7116_v61 = vld [vmem:[%s10412_s3 + $0x144] ss:$16 sps:$4 sm:$0xff]   ;;  %v7088_v62 = vld [vmem:[%s10412_s3 + $0x1e8] ss:$16 sps:$4 sm:$0xff]   ;;  %v7121_v63 = vld [vmem:[%s10412_s3 + $0x140] ss:$16 sps:$4 sm:$0xff]  }
  0x16   :  { %603 = vmatpush1.bf16.msra.mxu1 %v7067_v27  ;;  %v7096_v0 = vld [vmem:[%s10412_s3 + $0x1cc] ss:$16 sps:$4 sm:$0xff]   ;;  %v7094_v1 = vld [vmem:[%s10412_s3 + $0x1c8] ss:$16 sps:$4 sm:$0xff]   ;;  %v7122_v10 = vld [vmem:[%s10412_s3 + $0x124] ss:$16 sps:$4 sm:$0xff]  }
  0x17   :  { %154 = vmatpush1.bf16.msra.mxu0 %v7031_v17  ;;  %604 = vmatprep.subr.bf16.mxu1 %v7068_v28  ;;  %v7102_v2 = vld [vmem:[%s10412_s3 + $0x1ac] ss:$16 sps:$4 sm:$0xff]   ;;  %v7100_v3 = vld [vmem:[%s10412_s3 + $0x1a8] ss:$16 sps:$4 sm:$0xff]   ;;  %v7127_v13 = vld [vmem:[%s10412_s3 + $0x120] ss:$16 sps:$4 sm:$0xff]  }
  0x18   :  { %155 = vmatprep.subr.bf16.mxu0 %v7032_v18  ;;  %v7108_v4 = vld [vmem:[%s10412_s3 + $0x18c] ss:$16 sps:$4 sm:$0xff]   ;;  %v7106_v5 = vld [vmem:[%s10412_s3 + $0x188] ss:$16 sps:$4 sm:$0xff]   ;;  %v7128_v14 = vld [vmem:[%s10412_s3 + $0x104] ss:$16 sps:$4 sm:$0xff]  }
  0x19   :  { %v7114_v6 = vld [vmem:[%s10412_s3 + $0x16c] ss:$16 sps:$4 sm:$0xff]   ;;  %v7112_v7 = vld [vmem:[%s10412_s3 + $0x168] ss:$16 sps:$4 sm:$0xff]   ;;  %v7133_v17 = vld [vmem:[%s10412_s3 + $0x100] ss:$16 sps:$4 sm:$0xff]  }
  0x1a   :  { %605 = vmatpush1.bf16.msra.mxu1 %v7073_v32  ;;  %v7120_v8 = vld [vmem:[%s10412_s3 + $0x14c] ss:$16 sps:$4 sm:$0xff]   ;;  %v7118_v9 = vld [vmem:[%s10412_s3 + $0x148] ss:$16 sps:$4 sm:$0xff]   ;;  %v740_v18 = vld [vmem:[%s10414_s5 + $0x1c0] sm:$0xff] }
  0x1b   :  { %156 = vmatpush1.bf16.msra.mxu0 %v7034_v21  ;;  %606 = vmatprep.subr.bf16.mxu1 %v7074_v33  ;;  %v7126_v11 = vld [vmem:[%s10412_s3 + $0x12c] ss:$16 sps:$4 sm:$0xff]   ;;  %v7124_v12 = vld [vmem:[%s10412_s3 + $0x128] ss:$16 sps:$4 sm:$0xff]   ;;  %v744_v19 = vld [vmem:[%s10414_s5 + $0x1e0] sm:$0xff] }
  0x1c   :  { %157 = vmatprep.subr.bf16.mxu0 %v7035_v22  ;;  %v7132_v15 = vld [vmem:[%s10412_s3 + $0x10c] ss:$16 sps:$4 sm:$0xff]   ;;  %v7130_v16 = vld [vmem:[%s10412_s3 + $0x108] ss:$16 sps:$4 sm:$0xff]   ;;  %v868_v20 = vld [vmem:[%s10414_s5 + $0x5c0] sm:$0xff]  ;;  %v6276_v21 = vcombine.low %v740_v18, %v744_v19  ;;  %v6277_v22 = vcombine.high %v740_v18, %v744_v19 }
  0x1d   :  { %v872_v23 = vld [vmem:[%s10414_s5 + $0x5e0] sm:$0xff] }
  0x1e   :  { %607 = vmatpush1.bf16.msra.mxu1 %v7079_v36  ;;  %v6404_v24 = vcombine.low %v868_v20, %v872_v23  ;;  %v51_v28 = vld [vmem:[%s10411_s2] sm:$0x3] }
  0x1f   :  { %158 = vmatpush1.bf16.msra.mxu0 %v7037_v25  ;;  %608 = vmatprep.subr.bf16.mxu1 %v7080_v37  ;;  %v6405_v25 = vcombine.high %v868_v20, %v872_v23 }
  0x20   :  { %635 = vmatprep.subr.bf16.mxu0 %v7042_v26  ;;  %v53_v26 = vlaneseq }
  0x22   :  { %176 = vmatmul.mubr.bf16.vlgmr.msra.gmra.mxu0 %v34_v29  ;;  %609 = vmatpush1.bf16.msra.mxu1 %v7085_v40  ;;  %v8118_v27 = vshrl.u32 %v53_v26, 7  ;;  %v860_v40 = vld [vmem:[%s10414_s5 + $0x580] sm:$0xff] }
  0x23   :  { %636 = vmatpush1.bf16.msra.mxu0 %v7040_v30  ;;  %610 = vmatprep.subr.bf16.mxu1 %v7086_v41 }
  0x24   :  { %637 = vmatprep.subr.bf16.mxu0 %v7048_v31  ;;  %v8124_v29 = vsub.s32 0, %v8118_v27  ;;  %v8127_v30 = vsub.s32 1, %v8118_v27 }
  0x26   :  { %611 = vmatpush2.bf16.msra.mxu1 %v7091_v44  ;;  %v56_v31 = vrot.slane %v51_v28, %v8124_v29  ;;  %v60_v32 = vrot.slane %v51_v28, %v8127_v30 }
  0x27   :  { %638 = vmatpush1.bf16.msra.mxu0 %v7046_v34  ;;  %612 = vmatprep.subr.bf16.mxu1 %v7092_v45 }
  0x28   :  { %639 = vmatprep.subr.bf16.mxu0 %v7054_v35 }
  0x2a   :  { %613 = vmatpush2.bf16.msra.mxu1 %v7097_v47  ;;  %v728_v47 = vld [vmem:[%s10414_s5 + $0x160] sm:$0xff] }
  0x2b   :  { %640 = vmatpush1.bf16.msra.mxu0 %v7052_v38  ;;  %614 = vmatprep.subr.bf16.mxu1 %v7098_v49  ;;  %v732_v38 = vld [vmem:[%s10414_s5 + $0x180] sm:$0xff] }
  0x2c   :  { %641 = vmatprep.subr.bf16.mxu0 %v7060_v39  ;;  %v736_v39 = vld [vmem:[%s10414_s5 + $0x1a0] sm:$0xff] }
  0x2d   :  { %v856_v49 = vld [vmem:[%s10414_s5 + $0x560] sm:$0xff] }
  0x2e   :  { %615 = vmatpush2.bf16.msra.mxu1 %v7103_v51  ;;  %v6269_v51 = vcombine.high %v732_v38, %v736_v39 }
  0x2f   :  { %642 = vmatpush1.bf16.msra.mxu0 %v7058_v42  ;;  %616 = vmatprep.subr.bf16.mxu1 %v7104_v53  ;;  %v6268_v53 = vcombine.low %v732_v38, %v736_v39 }
  0x30   :  { %643 = vmatprep.subr.bf16.mxu0 %v7066_v43  ;;  %v864_v43 = vld [vmem:[%s10414_s5 + $0x5a0] sm:$0xff] }
  0x32   :  { %617 = vmatpush2.bf16.msra.mxu1 %v7109_v55  ;;  %v716_v55 = vld [vmem:[%s10414_s5 + $0x100] sm:$0xff] }
  0x33   :  { %644 = vmatpush1.bf16.msra.mxu0 %v7064_v46  ;;  %618 = vmatprep.subr.bf16.mxu1 %v7110_v57  ;;  %v724_v46 = vld [vmem:[%s10414_s5 + $0x140] sm:$0xff] }
  0x34   :  { %645 = vmatprep.subr.bf16.mxu0 %v7072_v48  ;;  %v852_v48 = vld [vmem:[%s10414_s5 + $0x540] sm:$0xff] }
  0x35   :  { %v844_v57 = vld [vmem:[%s10414_s5 + $0x500] sm:$0xff] }
  0x36   :  { %619 = vmatpush2.bf16.msra.mxu1 %v7115_v59  ;;  %v6261_v59 = vcombine.high %v724_v46, %v728_v47 }
  0x37   :  { %646 = vmatpush1.bf16.msra.mxu0 %v7070_v50  ;;  %620 = vmatprep.subr.bf16.mxu1 %v7116_v61  ;;  %v6260_v61 = vcombine.low %v724_v46, %v728_v47 }
  0x38   :  { %647 = vmatprep.subr.bf16.mxu0 %v7078_v52  ;;  %v6397_v52 = vcombine.high %v860_v40, %v864_v43 }
  0x3a   :  { %621 = vmatpush2.bf16.msra.mxu1 %v7121_v63  ;;  %v708_v63 = vld [vmem:[%s10414_s5 + $0xc0] sm:$0xff] }
  0x3b   :  { %648 = vmatpush1.bf16.msra.mxu0 %v7076_v54  ;;  %622 = vmatprep.subr.bf16.mxu1 %v7122_v10  ;;  %v6396_v54 = vcombine.low %v860_v40, %v864_v43 }
  0x3c   :  { %649 = vmatprep.subr.bf16.mxu0 %v7084_v56  ;;  %v720_v56 = vld [vmem:[%s10414_s5 + $0x120] sm:$0xff] }
  0x3e   :  { %623 = vmatpush2.bf16.msra.mxu1 %v7127_v13 }
  0x3f   :  { %650 = vmatpush1.bf16.msra.mxu0 %v7082_v58  ;;  %624 = vmatprep.subr.bf16.mxu1 %v7128_v14  ;;  %v848_v58 = vld [vmem:[%s10414_s5 + $0x520] sm:$0xff] }
  0x40   :  { %651 = vmatprep.subr.bf16.mxu0 %v7090_v60  ;;  %v6389_v60 = vcombine.high %v852_v48, %v856_v49 }
  0x42   :  { %625 = vmatpush2.bf16.msra.mxu1 %v7133_v17 }
  0x43   :  { %652 = vmatpush2.bf16.msra.mxu0 %v7088_v62  ;;  %2262 = vmatprep.subr.bf16.mxu1 %v6277_v22  ;;  %v6388_v62 = vcombine.low %v852_v48, %v856_v49 }
  0x44   :  { %653 = vmatprep.subr.bf16.mxu0 %v7096_v0  ;;  %v712_v0 = vld [vmem:[%s10414_s5 + $0xe0] sm:$0xff] }
  0x47   :  { %654 = vmatpush2.bf16.msra.mxu0 %v7094_v1  ;;  %v836_v1 = vld [vmem:[%s10414_s5 + $0x4c0] sm:$0xff] }
  0x48   :  { %655 = vmatprep.subr.bf16.mxu0 %v7102_v2  ;;  %v840_v2 = vld [vmem:[%s10414_s5 + $0x4e0] sm:$0xff] }
  0x4b   :  { %656 = vmatpush2.bf16.msra.mxu0 %v7100_v3  ;;  %v6253_v3 = vcombine.high %v716_v55, %v720_v56 }
  0x4c   :  { %657 = vmatprep.subr.bf16.mxu0 %v7108_v4  ;;  %v6381_v4 = vcombine.high %v844_v57, %v848_v58 }
  0x4f   :  { %658 = vmatpush2.bf16.msra.mxu0 %v7106_v5 }
  0x50   :  { %659 = vmatprep.subr.bf16.mxu0 %v7114_v6 }
  0x53   :  { %660 = vmatpush2.bf16.msra.mxu0 %v7112_v7 }
  0x54   :  { %661 = vmatprep.subr.bf16.mxu0 %v7120_v8 }
  0x57   :  { %662 = vmatpush2.bf16.msra.mxu0 %v7118_v9 }
  0x58   :  { %663 = vmatprep.subr.bf16.mxu0 %v7126_v11 }
  0x5b   :  { %664 = vmatpush2.bf16.msra.mxu0 %v7124_v12 }
  0x5c   :  { %665 = vmatprep.subr.bf16.mxu0 %v7132_v15 }
  0x5f   :  { %666 = vmatpush2.bf16.msra.mxu0 %v7130_v16 }
  0x60   :  { %2303 = vmatprep.subr.bf16.mxu0 %v6405_v25 }
  0xe2   :  { %v177_v33 = vpop.f32.mrf.mxu0 }
  0xe3   :  { %v178_v34 = vadd.f32 %v177_v33, %v56_v31 }
  0xe4   :  { %v179_v35 = vpop.f32.mrf.mxu0 }
  0xe5   :  { %v184_v36 = vmax.f32 %v178_v34, 0.0  ;;  %v180_v37 = vadd.f32 %v179_v35, %v60_v32 }
  0xe6   :  { %v181_v41 = vpop.f32.mrf.mxu0 }
  0xe7   :  { %v185_v42 = vmax.f32 %v180_v37, 0.0  ;;  %v186_v50 = vpack.c.bf16 %v184_v36, %v184_v36 }
  0xe8   :  { %v182_v44 = vpop.f32.mrf.mxu0 }
  0xe9   :  { %v187_v45 = vpack.c.bf16 %v185_v42, %v185_v42 }
  0xeb   :  { %626 = vmatprep.mubr.bf16.mxu1 %v187_v45  ;;  %667 = vmatprep.mubr.bf16.mxu0 %v187_v45 }
  0xec   :  { %627 = vmatmul.mubr.bf16.vlgmr.msra.gmra.mxu1 %v186_v50  ;;  %668 = vmatmul.mubr.bf16.vlgmr.msra.gmra.mxu0 %v186_v50 }
  0xed   :  { %2263 = vmatpush1.bf16.msra.mxu1 %v6276_v21  ;;  %2304 = vmatpush1.bf16.msra.mxu0 %v6404_v24 }
  0xee   :  { %2264 = vmatprep.subr.bf16.mxu1 %v6269_v51  ;;  %2305 = vmatprep.subr.bf16.mxu0 %v6397_v52 }
  0xf1   :  { %2265 = vmatpush1.bf16.msra.mxu1 %v6268_v53  ;;  %2306 = vmatpush1.bf16.msra.mxu0 %v6396_v54 }
  0xf2   :  { %2266 = vmatprep.subr.bf16.mxu1 %v6261_v59  ;;  %2307 = vmatprep.subr.bf16.mxu0 %v6389_v60 }
  0xf3   :  { %14 = vsyncpa [#allocation3], 0  ;;  %v6252_v5 = vcombine.low %v716_v55, %v720_v56  ;;  %v6380_v6 = vcombine.low %v844_v57, %v848_v58  ;;  %v6245_v7 = vcombine.high %v708_v63, %v712_v0  ;;  %v6373_v8 = vcombine.high %v836_v1, %v840_v2  ;;  %v700_v9 = vld [vmem:[%s10414_s5 + $0x80] sm:$0xff] }
  0xf4   :  { %v704_v10 = vld [vmem:[%s10414_s5 + $0xa0] sm:$0xff]  ;;  %v6244_v13 = vcombine.low %v708_v63, %v712_v0  ;;  %v6372_v14 = vcombine.low %v836_v1, %v840_v2  ;;  %vm6124_vm0 = vcmask 130048  }
  0xf5   :  { %2267 = vmatpush1.bf16.msra.mxu1 %v6260_v61  ;;  %2308 = vmatpush1.bf16.msra.mxu0 %v6388_v62  ;;  %v828_v11 = vld [vmem:[%s10414_s5 + $0x480] sm:$0xff]  ;;  %v6237_v15 = vcombine.high %v700_v9, %v704_v10  ;;  %v6236_v21 = vcombine.low %v700_v9, %v704_v10 }
  0xf6   :  { %2268 = vmatprep.subr.bf16.mxu1 %v6253_v3  ;;  %2309 = vmatprep.subr.bf16.mxu0 %v6381_v4  ;;  %v832_v12 = vld [vmem:[%s10414_s5 + $0x4a0] sm:$0xff] }
  0xf7   :  { %v6365_v16 = vcombine.high %v828_v11, %v832_v12  ;;  %v692_v17 = vld [vmem:[%s10414_s5 + $0x40] sm:$0xff]  ;;  %v6364_v22 = vcombine.low %v828_v11, %v832_v12 }
  0xf8   :  { %v696_v18 = vld [vmem:[%s10414_s5 + $0x60] sm:$0xff] }
  0xf9   :  { %2269 = vmatpush1.bf16.msra.mxu1 %v6252_v5  ;;  %2310 = vmatpush1.bf16.msra.mxu0 %v6380_v6  ;;  %v820_v19 = vld [vmem:[%s10414_s5 + $0x440] sm:$0xff]  ;;  %v6229_v23 = vcombine.high %v692_v17, %v696_v18  ;;  %v6228_v32 = vcombine.low %v692_v17, %v696_v18 }
  0xfa   :  { %2270 = vmatprep.subr.bf16.mxu1 %v6245_v7  ;;  %2311 = vmatprep.subr.bf16.mxu0 %v6373_v8  ;;  %v824_v20 = vld [vmem:[%s10414_s5 + $0x460] sm:$0xff] }
  0xfb   :  { %v6357_v24 = vcombine.high %v820_v19, %v824_v20  ;;  %v684_v25 = vld [vmem:[%s10414_s5] sm:$0xff]  ;;  %v6356_v33 = vcombine.low %v820_v19, %v824_v20 }
  0xfc   :  { %v688_v26 = vld [vmem:[%s10414_s5 + $0x20] sm:$0xff] }
  0xfd   :  { %2271 = vmatpush1.bf16.msra.mxu1 %v6244_v13  ;;  %2312 = vmatpush1.bf16.msra.mxu0 %v6372_v14  ;;  %v812_v28 = vld [vmem:[%s10414_s5 + $0x400] sm:$0xff]  ;;  %v6221_v34 = vcombine.high %v684_v25, %v688_v26  ;;  %v6220_v40 = vcombine.low %v684_v25, %v688_v26 }
  0xfe   :  { %2272 = vmatprep.subr.bf16.mxu1 %v6237_v15  ;;  %2313 = vmatprep.subr.bf16.mxu0 %v6365_v16  ;;  %v816_v31 = vld [vmem:[%s10414_s5 + $0x420] sm:$0xff] }
  0xff   :  { %v6349_v35 = vcombine.high %v812_v28, %v816_v31  ;;  %v804_v36 = vld [vmem:[%s10414_s5 + $0x3c0] sm:$0xff]  ;;  %v6348_v41 = vcombine.low %v812_v28, %v816_v31 }
 0x100   :  { %v808_v37 = vld [vmem:[%s10414_s5 + $0x3e0] sm:$0xff] }
 0x101   :  { %2273 = vmatpush1.bf16.msra.mxu1 %v6236_v21  ;;  %2314 = vmatpush1.bf16.msra.mxu0 %v6364_v22  ;;  %v932_v38 = vld [vmem:[%s10414_s5 + $0x7c0] sm:$0xff]  ;;  %v6341_v42 = vcombine.high %v804_v36, %v808_v37  ;;  %v6340_v48 = vcombine.low %v804_v36, %v808_v37 }
 0x102   :  { %2274 = vmatprep.subr.bf16.mxu1 %v6229_v23  ;;  %2315 = vmatprep.subr.bf16.mxu0 %v6357_v24  ;;  %v936_v39 = vld [vmem:[%s10414_s5 + $0x7e0] sm:$0xff] }
 0x103   :  { %v6469_v43 = vcombine.high %v932_v38, %v936_v39  ;;  %v796_v44 = vld [vmem:[%s10414_s5 + $0x380] sm:$0xff]  ;;  %v6468_v49 = vcombine.low %v932_v38, %v936_v39 }
 0x104   :  { %v800_v45 = vld [vmem:[%s10414_s5 + $0x3a0] sm:$0xff] }
 0x105   :  { %2275 = vmatpush1.bf16.msra.mxu1 %v6228_v32  ;;  %2316 = vmatpush1.bf16.msra.mxu0 %v6356_v33  ;;  %v924_v46 = vld [vmem:[%s10414_s5 + $0x780] sm:$0xff]  ;;  %v6333_v50 = vcombine.high %v796_v44, %v800_v45  ;;  %v6332_v56 = vcombine.low %v796_v44, %v800_v45  ;;  %v873_v45 = vld [vmem:[%s10414_s5 + $0x5e8] sm:$0xff] }
 0x106   :  { %2276 = vmatprep.subr.bf16.mxu1 %v6221_v34  ;;  %2317 = vmatprep.subr.bf16.mxu0 %v6349_v35  ;;  %v928_v47 = vld [vmem:[%s10414_s5 + $0x7a0] sm:$0xff] }
 0x107   :  { %v6461_v51 = vcombine.high %v924_v46, %v928_v47  ;;  %v788_v52 = vld [vmem:[%s10414_s5 + $0x340] sm:$0xff]  ;;  %v6460_v57 = vcombine.low %v924_v46, %v928_v47 }
 0x108   :  { %v792_v53 = vld [vmem:[%s10414_s5 + $0x360] sm:$0xff] }
 0x109   :  { %2277 = vmatpush1.bf16.msra.mxu1 %v6220_v40  ;;  %2318 = vmatpush1.bf16.msra.mxu0 %v6348_v41  ;;  %v916_v54 = vld [vmem:[%s10414_s5 + $0x740] sm:$0xff]  ;;  %v6325_v58 = vcombine.high %v788_v52, %v792_v53  ;;  %v6324_v0 = vcombine.low %v788_v52, %v792_v53  ;;  %v741_v41 = vld [vmem:[%s10414_s5 + $0x1c8] sm:$0xff] }
 0x10a   :  { %2278 = vmatprep.subr.bf16.mxu1 %v6341_v42  ;;  %2319 = vmatprep.subr.bf16.mxu0 %v6469_v43  ;;  %v920_v55 = vld [vmem:[%s10414_s5 + $0x760] sm:$0xff]  ;;  %v745_v42 = vld [vmem:[%s10414_s5 + $0x1e8] sm:$0xff] }
 0x10b   :  { %v6453_v59 = vcombine.high %v916_v54, %v920_v55  ;;  %v780_v60 = vld [vmem:[%s10414_s5 + $0x300] sm:$0xff]  ;;  %v6452_v1 = vcombine.low %v916_v54, %v920_v55  ;;  %v869_v43 = vld [vmem:[%s10414_s5 + $0x5c8] sm:$0xff]  ;;  %v6279_v44 = vcombine.high %v741_v41, %v745_v42  ;;  %v6278_v46 = vcombine.low %v741_v41, %v745_v42 }
 0x10c   :  { %v784_v61 = vld [vmem:[%s10414_s5 + $0x320] sm:$0xff]  ;;  %v6406_v47 = vcombine.low %v869_v43, %v873_v45 }
 0x10d   :  { %2279 = vmatpush2.bf16.msra.mxu1 %v6340_v48  ;;  %2320 = vmatpush2.bf16.msra.mxu0 %v6468_v49  ;;  %v908_v62 = vld [vmem:[%s10414_s5 + $0x700] sm:$0xff]  ;;  %v6317_v2 = vcombine.high %v780_v60, %v784_v61  ;;  %v6316_v8 = vcombine.low %v780_v60, %v784_v61  ;;  %v6407_v48 = vcombine.high %v869_v43, %v873_v45  ;;  %v8324_v49 = vsub.s32 2, %v8118_v27  ;;  %v701_v45 = vld [vmem:[%s10414_s5 + $0x88] sm:$0xff] }
 0x10e   :  { %2280 = vmatprep.subr.bf16.mxu1 %v6333_v50  ;;  %2321 = vmatprep.subr.bf16.mxu0 %v6461_v51  ;;  %v912_v63 = vld [vmem:[%s10414_s5 + $0x720] sm:$0xff]  ;;  %v8330_v51 = vsub.s32 3, %v8118_v27 }
 0x10f   :  { %v6445_v3 = vcombine.high %v908_v62, %v912_v63  ;;  %v772_v4 = vld [vmem:[%s10414_s5 + $0x2c0] sm:$0xff]  ;;  %v6444_v9 = vcombine.low %v908_v62, %v912_v63 }
 0x110   :  { %v776_v5 = vld [vmem:[%s10414_s5 + $0x2e0] sm:$0xff] }
 0x111   :  { %2281 = vmatpush2.bf16.msra.mxu1 %v6332_v56  ;;  %2322 = vmatpush2.bf16.msra.mxu0 %v6460_v57  ;;  %v900_v6 = vld [vmem:[%s10414_s5 + $0x6c0] sm:$0xff]  ;;  %v6309_v10 = vcombine.high %v772_v4, %v776_v5  ;;  %v6308_v16 = vcombine.low %v772_v4, %v776_v5 }
 0x112   :  { %2282 = vmatprep.subr.bf16.mxu1 %v6325_v58  ;;  %2323 = vmatprep.subr.bf16.mxu0 %v6453_v59  ;;  %v904_v7 = vld [vmem:[%s10414_s5 + $0x6e0] sm:$0xff] }
 0x113   :  { %v6437_v11 = vcombine.high %v900_v6, %v904_v7  ;;  %v764_v12 = vld [vmem:[%s10414_s5 + $0x280] sm:$0xff]  ;;  %v6436_v17 = vcombine.low %v900_v6, %v904_v7  ;;  %v733_v6 = vld [vmem:[%s10414_s5 + $0x188] sm:$0xff] }
 0x114   :  { %v768_v13 = vld [vmem:[%s10414_s5 + $0x2a0] sm:$0xff] }
 0x115   :  { %2283 = vmatpush2.bf16.msra.mxu1 %v6324_v0  ;;  %2324 = vmatpush2.bf16.msra.mxu0 %v6452_v1  ;;  %v892_v14 = vld [vmem:[%s10414_s5 + $0x680] sm:$0xff]  ;;  %v6301_v18 = vcombine.high %v764_v12, %v768_v13  ;;  %v6300_v20 = vcombine.low %v764_v12, %v768_v13 }
 0x116   :  { %2284 = vmatprep.subr.bf16.mxu1 %v6317_v2  ;;  %2325 = vmatprep.subr.bf16.mxu0 %v6445_v3  ;;  %v896_v15 = vld [vmem:[%s10414_s5 + $0x6a0] sm:$0xff] }
 0x117   :  { %v6429_v19 = vcombine.high %v892_v14, %v896_v15  ;;  %v6428_v21 = vcombine.low %v892_v14, %v896_v15  ;;  %v756_v22 = vld [vmem:[%s10414_s5 + $0x240] sm:$0xff] }
 0x118   :  { %v760_v23 = vld [vmem:[%s10414_s5 + $0x260] sm:$0xff] }
 0x119   :  { %2285 = vmatpush2.bf16.msra.mxu1 %v6316_v8  ;;  %2326 = vmatpush2.bf16.msra.mxu0 %v6444_v9  ;;  %v884_v24 = vld [vmem:[%s10414_s5 + $0x640] sm:$0xff]  ;;  %v6293_v25 = vcombine.high %v756_v22, %v760_v23  ;;  %v6292_v28 = vcombine.low %v756_v22, %v760_v23  ;;  %v737_v9 = vld [vmem:[%s10414_s5 + $0x1a8] sm:$0xff] }
 0x11a   :  { %2286 = vmatprep.subr.bf16.mxu1 %v6309_v10  ;;  %2327 = vmatprep.subr.bf16.mxu0 %v6437_v11  ;;  %v888_v26 = vld [vmem:[%s10414_s5 + $0x660] sm:$0xff]  ;;  %v861_v10 = vld [vmem:[%s10414_s5 + $0x588] sm:$0xff]  ;;  %v6270_v22 = vcombine.low %v733_v6, %v737_v9 }
 0x11b   :  { %v6420_v31 = vcombine.low %v884_v24, %v888_v26  ;;  %v6421_v32 = vcombine.high %v884_v24, %v888_v26  ;;  %v748_v33 = vld [vmem:[%s10414_s5 + $0x200] sm:$0xff]  ;;  %v865_v11 = vld [vmem:[%s10414_s5 + $0x5a8] sm:$0xff] }
 0x11c   :  { %v752_v34 = vld [vmem:[%s10414_s5 + $0x220] sm:$0xff]  ;;  %v6398_v23 = vcombine.low %v861_v10, %v865_v11  ;;  %v717_v26 = vld [vmem:[%s10414_s5 + $0x108] sm:$0xff] }
 0x11d   :  { %2287 = vmatpush2.bf16.msra.mxu1 %v6308_v16  ;;  %2328 = vmatpush2.bf16.msra.mxu0 %v6436_v17  ;;  %v876_v35 = vld [vmem:[%s10414_s5 + $0x600] sm:$0xff]  ;;  %v6285_v36 = vcombine.high %v748_v33, %v752_v34  ;;  %v6284_v38 = vcombine.low %v748_v33, %v752_v34  ;;  %v725_v16 = vld [vmem:[%s10414_s5 + $0x148] sm:$0xff]  ;;  %v6271_v17 = vcombine.high %v733_v6, %v737_v9 }
 0x11e   :  { %2288 = vmatprep.subr.bf16.mxu1 %v6301_v18  ;;  %2329 = vmatprep.subr.bf16.mxu0 %v6429_v19  ;;  %v880_v37 = vld [vmem:[%s10414_s5 + $0x620] sm:$0xff]  ;;  %v6399_v18 = vcombine.high %v861_v10, %v865_v11  ;;  %v729_v19 = vld [vmem:[%s10414_s5 + $0x168] sm:$0xff] }
 0x11f   :  { %v6412_v39 = vcombine.low %v876_v35, %v880_v37  ;;  %v6413_v40 = vcombine.high %v876_v35, %v880_v37  ;;  %v252_v50 = vld [vmem:[%s10413_s4] sm:$0xf]  ;;  %v6263_v24 = vcombine.high %v725_v16, %v729_v19  ;;  %v6262_v33 = vcombine.low %v725_v16, %v729_v19  ;;  %v709_v37 = vld [vmem:[%s10414_s5 + $0xc8] sm:$0xff] }
 0x120   :  { %v257_v52 = vrot.slane %v252_v50, %v8124_v29  ;;  %v265_v53 = vrot.slane %v252_v50, %v8324_v49  ;;  %v261_v54 = vrot.slane %v252_v50, %v8127_v30  ;;  %v269_v55 = vrot.slane %v252_v50, %v8330_v51  ;;  %v933_v9 = vld [vmem:[%s10414_s5 + $0x7c8] sm:$0xff] }
 0x121   :  { %2289 = vmatpush2.bf16.msra.mxu1 %v6300_v20  ;;  %2330 = vmatpush2.bf16.msra.mxu0 %v6428_v21  ;;  %v853_v20 = vld [vmem:[%s10414_s5 + $0x548] sm:$0xff] }
 0x122   :  { %2290 = vmatprep.subr.bf16.mxu1 %v6293_v25  ;;  %2331 = vmatprep.subr.bf16.mxu0 %v6421_v32  ;;  %v857_v21 = vld [vmem:[%s10414_s5 + $0x568] sm:$0xff] }
 0x123   :  { %v6391_v25 = vcombine.high %v853_v20, %v857_v21  ;;  %v849_v32 = vld [vmem:[%s10414_s5 + $0x528] sm:$0xff]  ;;  %v6390_v34 = vcombine.low %v853_v20, %v857_v21 }
 0x124   :  { %v937_v10 = vld [vmem:[%s10414_s5 + $0x7e8] sm:$0xff] }
 0x125   :  { %2291 = vmatpush2.bf16.msra.mxu1 %v6292_v28  ;;  %2332 = vmatpush2.bf16.msra.mxu0 %v6420_v31  ;;  %v721_v28 = vld [vmem:[%s10414_s5 + $0x128] sm:$0xff] }
 0x126   :  { %2292 = vmatprep.subr.bf16.mxu1 %v6285_v36  ;;  %2333 = vmatprep.subr.bf16.mxu0 %v6413_v40  ;;  %v845_v31 = vld [vmem:[%s10414_s5 + $0x508] sm:$0xff]  ;;  %v6255_v35 = vcombine.high %v717_v26, %v721_v28  ;;  %v6254_v41 = vcombine.low %v717_v26, %v721_v28 }
 0x127   :  { %v6383_v36 = vcombine.high %v845_v31, %v849_v32  ;;  %v841_v40 = vld [vmem:[%s10414_s5 + $0x4e8] sm:$0xff]  ;;  %v6382_v42 = vcombine.low %v845_v31, %v849_v32 }
 0x128   :  { %v797_v19 = vld [vmem:[%s10414_s5 + $0x388] sm:$0xff] }
 0x129   :  { %2293 = vmatpush2.bf16.msra.mxu1 %v6284_v38  ;;  %2334 = vmatpush2.bf16.msra.mxu0 %v6412_v39  ;;  %v713_v38 = vld [vmem:[%s10414_s5 + $0xe8] sm:$0xff] }
 0x12a   :  { %2344 = vmatprep.subr.bf16.mxu1 %v6279_v44  ;;  %2385 = vmatprep.subr.bf16.mxu0 %v6407_v48  ;;  %v837_v39 = vld [vmem:[%s10414_s5 + $0x4c8] sm:$0xff]  ;;  %v6247_v43 = vcombine.high %v709_v37, %v713_v38  ;;  %v6246_v50 = vcombine.low %v709_v37, %v713_v38 }
 0x12b   :  { %v6375_v44 = vcombine.high %v837_v39, %v841_v40  ;;  %v833_v48 = vld [vmem:[%s10414_s5 + $0x4a8] sm:$0xff] }
 0x12c   :  { %v801_v20 = vld [vmem:[%s10414_s5 + $0x3a8] sm:$0xff] }
 0x12d   :  { %v925_v21 = vld [vmem:[%s10414_s5 + $0x788] sm:$0xff] }
 0x12e   :  { %v789_v28 = vld [vmem:[%s10414_s5 + $0x348] sm:$0xff] }
 0x12f   :  { %v793_v31 = vld [vmem:[%s10414_s5 + $0x368] sm:$0xff] }
 0x130   :  { %v917_v32 = vld [vmem:[%s10414_s5 + $0x748] sm:$0xff] }
 0x131   :  { %v781_v38 = vld [vmem:[%s10414_s5 + $0x308] sm:$0xff] }
 0x1ac   :  { %v628_v56 = vpop.f32.mrf.mxu1  ;;  %v669_v57 = vpop.f32.mrf.mxu0 }
 0x1ad   :  { %v629_v58 = vadd.f32 %v628_v56, %v257_v52  ;;  %v670_v59 = vadd.f32 %v669_v57, %v265_v53  ;;  %v6374_v52 = vcombine.low %v837_v39, %v841_v40  ;;  %v697_v56 = vld [vmem:[%s10414_s5 + $0x68] sm:$0xff] }
 0x1ae   :  { %v630_v60 = vpop.f32.mrf.mxu1  ;;  %v671_v61 = vpop.f32.mrf.mxu0  ;;  %v821_v57 = vld [vmem:[%s10414_s5 + $0x448] sm:$0xff] }
 0x1af   :  { %v631_v62 = vadd.f32 %v630_v60, %v261_v54  ;;  %v672_v63 = vadd.f32 %v671_v61, %v269_v55  ;;  %v676_v0 = vmax.f32 %v629_v58, 0.0  ;;  %v678_v1 = vmax.f32 %v670_v59, 0.0  ;;  %v693_v55 = vld [vmem:[%s10414_s5 + $0x48] sm:$0xff] }
 0x1b0   :  { %v632_v2 = vpop.f32.mrf.mxu1  ;;  %v673_v3 = vpop.f32.mrf.mxu0  ;;  %v825_v58 = vld [vmem:[%s10414_s5 + $0x468] sm:$0xff]  ;;  %v6231_v61 = vcombine.high %v693_v55, %v697_v56 }
 0x1b1   :  { %v677_v4 = vmax.f32 %v631_v62, 0.0  ;;  %v679_v5 = vmax.f32 %v672_v63, 0.0  ;;  %v8352_v14 = vpack.c.bf16 %v676_v0, %v676_v0  ;;  %v8354_v15 = vpack.c.bf16 %v678_v1, %v678_v1  ;;  %v685_v63 = vld [vmem:[%s10414_s5 + $0x8] sm:$0xff] }
 0x1b2   :  { %v633_v7 = vpop.f32.mrf.mxu1  ;;  %v674_v8 = vpop.f32.mrf.mxu0  ;;  %v6359_v62 = vcombine.high %v821_v57, %v825_v58  ;;  %v689_v0 = vld [vmem:[%s10414_s5 + $0x28] sm:$0xff]  ;;  %v6230_v3 = vcombine.low %v693_v55, %v697_v56 }
 0x1b3   :  { %v8348_v12 = vpack.c.bf16 %v677_v4, %v677_v4  ;;  %v8350_v13 = vpack.c.bf16 %v679_v5, %v679_v5  ;;  %v813_v1 = vld [vmem:[%s10414_s5 + $0x408] sm:$0xff]  ;;  %v6358_v4 = vcombine.low %v821_v57, %v825_v58  ;;  %v6223_v5 = vcombine.high %v685_v63, %v689_v0 }
 0x1b4   :  { %v817_v2 = vld [vmem:[%s10414_s5 + $0x428] sm:$0xff]  ;;  %v6222_v11 = vcombine.low %v685_v63, %v689_v0 }
 0x1b5   :  { %2294 = vmatprep.mubr.bf16.mxu1 %v8348_v12  ;;  %2335 = vmatprep.mubr.bf16.mxu0 %v8350_v13  ;;  %v6351_v6 = vcombine.high %v813_v1, %v817_v2  ;;  %v805_v7 = vld [vmem:[%s10414_s5 + $0x3c8] sm:$0xff]  ;;  %v6350_v16 = vcombine.low %v813_v1, %v817_v2 }
 0x1b6   :  { %2295 = vmatmul.mubr.bf16.vlgmr.msra.gmra.mxu1 %v8352_v14  ;;  %2336 = vmatmul.mubr.bf16.vlgmr.msra.gmra.mxu0 %v8354_v15  ;;  %v809_v8 = vld [vmem:[%s10414_s5 + $0x3e8] sm:$0xff] }
 0x1b7   :  { %2345 = vmatpush1.bf16.msra.mxu1 %v6278_v46  ;;  %2386 = vmatpush1.bf16.msra.mxu0 %v6406_v47  ;;  %v705_v46 = vld [vmem:[%s10414_s5 + $0xa8] sm:$0xff] }
 0x1b8   :  { %2376 = vmatprep.mubr.bf16.mxu1 %v8348_v12  ;;  %2417 = vmatprep.mubr.bf16.mxu0 %v8350_v13  ;;  %v829_v47 = vld [vmem:[%s10414_s5 + $0x488] sm:$0xff]  ;;  %v6239_v53 = vcombine.high %v701_v45, %v705_v46  ;;  %v6238_v59 = vcombine.low %v701_v45, %v705_v46 }
 0x1b9   :  { %2346 = vmatprep.subr.bf16.mxu1 %v6271_v17  ;;  %2387 = vmatprep.subr.bf16.mxu0 %v6399_v18  ;;  %v6367_v54 = vcombine.high %v829_v47, %v833_v48  ;;  %v6366_v60 = vcombine.low %v829_v47, %v833_v48  ;;  %v6343_v17 = vcombine.high %v805_v7, %v809_v8  ;;  %v785_v39 = vld [vmem:[%s10414_s5 + $0x328] sm:$0xff] }
 0x1ba   :  { %v6471_v18 = vcombine.high %v933_v9, %v937_v10  ;;  %v909_v40 = vld [vmem:[%s10414_s5 + $0x708] sm:$0xff] }
 0x1bb   :  { %2347 = vmatpush1.bf16.msra.mxu1 %v6270_v22  ;;  %2388 = vmatpush1.bf16.msra.mxu0 %v6398_v23  ;;  %v929_v22 = vld [vmem:[%s10414_s5 + $0x7a8] sm:$0xff]  ;;  %v6342_v23 = vcombine.low %v805_v7, %v809_v8 }
 0x1bc   :  { %2348 = vmatprep.subr.bf16.mxu1 %v6263_v24  ;;  %2389 = vmatprep.subr.bf16.mxu0 %v6391_v25  ;;  %v6470_v24 = vcombine.low %v933_v9, %v937_v10  ;;  %v6335_v25 = vcombine.high %v797_v19, %v801_v20  ;;  %v6463_v26 = vcombine.high %v925_v21, %v929_v22  ;;  %v773_v46 = vld [vmem:[%s10414_s5 + $0x2c8] sm:$0xff] }
 0x1bd   :  { %v777_v47 = vld [vmem:[%s10414_s5 + $0x2e8] sm:$0xff] }
 0x1be   :  { %v901_v48 = vld [vmem:[%s10414_s5 + $0x6c8] sm:$0xff] }
 0x1bf   :  { %2349 = vmatpush1.bf16.msra.mxu1 %v6262_v33  ;;  %2390 = vmatpush1.bf16.msra.mxu0 %v6390_v34  ;;  %v921_v33 = vld [vmem:[%s10414_s5 + $0x768] sm:$0xff]  ;;  %v6334_v34 = vcombine.low %v797_v19, %v801_v20  ;;  %v742_v20 = vld [vmem:[%s10414_s5 + $0x1d0] sm:$0xff] }
 0x1c0   :  { %2350 = vmatprep.subr.bf16.mxu1 %v6255_v35  ;;  %2391 = vmatprep.subr.bf16.mxu0 %v6383_v36  ;;  %v6462_v35 = vcombine.low %v925_v21, %v929_v22  ;;  %v6327_v36 = vcombine.high %v789_v28, %v793_v31  ;;  %v6455_v37 = vcombine.high %v917_v32, %v921_v33  ;;  %v765_v56 = vld [vmem:[%s10414_s5 + $0x288] sm:$0xff]  ;;  %v746_v21 = vld [vmem:[%s10414_s5 + $0x1f0] sm:$0xff] }
 0x1c1   :  { %v769_v57 = vld [vmem:[%s10414_s5 + $0x2a8] sm:$0xff]  ;;  %v870_v22 = vld [vmem:[%s10414_s5 + $0x5d0] sm:$0xff] }
 0x1c2   :  { %v893_v58 = vld [vmem:[%s10414_s5 + $0x688] sm:$0xff] }
 0x1c3   :  { %2351 = vmatpush1.bf16.msra.mxu1 %v6254_v41  ;;  %2392 = vmatpush1.bf16.msra.mxu0 %v6382_v42  ;;  %v913_v41 = vld [vmem:[%s10414_s5 + $0x728] sm:$0xff]  ;;  %v6326_v42 = vcombine.low %v789_v28, %v793_v31  ;;  %v734_v31 = vld [vmem:[%s10414_s5 + $0x190] sm:$0xff] }
 0x1c4   :  { %2352 = vmatprep.subr.bf16.mxu1 %v6247_v43  ;;  %2393 = vmatprep.subr.bf16.mxu0 %v6375_v44  ;;  %v6454_v43 = vcombine.low %v917_v32, %v921_v33  ;;  %v6319_v44 = vcombine.high %v781_v38, %v785_v39  ;;  %v6447_v45 = vcombine.high %v909_v40, %v913_v41  ;;  %v757_v0 = vld [vmem:[%s10414_s5 + $0x248] sm:$0xff]  ;;  %v738_v32 = vld [vmem:[%s10414_s5 + $0x1b0] sm:$0xff] }
 0x1c5   :  { %v761_v1 = vld [vmem:[%s10414_s5 + $0x268] sm:$0xff]  ;;  %v862_v33 = vld [vmem:[%s10414_s5 + $0x590] sm:$0xff] }
 0x1c6   :  { %v885_v2 = vld [vmem:[%s10414_s5 + $0x648] sm:$0xff] }
 0x1c7   :  { %2353 = vmatpush1.bf16.msra.mxu1 %v6246_v50  ;;  %2394 = vmatpush1.bf16.msra.mxu0 %v6374_v52  ;;  %v905_v50 = vld [vmem:[%s10414_s5 + $0x6e8] sm:$0xff]  ;;  %v6318_v52 = vcombine.low %v781_v38, %v785_v39  ;;  %v726_v39 = vld [vmem:[%s10414_s5 + $0x150] sm:$0xff] }
 0x1c8   :  { %2354 = vmatprep.subr.bf16.mxu1 %v6239_v53  ;;  %2395 = vmatprep.subr.bf16.mxu0 %v6367_v54  ;;  %v6446_v53 = vcombine.low %v909_v40, %v913_v41  ;;  %v6311_v54 = vcombine.high %v773_v46, %v777_v47  ;;  %v6439_v55 = vcombine.high %v901_v48, %v905_v50  ;;  %v749_v8 = vld [vmem:[%s10414_s5 + $0x208] sm:$0xff]  ;;  %v730_v40 = vld [vmem:[%s10414_s5 + $0x170] sm:$0xff] }
 0x1c9   :  { %v753_v9 = vld [vmem:[%s10414_s5 + $0x228] sm:$0xff]  ;;  %v854_v41 = vld [vmem:[%s10414_s5 + $0x550] sm:$0xff] }
 0x1ca   :  { %v877_v10 = vld [vmem:[%s10414_s5 + $0x608] sm:$0xff] }
 0x1cb   :  { %2355 = vmatpush1.bf16.msra.mxu1 %v6238_v59  ;;  %2396 = vmatpush1.bf16.msra.mxu0 %v6366_v60  ;;  %v897_v59 = vld [vmem:[%s10414_s5 + $0x6a8] sm:$0xff]  ;;  %v6310_v60 = vcombine.low %v773_v46, %v777_v47  ;;  %v718_v47 = vld [vmem:[%s10414_s5 + $0x110] sm:$0xff] }
 0x1cc   :  { %2356 = vmatprep.subr.bf16.mxu1 %v6231_v61  ;;  %2397 = vmatprep.subr.bf16.mxu0 %v6359_v62  ;;  %v6438_v61 = vcombine.low %v901_v48, %v905_v50  ;;  %v6303_v62 = vcombine.high %v765_v56, %v769_v57  ;;  %v6431_v63 = vcombine.high %v893_v58, %v897_v59  ;;  %v722_v48 = vld [vmem:[%s10414_s5 + $0x130] sm:$0xff] }
 0x1cd   :  { %v846_v50 = vld [vmem:[%s10414_s5 + $0x510] sm:$0xff] }
 0x1cf   :  { %2357 = vmatpush1.bf16.msra.mxu1 %v6230_v3  ;;  %2398 = vmatpush1.bf16.msra.mxu0 %v6358_v4  ;;  %v889_v3 = vld [vmem:[%s10414_s5 + $0x668] sm:$0xff]  ;;  %v6302_v4 = vcombine.low %v765_v56, %v769_v57  ;;  %v710_v57 = vld [vmem:[%s10414_s5 + $0xd0] sm:$0xff] }
 0x1d0   :  { %2358 = vmatprep.subr.bf16.mxu1 %v6223_v5  ;;  %2399 = vmatprep.subr.bf16.mxu0 %v6351_v6  ;;  %v6430_v5 = vcombine.low %v893_v58, %v897_v59  ;;  %v6295_v6 = vcombine.high %v757_v0, %v761_v1  ;;  %v6423_v7 = vcombine.high %v885_v2, %v889_v3  ;;  %v714_v58 = vld [vmem:[%s10414_s5 + $0xf0] sm:$0xff] }
 0x1d1   :  { %v838_v59 = vld [vmem:[%s10414_s5 + $0x4d0] sm:$0xff] }
 0x1d3   :  { %2359 = vmatpush1.bf16.msra.mxu1 %v6222_v11  ;;  %2400 = vmatpush1.bf16.msra.mxu0 %v6350_v16  ;;  %v881_v11 = vld [vmem:[%s10414_s5 + $0x628] sm:$0xff]  ;;  %v6294_v16 = vcombine.low %v757_v0, %v761_v1  ;;  %v702_v1 = vld [vmem:[%s10414_s5 + $0x90] sm:$0xff] }
 0x1d4   :  { %2360 = vmatprep.subr.bf16.mxu1 %v6343_v17  ;;  %2401 = vmatprep.subr.bf16.mxu0 %v6471_v18  ;;  %v6422_v17 = vcombine.low %v885_v2, %v889_v3  ;;  %v6287_v18 = vcombine.high %v749_v8, %v753_v9  ;;  %v6415_v19 = vcombine.high %v877_v10, %v881_v11  ;;  %v706_v2 = vld [vmem:[%s10414_s5 + $0xb0] sm:$0xff] }
 0x1d5   :  { %v830_v3 = vld [vmem:[%s10414_s5 + $0x490] sm:$0xff] }
 0x1d7   :  { %2361 = vmatpush2.bf16.msra.mxu1 %v6342_v23  ;;  %2402 = vmatpush2.bf16.msra.mxu0 %v6470_v24  ;;  %v874_v23 = vld [vmem:[%s10414_s5 + $0x5f0] sm:$0xff]  ;;  %v6286_v24 = vcombine.low %v749_v8, %v753_v9 }
 0x1d8   :  { %2362 = vmatprep.subr.bf16.mxu1 %v6335_v25  ;;  %2403 = vmatprep.subr.bf16.mxu0 %v6463_v26  ;;  %v6414_v25 = vcombine.low %v877_v10, %v881_v11  ;;  %v6281_v26 = vcombine.high %v742_v20, %v746_v21  ;;  %v6409_v28 = vcombine.high %v870_v22, %v874_v23  ;;  %v694_v9 = vld [vmem:[%s10414_s5 + $0x50] sm:$0xff] }
 0x1d9   :  { %v698_v10 = vld [vmem:[%s10414_s5 + $0x70] sm:$0xff] }
 0x1da   :  { %v822_v11 = vld [vmem:[%s10414_s5 + $0x450] sm:$0xff] }
 0x1db   :  { %2363 = vmatpush2.bf16.msra.mxu1 %v6334_v34  ;;  %2404 = vmatpush2.bf16.msra.mxu0 %v6462_v35  ;;  %v866_v34 = vld [vmem:[%s10414_s5 + $0x5b0] sm:$0xff]  ;;  %v6280_v35 = vcombine.low %v742_v20, %v746_v21 }
 0x1dc   :  { %2364 = vmatprep.subr.bf16.mxu1 %v6327_v36  ;;  %2405 = vmatprep.subr.bf16.mxu0 %v6455_v37  ;;  %v6408_v36 = vcombine.low %v870_v22, %v874_v23  ;;  %v6273_v37 = vcombine.high %v734_v31, %v738_v32  ;;  %v6401_v38 = vcombine.high %v862_v33, %v866_v34  ;;  %v686_v21 = vld [vmem:[%s10414_s5 + $0x10] sm:$0xff] }
 0x1dd   :  { %v690_v22 = vld [vmem:[%s10414_s5 + $0x30] sm:$0xff] }
 0x1de   :  { %v814_v23 = vld [vmem:[%s10414_s5 + $0x410] sm:$0xff] }
 0x1df   :  { %2365 = vmatpush2.bf16.msra.mxu1 %v6326_v42  ;;  %2406 = vmatpush2.bf16.msra.mxu0 %v6454_v43  ;;  %v858_v42 = vld [vmem:[%s10414_s5 + $0x570] sm:$0xff]  ;;  %v6272_v43 = vcombine.low %v734_v31, %v738_v32 }
 0x1e0   :  { %2366 = vmatprep.subr.bf16.mxu1 %v6319_v44  ;;  %2407 = vmatprep.subr.bf16.mxu0 %v6447_v45  ;;  %v6400_v44 = vcombine.low %v862_v33, %v866_v34  ;;  %v6265_v45 = vcombine.high %v726_v39, %v730_v40  ;;  %v6393_v46 = vcombine.high %v854_v41, %v858_v42  ;;  %v806_v32 = vld [vmem:[%s10414_s5 + $0x3d0] sm:$0xff] }
 0x1e1   :  { %v810_v33 = vld [vmem:[%s10414_s5 + $0x3f0] sm:$0xff] }
 0x1e2   :  { %v934_v34 = vld [vmem:[%s10414_s5 + $0x7d0] sm:$0xff] }
 0x1e3   :  { %2367 = vmatpush2.bf16.msra.mxu1 %v6318_v52  ;;  %2408 = vmatpush2.bf16.msra.mxu0 %v6446_v53  ;;  %v850_v52 = vld [vmem:[%s10414_s5 + $0x530] sm:$0xff]  ;;  %v6264_v53 = vcombine.low %v726_v39, %v730_v40 }
 0x1e4   :  { %2368 = vmatprep.subr.bf16.mxu1 %v6311_v54  ;;  %2409 = vmatprep.subr.bf16.mxu0 %v6439_v55  ;;  %v6392_v54 = vcombine.low %v854_v41, %v858_v42  ;;  %v6257_v55 = vcombine.high %v718_v47, %v722_v48  ;;  %v6385_v56 = vcombine.high %v846_v50, %v850_v52  ;;  %v798_v40 = vld [vmem:[%s10414_s5 + $0x390] sm:$0xff] }
 0x1e5   :  { %v802_v41 = vld [vmem:[%s10414_s5 + $0x3b0] sm:$0xff] }
 0x1e6   :  { %v926_v42 = vld [vmem:[%s10414_s5 + $0x790] sm:$0xff] }
 0x1e7   :  { %2369 = vmatpush2.bf16.msra.mxu1 %v6310_v60  ;;  %2410 = vmatpush2.bf16.msra.mxu0 %v6438_v61  ;;  %v842_v60 = vld [vmem:[%s10414_s5 + $0x4f0] sm:$0xff]  ;;  %v6256_v61 = vcombine.low %v718_v47, %v722_v48 }
 0x1e8   :  { %2370 = vmatprep.subr.bf16.mxu1 %v6303_v62  ;;  %2411 = vmatprep.subr.bf16.mxu0 %v6431_v63  ;;  %v6384_v62 = vcombine.low %v846_v50, %v850_v52  ;;  %v6249_v63 = vcombine.high %v710_v57, %v714_v58  ;;  %v6377_v0 = vcombine.high %v838_v59, %v842_v60  ;;  %v790_v48 = vld [vmem:[%s10414_s5 + $0x350] sm:$0xff] }
 0x1e9   :  { %v794_v50 = vld [vmem:[%s10414_s5 + $0x370] sm:$0xff] }
 0x1ea   :  { %v918_v52 = vld [vmem:[%s10414_s5 + $0x750] sm:$0xff] }
 0x1eb   :  { %2371 = vmatpush2.bf16.msra.mxu1 %v6302_v4  ;;  %2412 = vmatpush2.bf16.msra.mxu0 %v6430_v5  ;;  %v834_v4 = vld [vmem:[%s10414_s5 + $0x4b0] sm:$0xff]  ;;  %v6248_v5 = vcombine.low %v710_v57, %v714_v58 }
 0x1ec   :  { %2372 = vmatprep.subr.bf16.mxu1 %v6295_v6  ;;  %2413 = vmatprep.subr.bf16.mxu0 %v6423_v7  ;;  %v6376_v6 = vcombine.low %v838_v59, %v842_v60  ;;  %v6241_v7 = vcombine.high %v702_v1, %v706_v2  ;;  %v6369_v8 = vcombine.high %v830_v3, %v834_v4  ;;  %v782_v58 = vld [vmem:[%s10414_s5 + $0x310] sm:$0xff] }
 0x1ed   :  { %v786_v59 = vld [vmem:[%s10414_s5 + $0x330] sm:$0xff] }
 0x1ee   :  { %v910_v60 = vld [vmem:[%s10414_s5 + $0x710] sm:$0xff] }
 0x1ef   :  { %2373 = vmatpush2.bf16.msra.mxu1 %v6294_v16  ;;  %2414 = vmatpush2.bf16.msra.mxu0 %v6422_v17  ;;  %v826_v16 = vld [vmem:[%s10414_s5 + $0x470] sm:$0xff]  ;;  %v6240_v17 = vcombine.low %v702_v1, %v706_v2 }
 0x1f0   :  { %2374 = vmatprep.subr.bf16.mxu1 %v6287_v18  ;;  %2415 = vmatprep.subr.bf16.mxu0 %v6415_v19  ;;  %v6368_v18 = vcombine.low %v830_v3, %v834_v4  ;;  %v6233_v19 = vcombine.high %v694_v9, %v698_v10  ;;  %v6361_v20 = vcombine.high %v822_v11, %v826_v16  ;;  %v774_v2 = vld [vmem:[%s10414_s5 + $0x2d0] sm:$0xff] }
 0x1f1   :  { %v778_v3 = vld [vmem:[%s10414_s5 + $0x2f0] sm:$0xff] }
 0x1f2   :  { %v902_v4 = vld [vmem:[%s10414_s5 + $0x6d0] sm:$0xff] }
 0x1f3   :  { %2375 = vmatpush2.bf16.msra.mxu1 %v6286_v24  ;;  %2416 = vmatpush2.bf16.msra.mxu0 %v6414_v25  ;;  %v818_v24 = vld [vmem:[%s10414_s5 + $0x430] sm:$0xff]  ;;  %v6232_v25 = vcombine.low %v694_v9, %v698_v10 }
 0x1f4   :  { %2426 = vmatprep.subr.bf16.mxu1 %v6281_v26  ;;  %2467 = vmatprep.subr.bf16.mxu0 %v6409_v28  ;;  %v6360_v26 = vcombine.low %v822_v11, %v826_v16  ;;  %v6225_v28 = vcombine.high %v686_v21, %v690_v22  ;;  %v6353_v31 = vcombine.high %v814_v23, %v818_v24  ;;  %v766_v10 = vld [vmem:[%s10414_s5 + $0x290] sm:$0xff] }
 0x1f5   :  { %v770_v11 = vld [vmem:[%s10414_s5 + $0x2b0] sm:$0xff] }
 0x1f6   :  { %2377 = vmatmul.mubr.bf16.vlgmr.msra.gmra.mxu1 %v8352_v14  ;;  %2418 = vmatmul.mubr.bf16.vlgmr.msra.gmra.mxu0 %v8354_v15  ;;  %v894_v16 = vld [vmem:[%s10414_s5 + $0x690] sm:$0xff] }
 0x1f7   :  { %2427 = vmatpush1.bf16.msra.mxu1 %v6280_v35  ;;  %2458 = vmatprep.mubr.bf16.mxu1 %v8348_v12  ;;  %v938_v35 = vld [vmem:[%s10414_s5 + $0x7f0] sm:$0xff] }
 0x1f8   :  { %2468 = vmatpush1.bf16.msra.mxu0 %v6408_v36  ;;  %2499 = vmatprep.mubr.bf16.mxu0 %v8350_v13  ;;  %v6224_v36 = vcombine.low %v686_v21, %v690_v22  ;;  %v6473_v39 = vcombine.high %v934_v34, %v938_v35  ;;  %v758_v22 = vld [vmem:[%s10414_s5 + $0x250] sm:$0xff] }
 0x1f9   :  { %2428 = vmatprep.subr.bf16.mxu1 %v6273_v37  ;;  %2469 = vmatprep.subr.bf16.mxu0 %v6401_v38  ;;  %v6352_v37 = vcombine.low %v814_v23, %v818_v24  ;;  %v6345_v38 = vcombine.high %v806_v32, %v810_v33  ;;  %v762_v23 = vld [vmem:[%s10414_s5 + $0x270] sm:$0xff] }
 0x1fa   :  { %v886_v24 = vld [vmem:[%s10414_s5 + $0x650] sm:$0xff] }
 0x1fb   :  { %2429 = vmatpush1.bf16.msra.mxu1 %v6272_v43  ;;  %v930_v43 = vld [vmem:[%s10414_s5 + $0x7b0] sm:$0xff] }
 0x1fc   :  { %2470 = vmatpush1.bf16.msra.mxu0 %v6400_v44  ;;  %2430 = vmatprep.subr.bf16.mxu1 %v6265_v45  ;;  %v6344_v44 = vcombine.low %v806_v32, %v810_v33  ;;  %v6472_v45 = vcombine.low %v934_v34, %v938_v35  ;;  %v6465_v47 = vcombine.high %v926_v42, %v930_v43  ;;  %v750_v33 = vld [vmem:[%s10414_s5 + $0x210] sm:$0xff] }
 0x1fd   :  { %2471 = vmatprep.subr.bf16.mxu0 %v6393_v46  ;;  %v6337_v46 = vcombine.high %v798_v40, %v802_v41  ;;  %v754_v34 = vld [vmem:[%s10414_s5 + $0x230] sm:$0xff] }
 0x1fe   :  { %v878_v35 = vld [vmem:[%s10414_s5 + $0x610] sm:$0xff] }
 0x1ff   :  { %2431 = vmatpush1.bf16.msra.mxu1 %v6264_v53  ;;  %v922_v53 = vld [vmem:[%s10414_s5 + $0x770] sm:$0xff] }
 0x200   :  { %2472 = vmatpush1.bf16.msra.mxu0 %v6392_v54  ;;  %2432 = vmatprep.subr.bf16.mxu1 %v6257_v55  ;;  %v6336_v54 = vcombine.low %v798_v40, %v802_v41  ;;  %v6464_v55 = vcombine.low %v926_v42, %v930_v43  ;;  %v6457_v57 = vcombine.high %v918_v52, %v922_v53  ;;  %v743_v41 = vld [vmem:[%s10414_s5 + $0x1d8] sm:$0xff] }
 0x201   :  { %2473 = vmatprep.subr.bf16.mxu0 %v6385_v56  ;;  %v6329_v56 = vcombine.high %v790_v48, %v794_v50  ;;  %v747_v42 = vld [vmem:[%s10414_s5 + $0x1f8] sm:$0xff] }
 0x202   :  { %v871_v43 = vld [vmem:[%s10414_s5 + $0x5d8] sm:$0xff] }
 0x203   :  { %2433 = vmatpush1.bf16.msra.mxu1 %v6256_v61  ;;  %v914_v61 = vld [vmem:[%s10414_s5 + $0x730] sm:$0xff] }
 0x204   :  { %2474 = vmatpush1.bf16.msra.mxu0 %v6384_v62  ;;  %2434 = vmatprep.subr.bf16.mxu1 %v6249_v63  ;;  %v6328_v62 = vcombine.low %v790_v48, %v794_v50  ;;  %v6456_v63 = vcombine.low %v918_v52, %v922_v53  ;;  %v6449_v1 = vcombine.high %v910_v60, %v914_v61  ;;  %v735_v50 = vld [vmem:[%s10414_s5 + $0x198] sm:$0xff] }
 0x205   :  { %2475 = vmatprep.subr.bf16.mxu0 %v6377_v0  ;;  %v6321_v0 = vcombine.high %v782_v58, %v786_v59  ;;  %v739_v52 = vld [vmem:[%s10414_s5 + $0x1b8] sm:$0xff]  ;;  %v6282_v53 = vcombine.low %v743_v41, %v747_v42 }
 0x207   :  { %2435 = vmatpush1.bf16.msra.mxu1 %v6248_v5  ;;  %v906_v5 = vld [vmem:[%s10414_s5 + $0x6f0] sm:$0xff] }
 0x208   :  { %2476 = vmatpush1.bf16.msra.mxu0 %v6376_v6  ;;  %2436 = vmatprep.subr.bf16.mxu1 %v6241_v7  ;;  %v6320_v6 = vcombine.low %v782_v58, %v786_v59  ;;  %v6448_v7 = vcombine.low %v910_v60, %v914_v61  ;;  %v6441_v9 = vcombine.high %v902_v4, %v906_v5  ;;  %v727_v58 = vld [vmem:[%s10414_s5 + $0x158] sm:$0xff] }
 0x209   :  { %2477 = vmatprep.subr.bf16.mxu0 %v6369_v8  ;;  %v6313_v8 = vcombine.high %v774_v2, %v778_v3  ;;  %v731_v59 = vld [vmem:[%s10414_s5 + $0x178] sm:$0xff] }
 0x20a   :  { %v855_v61 = vld [vmem:[%s10414_s5 + $0x558] sm:$0xff] }
 0x20b   :  { %2437 = vmatpush1.bf16.msra.mxu1 %v6240_v17  ;;  %v898_v17 = vld [vmem:[%s10414_s5 + $0x6b0] sm:$0xff] }
 0x20c   :  { %2478 = vmatpush1.bf16.msra.mxu0 %v6368_v18  ;;  %2438 = vmatprep.subr.bf16.mxu1 %v6233_v19  ;;  %v6312_v18 = vcombine.low %v774_v2, %v778_v3  ;;  %v6440_v19 = vcombine.low %v902_v4, %v906_v5  ;;  %v6433_v21 = vcombine.high %v894_v16, %v898_v17  ;;  %v719_v3 = vld [vmem:[%s10414_s5 + $0x118] sm:$0xff] }
 0x20d   :  { %2479 = vmatprep.subr.bf16.mxu0 %v6361_v20  ;;  %v6305_v20 = vcombine.high %v766_v10, %v770_v11  ;;  %v723_v4 = vld [vmem:[%s10414_s5 + $0x138] sm:$0xff] }
 0x20e   :  { %v851_v5 = vld [vmem:[%s10414_s5 + $0x538] sm:$0xff] }
 0x20f   :  { %2439 = vmatpush1.bf16.msra.mxu1 %v6232_v25  ;;  %v890_v25 = vld [vmem:[%s10414_s5 + $0x670] sm:$0xff] }
 0x210   :  { %2480 = vmatpush1.bf16.msra.mxu0 %v6360_v26  ;;  %2440 = vmatprep.subr.bf16.mxu1 %v6225_v28  ;;  %v6304_v26 = vcombine.low %v766_v10, %v770_v11  ;;  %v6432_v28 = vcombine.low %v894_v16, %v898_v17  ;;  %v6425_v32 = vcombine.high %v886_v24, %v890_v25  ;;  %v715_v10 = vld [vmem:[%s10414_s5 + $0xf8] sm:$0xff] }
 0x211   :  { %2481 = vmatprep.subr.bf16.mxu0 %v6353_v31  ;;  %v6297_v31 = vcombine.high %v758_v22, %v762_v23  ;;  %v839_v11 = vld [vmem:[%s10414_s5 + $0x4d8] sm:$0xff]  ;;  %v6258_v17 = vcombine.low %v719_v3, %v723_v4 }
 0x212   :  { %v843_v16 = vld [vmem:[%s10414_s5 + $0x4f8] sm:$0xff] }
 0x213   :  { %2441 = vmatpush1.bf16.msra.mxu1 %v6224_v36  ;;  %v882_v36 = vld [vmem:[%s10414_s5 + $0x630] sm:$0xff] }
 0x214   :  { %2482 = vmatpush1.bf16.msra.mxu0 %v6352_v37  ;;  %2442 = vmatprep.subr.bf16.mxu1 %v6345_v38  ;;  %v6296_v37 = vcombine.low %v758_v22, %v762_v23  ;;  %v6424_v38 = vcombine.low %v886_v24, %v890_v25  ;;  %v6417_v40 = vcombine.high %v878_v35, %v882_v36  ;;  %v707_v22 = vld [vmem:[%s10414_s5 + $0xb8] sm:$0xff] }
 0x215   :  { %2483 = vmatprep.subr.bf16.mxu0 %v6473_v39  ;;  %v6289_v39 = vcombine.high %v750_v33, %v754_v34  ;;  %v831_v23 = vld [vmem:[%s10414_s5 + $0x498] sm:$0xff] }
 0x216   :  { %v835_v24 = vld [vmem:[%s10414_s5 + $0x4b8] sm:$0xff] }
 0x217   :  { %2443 = vmatpush2.bf16.msra.mxu1 %v6344_v44  ;;  %v875_v44 = vld [vmem:[%s10414_s5 + $0x5f8] sm:$0xff] }
 0x218   :  { %2484 = vmatpush2.bf16.msra.mxu0 %v6472_v45  ;;  %2444 = vmatprep.subr.bf16.mxu1 %v6337_v46  ;;  %v6288_v45 = vcombine.low %v750_v33, %v754_v34  ;;  %v6416_v46 = vcombine.low %v878_v35, %v882_v36  ;;  %v6411_v48 = vcombine.high %v871_v43, %v875_v44  ;;  %v699_v33 = vld [vmem:[%s10414_s5 + $0x78] sm:$0xff] }
 0x219   :  { %2485 = vmatprep.subr.bf16.mxu0 %v6465_v47  ;;  %v6283_v47 = vcombine.high %v743_v41, %v747_v42  ;;  %v823_v34 = vld [vmem:[%s10414_s5 + $0x458] sm:$0xff] }
 0x21a   :  { %v827_v35 = vld [vmem:[%s10414_s5 + $0x478] sm:$0xff] }
 0x21b   :  { %2445 = vmatpush2.bf16.msra.mxu1 %v6336_v54  ;;  %v863_v54 = vld [vmem:[%s10414_s5 + $0x598] sm:$0xff] }
 0x21c   :  { %2486 = vmatpush2.bf16.msra.mxu0 %v6464_v55  ;;  %2446 = vmatprep.subr.bf16.mxu1 %v6329_v56  ;;  %v867_v55 = vld [vmem:[%s10414_s5 + $0x5b8] sm:$0xff]  ;;  %v6410_v56 = vcombine.low %v871_v43, %v875_v44 }
 0x21d   :  { %2487 = vmatprep.subr.bf16.mxu0 %v6457_v57  ;;  %v6275_v57 = vcombine.high %v735_v50, %v739_v52  ;;  %v6403_v60 = vcombine.high %v863_v54, %v867_v55  ;;  %v691_v41 = vld [vmem:[%s10414_s5 + $0x38] sm:$0xff] }
 0x21e   :  { %v815_v42 = vld [vmem:[%s10414_s5 + $0x418] sm:$0xff] }
 0x21f   :  { %2447 = vmatpush2.bf16.msra.mxu1 %v6328_v62  ;;  %v859_v62 = vld [vmem:[%s10414_s5 + $0x578] sm:$0xff] }
 0x220   :  { %2488 = vmatpush2.bf16.msra.mxu0 %v6456_v63  ;;  %2448 = vmatprep.subr.bf16.mxu1 %v6321_v0  ;;  %v6274_v63 = vcombine.low %v735_v50, %v739_v52  ;;  %v6402_v0 = vcombine.low %v863_v54, %v867_v55  ;;  %v6395_v2 = vcombine.high %v855_v61, %v859_v62  ;;  %v819_v43 = vld [vmem:[%s10414_s5 + $0x438] sm:$0xff] }
 0x221   :  { %2489 = vmatprep.subr.bf16.mxu0 %v6449_v1  ;;  %v6267_v1 = vcombine.high %v727_v58, %v731_v59  ;;  %v811_v50 = vld [vmem:[%s10414_s5 + $0x3f8] sm:$0xff]  ;;  %v6354_v55 = vcombine.low %v815_v42, %v819_v43 }
 0x222   :  { %v935_v52 = vld [vmem:[%s10414_s5 + $0x7d8] sm:$0xff] }
 0x223   :  { %2449 = vmatpush2.bf16.msra.mxu1 %v6320_v6  ;;  %v6394_v6 = vcombine.low %v855_v61, %v859_v62  ;;  %v931_v61 = vld [vmem:[%s10414_s5 + $0x7b8] sm:$0xff] }
 0x224   :  { %2490 = vmatpush2.bf16.msra.mxu0 %v6448_v7  ;;  %2450 = vmatprep.subr.bf16.mxu1 %v6313_v8  ;;  %v6259_v7 = vcombine.high %v719_v3, %v723_v4  ;;  %v795_v3 = vld [vmem:[%s10414_s5 + $0x378] sm:$0xff] }
 0x225   :  { %2491 = vmatprep.subr.bf16.mxu0 %v6441_v9  ;;  %v711_v9 = vld [vmem:[%s10414_s5 + $0xd8] sm:$0xff] }
 0x226   :  { %v6250_v25 = vcombine.low %v711_v9, %v715_v10  ;;  %v919_v4 = vld [vmem:[%s10414_s5 + $0x758] sm:$0xff] }
 0x227   :  { %2451 = vmatpush2.bf16.msra.mxu1 %v6312_v18 }
 0x228   :  { %2492 = vmatpush2.bf16.msra.mxu0 %v6440_v19  ;;  %2452 = vmatprep.subr.bf16.mxu1 %v6305_v20  ;;  %v6251_v19 = vcombine.high %v711_v9, %v715_v10  ;;  %v6379_v20 = vcombine.high %v839_v11, %v843_v16  ;;  %v787_v9 = vld [vmem:[%s10414_s5 + $0x338] sm:$0xff] }
 0x229   :  { %2493 = vmatprep.subr.bf16.mxu0 %v6433_v21  ;;  %v703_v21 = vld [vmem:[%s10414_s5 + $0x98] sm:$0xff] }
 0x22a   :  { %v6242_v36 = vcombine.low %v703_v21, %v707_v22  ;;  %v911_v10 = vld [vmem:[%s10414_s5 + $0x718] sm:$0xff] }
 0x22b   :  { %2453 = vmatpush2.bf16.msra.mxu1 %v6304_v26  ;;  %v6378_v26 = vcombine.low %v839_v11, %v843_v16  ;;  %v915_v11 = vld [vmem:[%s10414_s5 + $0x738] sm:$0xff] }
 0x22c   :  { %2494 = vmatpush2.bf16.msra.mxu0 %v6432_v28  ;;  %2454 = vmatprep.subr.bf16.mxu1 %v6297_v31  ;;  %v6243_v28 = vcombine.high %v703_v21, %v707_v22  ;;  %v6371_v31 = vcombine.high %v831_v23, %v835_v24  ;;  %v779_v21 = vld [vmem:[%s10414_s5 + $0x2f8] sm:$0xff] }
 0x22d   :  { %2495 = vmatprep.subr.bf16.mxu0 %v6425_v32  ;;  %v695_v32 = vld [vmem:[%s10414_s5 + $0x58] sm:$0xff] }
 0x22e   :  { %v6234_v44 = vcombine.low %v695_v32, %v699_v33  ;;  %v903_v22 = vld [vmem:[%s10414_s5 + $0x6d8] sm:$0xff] }
 0x22f   :  { %2455 = vmatpush2.bf16.msra.mxu1 %v6296_v37  ;;  %v6370_v37 = vcombine.low %v831_v23, %v835_v24  ;;  %v907_v23 = vld [vmem:[%s10414_s5 + $0x6f8] sm:$0xff] }
 0x230   :  { %2496 = vmatpush2.bf16.msra.mxu0 %v6424_v38  ;;  %2456 = vmatprep.subr.bf16.mxu1 %v6289_v39  ;;  %v6235_v38 = vcombine.high %v695_v32, %v699_v33  ;;  %v6363_v39 = vcombine.high %v823_v34, %v827_v35  ;;  %v771_v32 = vld [vmem:[%s10414_s5 + $0x2b8] sm:$0xff] }
 0x231   :  { %2497 = vmatprep.subr.bf16.mxu0 %v6417_v40  ;;  %v687_v40 = vld [vmem:[%s10414_s5 + $0x18] sm:$0xff] }
 0x232   :  { %v6226_v54 = vcombine.low %v687_v40, %v691_v41  ;;  %v895_v33 = vld [vmem:[%s10414_s5 + $0x698] sm:$0xff] }
 0x233   :  { %2457 = vmatpush2.bf16.msra.mxu1 %v6288_v45  ;;  %v6362_v45 = vcombine.low %v823_v34, %v827_v35  ;;  %v899_v34 = vld [vmem:[%s10414_s5 + $0x6b8] sm:$0xff] }
 0x234   :  { %2498 = vmatpush2.bf16.msra.mxu0 %v6416_v46  ;;  %2508 = vmatprep.subr.bf16.mxu1 %v6283_v47  ;;  %v6227_v46 = vcombine.high %v687_v40, %v691_v41  ;;  %v6355_v47 = vcombine.high %v815_v42, %v819_v43  ;;  %v763_v40 = vld [vmem:[%s10414_s5 + $0x278] sm:$0xff] }
 0x235   :  { %2549 = vmatprep.subr.bf16.mxu0 %v6411_v48  ;;  %v807_v48 = vld [vmem:[%s10414_s5 + $0x3d8] sm:$0xff] }
 0x236   :  { %2459 = vmatmul.mubr.bf16.vlgmr.msra.gmra.mxu1 %v8352_v14  ;;  %v6346_v62 = vcombine.low %v807_v48, %v811_v50  ;;  %v887_v41 = vld [vmem:[%s10414_s5 + $0x658] sm:$0xff] }
 0x237   :  { %2500 = vmatmul.mubr.bf16.vlgmr.msra.gmra.mxu0 %v8354_v15  ;;  %2509 = vmatpush1.bf16.msra.mxu1 %v6282_v53  ;;  %v939_v53 = vld [vmem:[%s10414_s5 + $0x7f8] sm:$0xff] }
 0x238   :  { %2540 = vmatprep.mubr.bf16.mxu1 %v8348_v12  ;;  %2550 = vmatpush1.bf16.msra.mxu0 %v6410_v56  ;;  %v847_v12 = vld [vmem:[%s10414_s5 + $0x518] sm:$0xff]  ;;  %v6347_v56 = vcombine.high %v807_v48, %v811_v50 }
 0x239   :  { %2581 = vmatprep.mubr.bf16.mxu0 %v8350_v13  ;;  %2510 = vmatprep.subr.bf16.mxu1 %v6275_v57  ;;  %v6266_v13 = vcombine.low %v727_v58, %v731_v59  ;;  %v6387_v8 = vcombine.high %v847_v12, %v851_v5  ;;  %v6386_v18 = vcombine.low %v847_v12, %v851_v5  ;;  %v799_v58 = vld [vmem:[%s10414_s5 + $0x398] sm:$0xff] }
 0x23a   :  { %2551 = vmatprep.subr.bf16.mxu0 %v6403_v60  ;;  %v6475_v57 = vcombine.high %v935_v52, %v939_v53  ;;  %v803_v59 = vld [vmem:[%s10414_s5 + $0x3b8] sm:$0xff] }
 0x23b   :  { %2511 = vmatpush1.bf16.msra.mxu1 %v6274_v63  ;;  %v927_v60 = vld [vmem:[%s10414_s5 + $0x798] sm:$0xff]  ;;  %v6474_v63 = vcombine.low %v935_v52, %v939_v53  ;;  %v6338_v5 = vcombine.low %v799_v58, %v803_v59 }
 0x23c   :  { %2552 = vmatpush1.bf16.msra.mxu0 %v6402_v0  ;;  %2512 = vmatprep.subr.bf16.mxu1 %v6267_v1  ;;  %v6339_v0 = vcombine.high %v799_v58, %v803_v59  ;;  %v6467_v1 = vcombine.high %v927_v60, %v931_v61  ;;  %v923_v12 = vld [vmem:[%s10414_s5 + $0x778] sm:$0xff]  ;;  %v7136_v59 = vld [vmem:[%s10416_s7 + $0x18c] ss:$28 sps:$4 sm:$0xff]  }
 0x23d   :  { %2553 = vmatprep.subr.bf16.mxu0 %v6395_v2  ;;  %v791_v2 = vld [vmem:[%s10414_s5 + $0x358] sm:$0xff] }
 0x23e   :  { %v6330_v16 = vcombine.low %v791_v2, %v795_v3  ;;  %v891_v42 = vld [vmem:[%s10414_s5 + $0x678] sm:$0xff] }
 0x23f   :  { %2513 = vmatpush1.bf16.msra.mxu1 %v6266_v13  ;;  %v6466_v13 = vcombine.low %v927_v60, %v931_v61  ;;  %v755_v48 = vld [vmem:[%s10414_s5 + $0x238] sm:$0xff]  ;;  %v7148_v60 = vld [vmem:[%s10416_s7 + $0x50c] ss:$28 sps:$4 sm:$0xff]  }
 0x240   :  { %2554 = vmatpush1.bf16.msra.mxu0 %v6394_v6  ;;  %2514 = vmatprep.subr.bf16.mxu1 %v6259_v7  ;;  %v6331_v6 = vcombine.high %v791_v2, %v795_v3  ;;  %v6459_v7 = vcombine.high %v919_v4, %v923_v12  ;;  %v879_v50 = vld [vmem:[%s10414_s5 + $0x618] sm:$0xff]  ;;  %v7134_v61 = vld [vmem:[%s10416_s7 + $0x188] ss:$28 sps:$4 sm:$0xff]   ;;  %v7154_v2 = vld [vmem:[%s10416_s7 + $0x4d4] ss:$28 sps:$4 sm:$0xff]  }
 0x241   :  { %2555 = vmatprep.subr.bf16.mxu0 %v6387_v8  ;;  %v783_v8 = vld [vmem:[%s10414_s5 + $0x318] sm:$0xff] }
 0x242   :  { %v6322_v24 = vcombine.low %v783_v8, %v787_v9  ;;  %v883_v52 = vld [vmem:[%s10414_s5 + $0x638] sm:$0xff] }
 0x243   :  { %2515 = vmatpush1.bf16.msra.mxu1 %v6258_v17  ;;  %v6458_v17 = vcombine.low %v919_v4, %v923_v12  ;;  %v6418_v58 = vcombine.low %v879_v50, %v883_v52  ;;  %v7137_v12 = vld [vmem:[%s10416_s7 + $0x150] ss:$28 sps:$4 sm:$0xff]  }
 0x244   :  { %2556 = vmatpush1.bf16.msra.mxu0 %v6386_v18  ;;  %2516 = vmatprep.subr.bf16.mxu1 %v6251_v19  ;;  %v6323_v18 = vcombine.high %v783_v8, %v787_v9  ;;  %v6451_v19 = vcombine.high %v911_v10, %v915_v11 }
 0x245   :  { %2557 = vmatprep.subr.bf16.mxu0 %v6379_v20  ;;  %v775_v20 = vld [vmem:[%s10414_s5 + $0x2d8] sm:$0xff] }
 0x246   :  { %v6314_v35 = vcombine.low %v775_v20, %v779_v21 }
 0x247   :  { %2517 = vmatpush1.bf16.msra.mxu1 %v6250_v25  ;;  %v6450_v25 = vcombine.low %v911_v10, %v915_v11  ;;  %v7140_v11 = vld [vmem:[%s10416_s7 + $0x118] ss:$28 sps:$4 sm:$0xff]  }
 0x248   :  { %2558 = vmatpush1.bf16.msra.mxu0 %v6378_v26  ;;  %2518 = vmatprep.subr.bf16.mxu1 %v6243_v28  ;;  %v6315_v26 = vcombine.high %v775_v20, %v779_v21  ;;  %v6443_v28 = vcombine.high %v903_v22, %v907_v23  ;;  %v7166_v21 = vld [vmem:[%s10416_s7 + $0x464] ss:$28 sps:$4 sm:$0xff]  }
 0x249   :  { %2559 = vmatprep.subr.bf16.mxu0 %v6371_v31  ;;  %v767_v31 = vld [vmem:[%s10414_s5 + $0x298] sm:$0xff] }
 0x24a   :  { %v6306_v43 = vcombine.low %v767_v31, %v771_v32 }
 0x24b   :  { %2519 = vmatpush1.bf16.msra.mxu1 %v6242_v36  ;;  %v6442_v36 = vcombine.low %v903_v22, %v907_v23  ;;  %v7143_v23 = vld [vmem:[%s10416_s7 + $0xe0] ss:$28 sps:$4 sm:$0xff]  }
 0x24c   :  { %2560 = vmatpush1.bf16.msra.mxu0 %v6370_v37  ;;  %2520 = vmatprep.subr.bf16.mxu1 %v6235_v38  ;;  %v6307_v37 = vcombine.high %v767_v31, %v771_v32  ;;  %v6435_v38 = vcombine.high %v895_v33, %v899_v34  ;;  %v7157_v31 = vld [vmem:[%s10416_s7 + $0x74] ss:$28 sps:$4 sm:$0xff]   ;;  %v7170_v32 = vld [vmem:[%s10416_s7 + $0x428] ss:$28 sps:$4 sm:$0xff]  }
 0x24d   :  { %2561 = vmatprep.subr.bf16.mxu0 %v6363_v39  ;;  %v759_v39 = vld [vmem:[%s10414_s5 + $0x258] sm:$0xff] }
 0x24e   :  { %v6298_v53 = vcombine.low %v759_v39, %v763_v40 }
 0x24f   :  { %2521 = vmatpush1.bf16.msra.mxu1 %v6234_v44  ;;  %v6434_v44 = vcombine.low %v895_v33, %v899_v34  ;;  %v7178_v33 = vld [vmem:[%s10416_s7 + $0x3f4] ss:$28 sps:$4 sm:$0xff]  }
 0x250   :  { %2562 = vmatpush1.bf16.msra.mxu0 %v6362_v45  ;;  %2522 = vmatprep.subr.bf16.mxu1 %v6227_v46  ;;  %v6299_v45 = vcombine.high %v759_v39, %v763_v40  ;;  %v6427_v46 = vcombine.high %v887_v41, %v891_v42  ;;  %v7155_v34 = vld [vmem:[%s10416_s7 + $0x70] ss:$28 sps:$4 sm:$0xff]   ;;  %v7169_v39 = vld [vmem:[%s10416_s7 + $0x4] ss:$28 sps:$4 sm:$0xff]   ;;  %v7182_v40 = vld [vmem:[%s10416_s7 + $0x3b8] ss:$28 sps:$4 sm:$0xff]  }
 0x251   :  { %2563 = vmatprep.subr.bf16.mxu0 %v6355_v47  ;;  %v751_v47 = vld [vmem:[%s10414_s5 + $0x218] sm:$0xff] }
 0x253   :  { %2523 = vmatpush1.bf16.msra.mxu1 %v6226_v54  ;;  %v6426_v54 = vcombine.low %v887_v41, %v891_v42  ;;  %v7190_v41 = vld [vmem:[%s10416_s7 + $0x384] ss:$28 sps:$4 sm:$0xff]  }
 0x254   :  { %2564 = vmatpush1.bf16.msra.mxu0 %v6354_v55  ;;  %2524 = vmatprep.subr.bf16.mxu1 %v6347_v56  ;;  %v6291_v55 = vcombine.high %v751_v47, %v755_v48  ;;  %v6419_v56 = vcombine.high %v879_v50, %v883_v52  ;;  %v7167_v42 = vld [vmem:[%s10416_s7] ss:$28 sps:$4 sm:$0xff]   ;;  %v7202_v50 = vld [vmem:[%s10416_s7 + $0x694] ss:$28 sps:$4 sm:$0xff]  }
 0x255   :  { %2565 = vmatprep.subr.bf16.mxu0 %v6475_v57  ;;  %v6290_v57 = vcombine.low %v751_v47, %v755_v48  ;;  %v7181_v47 = vld [vmem:[%s10416_s7 + $0x314] ss:$28 sps:$4 sm:$0xff]   ;;  %v7194_v48 = vld [vmem:[%s10416_s7 + $0x6c8] ss:$28 sps:$4 sm:$0xff]  }
 0x256   :  { %v7179_v52 = vld [vmem:[%s10416_s7 + $0x310] ss:$28 sps:$4 sm:$0xff]  }
 0x257   :  { %2525 = vmatpush2.bf16.msra.mxu1 %v6346_v62  ;;  %v8934_v62 = vld [vmem:[%s10415_s6] sm:$0xff] }
 0x258   :  { %2566 = vmatpush2.bf16.msra.mxu0 %v6474_v63  ;;  %2526 = vmatprep.subr.bf16.mxu1 %v6339_v0  ;;  %v7139_v63 = vld [vmem:[%s10416_s7 + $0x154] ss:$28 sps:$4 sm:$0xff]   ;;  %v7146_v0 = vld [vmem:[%s10416_s7 + $0x508] ss:$28 sps:$4 sm:$0xff]  }
 0x259   :  { %2567 = vmatprep.subr.bf16.mxu0 %v6467_v1  ;;  %v949_v1 = vrot.slane %v8934_v62, %v8127_v30 }
 0x25b   :  { %2527 = vmatpush2.bf16.msra.mxu1 %v6338_v5 }
 0x25c   :  { %2568 = vmatpush2.bf16.msra.mxu0 %v6466_v13  ;;  %2528 = vmatprep.subr.bf16.mxu1 %v6331_v6  ;;  %v7142_v6 = vld [vmem:[%s10416_s7 + $0x11c] ss:$28 sps:$4 sm:$0xff]  }
 0x25d   :  { %2569 = vmatprep.subr.bf16.mxu0 %v6459_v7 }
 0x25f   :  { %2529 = vmatpush2.bf16.msra.mxu1 %v6330_v16 }
 0x260   :  { %2570 = vmatpush2.bf16.msra.mxu0 %v6458_v17  ;;  %2530 = vmatprep.subr.bf16.mxu1 %v6323_v18  ;;  %v7145_v18 = vld [vmem:[%s10416_s7 + $0xe4] ss:$28 sps:$4 sm:$0xff]  }
 0x261   :  { %2571 = vmatprep.subr.bf16.mxu0 %v6451_v19  ;;  %v7158_v19 = vld [vmem:[%s10416_s7 + $0x498] ss:$28 sps:$4 sm:$0xff]  }
 0x263   :  { %2531 = vmatpush2.bf16.msra.mxu1 %v6322_v24  ;;  %v7151_v24 = vld [vmem:[%s10416_s7 + $0xac] ss:$28 sps:$4 sm:$0xff]  }
 0x264   :  { %2572 = vmatpush2.bf16.msra.mxu0 %v6450_v25  ;;  %2532 = vmatprep.subr.bf16.mxu1 %v6315_v26  ;;  %v7164_v25 = vld [vmem:[%s10416_s7 + $0x460] ss:$28 sps:$4 sm:$0xff]   ;;  %v7172_v26 = vld [vmem:[%s10416_s7 + $0x42c] ss:$28 sps:$4 sm:$0xff]  }
 0x265   :  { %2573 = vmatprep.subr.bf16.mxu0 %v6443_v28  ;;  %v7149_v28 = vld [vmem:[%s10416_s7 + $0xa8] ss:$28 sps:$4 sm:$0xff]  }
 0x267   :  { %2533 = vmatpush2.bf16.msra.mxu1 %v6314_v35  ;;  %v7163_v35 = vld [vmem:[%s10416_s7 + $0x3c] ss:$28 sps:$4 sm:$0xff]  }
 0x268   :  { %2574 = vmatpush2.bf16.msra.mxu0 %v6442_v36  ;;  %2534 = vmatprep.subr.bf16.mxu1 %v6307_v37  ;;  %v7176_v36 = vld [vmem:[%s10416_s7 + $0x3f0] ss:$28 sps:$4 sm:$0xff]   ;;  %v7184_v37 = vld [vmem:[%s10416_s7 + $0x3bc] ss:$28 sps:$4 sm:$0xff]  }
 0x269   :  { %2575 = vmatprep.subr.bf16.mxu0 %v6435_v38  ;;  %v7161_v38 = vld [vmem:[%s10416_s7 + $0x38] ss:$28 sps:$4 sm:$0xff]  }
 0x26b   :  { %2535 = vmatpush2.bf16.msra.mxu1 %v6306_v43  ;;  %v7175_v43 = vld [vmem:[%s10416_s7 + $0x34c] ss:$28 sps:$4 sm:$0xff]  }
 0x26c   :  { %2576 = vmatpush2.bf16.msra.mxu0 %v6434_v44  ;;  %2536 = vmatprep.subr.bf16.mxu1 %v6299_v45  ;;  %v7188_v44 = vld [vmem:[%s10416_s7 + $0x380] ss:$28 sps:$4 sm:$0xff]   ;;  %v7196_v45 = vld [vmem:[%s10416_s7 + $0x6cc] ss:$28 sps:$4 sm:$0xff]  }
 0x26d   :  { %2577 = vmatprep.subr.bf16.mxu0 %v6427_v46  ;;  %v7173_v46 = vld [vmem:[%s10416_s7 + $0x348] ss:$28 sps:$4 sm:$0xff]  }
 0x26f   :  { %2537 = vmatpush2.bf16.msra.mxu1 %v6298_v53  ;;  %v7187_v53 = vld [vmem:[%s10416_s7 + $0x2dc] ss:$28 sps:$4 sm:$0xff]  }
 0x270   :  { %2578 = vmatpush2.bf16.msra.mxu0 %v6426_v54  ;;  %2538 = vmatprep.subr.bf16.mxu1 %v6291_v55  ;;  %v7200_v54 = vld [vmem:[%s10416_s7 + $0x690] ss:$28 sps:$4 sm:$0xff]   ;;  %v7208_v55 = vld [vmem:[%s10416_s7 + $0x65c] ss:$28 sps:$4 sm:$0xff]  }
 0x271   :  { %2579 = vmatprep.subr.bf16.mxu0 %v6419_v56  ;;  %v7185_v56 = vld [vmem:[%s10416_s7 + $0x2d8] ss:$28 sps:$4 sm:$0xff]  }
 0x273   :  { %2539 = vmatpush2.bf16.msra.mxu1 %v6290_v57  ;;  %v7193_v57 = vld [vmem:[%s10416_s7 + $0x2a4] ss:$28 sps:$4 sm:$0xff]  }
 0x274   :  { %2580 = vmatpush2.bf16.msra.mxu0 %v6418_v58  ;;  %5459 = vmatprep.subr.bf16.mxu1 %v7136_v59  ;;  %v7206_v58 = vld [vmem:[%s10416_s7 + $0x658] ss:$28 sps:$4 sm:$0xff]   ;;  %v7214_v59 = vld [vmem:[%s10416_s7 + $0x624] ss:$28 sps:$4 sm:$0xff]  }
 0x275   :  { %5500 = vmatprep.subr.bf16.mxu0 %v7148_v60  ;;  %v7191_v60 = vld [vmem:[%s10416_s7 + $0x2a0] ss:$28 sps:$4 sm:$0xff]  }
 0x276   :  { %2541 = vmatmul.mubr.bf16.vlgmr.msra.gmra.mxu1 %v8352_v14  ;;  %v8948_v3 = vpop.f32.mrf.mxu1  ;;  %v8950_v4 = vpop.f32.mrf.mxu0  ;;  %v7152_v14 = vld [vmem:[%s10416_s7 + $0x4d0] ss:$28 sps:$4 sm:$0xff]  }
 0x277   :  { %2582 = vmatmul.mubr.bf16.vlgmr.msra.gmra.mxu0 %v8354_v15  ;;  %5460 = vmatpush1.bf16.msra.mxu1 %v7134_v61  ;;  %v7160_v15 = vld [vmem:[%s10416_s7 + $0x49c] ss:$28 sps:$4 sm:$0xff]   ;;  %v7199_v61 = vld [vmem:[%s10416_s7 + $0x26c] ss:$28 sps:$4 sm:$0xff]  }
 0x278   :  { %v2298_v5 = vpop.f32.mrf.mxu1  ;;  %v2339_v13 = vpop.f32.mrf.mxu0  ;;  %5461 = vmatprep.subr.bf16.mxu1 %v7139_v63  ;;  %5501 = vmatpush1.bf16.msra.mxu0 %v7146_v0  ;;  %v7212_v63 = vld [vmem:[%s10416_s7 + $0x620] ss:$28 sps:$4 sm:$0xff]   ;;  %v7220_v0 = vld [vmem:[%s10416_s7 + $0x5ec] ss:$28 sps:$4 sm:$0xff]  }
 0x279   :  { %v2299_v7 = vadd.f32 %v2298_v5, %v949_v1  ;;  %5502 = vmatprep.subr.bf16.mxu0 %v7154_v2  ;;  %v7197_v1 = vld [vmem:[%s10416_s7 + $0x268] ss:$28 sps:$4 sm:$0xff]   ;;  %v945_v2 = vrot.slane %v8934_v62, %v8124_v29 }
 0x27a   :  { %v2300_v8 = vpop.f32.mrf.mxu1  ;;  %v2341_v9 = vpop.f32.mrf.mxu0  ;;  %v7218_v5 = vld [vmem:[%s10416_s7 + $0x5e8] ss:$28 sps:$4 sm:$0xff]  }
 0x27b   :  { %v2340_v10 = vadd.f32 %v2339_v13, %v2299_v7  ;;  %5462 = vmatpush1.bf16.msra.mxu1 %v7137_v12  ;;  %v7205_v12 = vld [vmem:[%s10416_s7 + $0x234] ss:$28 sps:$4 sm:$0xff]   ;;  %v7211_v7 = vld [vmem:[%s10416_s7 + $0x1fc] ss:$28 sps:$4 sm:$0xff]  }
 0x27c   :  { %v2301_v16 = vpop.f32.mrf.mxu1  ;;  %v2342_v17 = vpop.f32.mrf.mxu0  ;;  %5463 = vmatprep.subr.bf16.mxu1 %v7142_v6  ;;  %5503 = vmatpush1.bf16.msra.mxu0 %v7152_v14  ;;  %v7223_v13 = vld [vmem:[%s10416_s7 + $0x5b4] ss:$28 sps:$4 sm:$0xff]   ;;  %v2297_v14 = vadd.f32 %v8948_v3, %v945_v2  ;;  %v7226_v8 = vld [vmem:[%s10416_s7 + $0x57c] ss:$28 sps:$4 sm:$0xff]  }
 0x27d   :  { %v2591_v20 = vmax.f32 %v2340_v10, 0.0  ;;  %5504 = vmatprep.subr.bf16.mxu0 %v7160_v15  ;;  %v7203_v6 = vld [vmem:[%s10416_s7 + $0x230] ss:$28 sps:$4 sm:$0xff]   ;;  %v7209_v3 = vld [vmem:[%s10416_s7 + $0x1f8] ss:$28 sps:$4 sm:$0xff]  }
 0x27e   :  { %v7221_v15 = vld [vmem:[%s10416_s7 + $0x5b0] ss:$28 sps:$4 sm:$0xff]   ;;  %v2338_v9 = vadd.f32 %v8950_v4, %v2297_v14  ;;  %v7217_v10 = vld [vmem:[%s10416_s7 + $0x1c4] ss:$28 sps:$4 sm:$0xff]  }
 0x27f   :  { %v8977_v22 = vpack.c.bf16 %v2591_v20, %v2591_v20  ;;  %5464 = vmatpush1.bf16.msra.mxu1 %v7140_v11  ;;  %v7224_v11 = vld [vmem:[%s10416_s7 + $0x578] ss:$28 sps:$4 sm:$0xff]   ;;  %v7229_v16 = vld [vmem:[%s10416_s7 + $0x544] ss:$28 sps:$4 sm:$0xff]   ;;  %v7280_v20 = vld [vmem:[%s10416_s7 + $0xc0c] ss:$28 sps:$4 sm:$0xff]  }
 0x280   :  { %5465 = vmatprep.subr.bf16.mxu1 %v7145_v18  ;;  %5505 = vmatpush1.bf16.msra.mxu0 %v7158_v19  ;;  %v7215_v4 = vld [vmem:[%s10416_s7 + $0x1c0] ss:$28 sps:$4 sm:$0xff]   ;;  %v2590_v17 = vmax.f32 %v2338_v9, 0.0  ;;  %v7232_v19 = vld [vmem:[%s10416_s7 + $0x88c] ss:$28 sps:$4 sm:$0xff]  }
 0x281   :  { %5491 = vmatprep.mubr.bf16.mxu1 %v8977_v22  ;;  %5506 = vmatprep.subr.bf16.mxu0 %v7166_v21  ;;  %v7227_v18 = vld [vmem:[%s10416_s7 + $0x540] ss:$28 sps:$4 sm:$0xff]   ;;  %v953_v21 = vrot.slane %v8934_v62, %v8324_v49  ;;  %v7256_v14 = vld [vmem:[%s10416_s7 + $0xa4c] ss:$28 sps:$4 sm:$0xff]  }
 0x282   :  { %v7296_v2 = vld [vmem:[%s10416_s7 + $0xb60] ss:$28 sps:$4 sm:$0xff]  }
 0x283   :  { %5466 = vmatpush1.bf16.msra.mxu1 %v7143_v23  ;;  %v7230_v23 = vld [vmem:[%s10416_s7 + $0x888] ss:$28 sps:$4 sm:$0xff]   ;;  %v7316_v9 = vld [vmem:[%s10416_s7 + $0xabc] ss:$28 sps:$4 sm:$0xff]  }
 0x284   :  { %5467 = vmatprep.subr.bf16.mxu1 %v7151_v24  ;;  %5507 = vmatpush1.bf16.msra.mxu0 %v7164_v25  ;;  %v9145_v24 = vpack.c.bf16 %v2590_v17, %v2590_v17  ;;  %v7235_v25 = vld [vmem:[%s10416_s7 + $0x854] ss:$28 sps:$4 sm:$0xff]  }
 0x285   :  { %5508 = vmatprep.subr.bf16.mxu0 %v7172_v26  ;;  %v957_v26 = vrot.slane %v8934_v62, %v8330_v51  ;;  %v7260_v17 = vld [vmem:[%s10416_s7 + $0x9d8] ss:$28 sps:$4 sm:$0xff]  }
 0x287   :  { %5468 = vmatpush1.bf16.msra.mxu1 %v7149_v28 }
 0x288   :  { %5469 = vmatprep.subr.bf16.mxu1 %v7157_v31  ;;  %5509 = vmatpush1.bf16.msra.mxu0 %v7170_v32 }
 0x289   :  { %5510 = vmatprep.subr.bf16.mxu0 %v7178_v33  ;;  %v7233_v33 = vld [vmem:[%s10416_s7 + $0x850] ss:$28 sps:$4 sm:$0xff]  }
 0x28b   :  { %5470 = vmatpush1.bf16.msra.mxu1 %v7155_v34 }
 0x28c   :  { %5471 = vmatprep.subr.bf16.mxu1 %v7163_v35  ;;  %5511 = vmatpush1.bf16.msra.mxu0 %v7176_v36  ;;  %v7238_v36 = vld [vmem:[%s10416_s7 + $0x81c] ss:$28 sps:$4 sm:$0xff]  }
 0x28d   :  { %5512 = vmatprep.subr.bf16.mxu0 %v7184_v37 }
 0x28f   :  { %5472 = vmatpush1.bf16.msra.mxu1 %v7161_v38 }
 0x290   :  { %5473 = vmatprep.subr.bf16.mxu1 %v7169_v39  ;;  %5513 = vmatpush1.bf16.msra.mxu0 %v7182_v40 }
 0x291   :  { %5514 = vmatprep.subr.bf16.mxu0 %v7190_v41 }
 0x293   :  { %5474 = vmatpush1.bf16.msra.mxu1 %v7167_v42  ;;  %v7236_v42 = vld [vmem:[%s10416_s7 + $0x818] ss:$28 sps:$4 sm:$0xff]  }
 0x294   :  { %5475 = vmatprep.subr.bf16.mxu1 %v7175_v43  ;;  %5515 = vmatpush1.bf16.msra.mxu0 %v7188_v44 }
 0x295   :  { %5516 = vmatprep.subr.bf16.mxu0 %v7196_v45 }
 0x297   :  { %5476 = vmatpush2.bf16.msra.mxu1 %v7173_v46  ;;  %v7241_v46 = vld [vmem:[%s10416_s7 + $0x7e4] ss:$28 sps:$4 sm:$0xff]  }
 0x298   :  { %5477 = vmatprep.subr.bf16.mxu1 %v7181_v47  ;;  %5517 = vmatpush2.bf16.msra.mxu0 %v7194_v48 }
 0x299   :  { %5518 = vmatprep.subr.bf16.mxu0 %v7202_v50  ;;  %v7239_v50 = vld [vmem:[%s10416_s7 + $0x7e0] ss:$28 sps:$4 sm:$0xff]  }
 0x29b   :  { %5478 = vmatpush2.bf16.msra.mxu1 %v7179_v52  ;;  %v7278_v52 = vld [vmem:[%s10416_s7 + $0xc08] ss:$28 sps:$4 sm:$0xff]  }
 0x29c   :  { %5479 = vmatprep.subr.bf16.mxu1 %v7187_v53  ;;  %5519 = vmatpush2.bf16.msra.mxu0 %v7200_v54  ;;  %v7244_v54 = vld [vmem:[%s10416_s7 + $0x7ac] ss:$28 sps:$4 sm:$0xff]  }
 0x29d   :  { %5520 = vmatprep.subr.bf16.mxu0 %v7208_v55  ;;  %v7286_v55 = vld [vmem:[%s10416_s7 + $0xbd4] ss:$28 sps:$4 sm:$0xff]  }
 0x29f   :  { %5480 = vmatpush2.bf16.msra.mxu1 %v7185_v56  ;;  %v7242_v56 = vld [vmem:[%s10416_s7 + $0x7a8] ss:$28 sps:$4 sm:$0xff]  }
 0x2a0   :  { %5481 = vmatprep.subr.bf16.mxu1 %v7193_v57  ;;  %5521 = vmatpush2.bf16.msra.mxu0 %v7206_v58  ;;  %v7284_v57 = vld [vmem:[%s10416_s7 + $0xbd0] ss:$28 sps:$4 sm:$0xff]  }
 0x2a1   :  { %5522 = vmatprep.subr.bf16.mxu0 %v7214_v59  ;;  %v7247_v58 = vld [vmem:[%s10416_s7 + $0x774] ss:$28 sps:$4 sm:$0xff]   ;;  %v7292_v59 = vld [vmem:[%s10416_s7 + $0xb9c] ss:$28 sps:$4 sm:$0xff]  }
 0x2a3   :  { %5482 = vmatpush2.bf16.msra.mxu1 %v7191_v60  ;;  %v7245_v60 = vld [vmem:[%s10416_s7 + $0x770] ss:$28 sps:$4 sm:$0xff]  }
 0x2a4   :  { %5483 = vmatprep.subr.bf16.mxu1 %v7199_v61  ;;  %5523 = vmatpush2.bf16.msra.mxu0 %v7212_v63  ;;  %v7290_v61 = vld [vmem:[%s10416_s7 + $0xb98] ss:$28 sps:$4 sm:$0xff]  }
 0x2a5   :  { %5524 = vmatprep.subr.bf16.mxu0 %v7220_v0  ;;  %v7250_v63 = vld [vmem:[%s10416_s7 + $0x73c] ss:$28 sps:$4 sm:$0xff]   ;;  %v7298_v0 = vld [vmem:[%s10416_s7 + $0xb64] ss:$28 sps:$4 sm:$0xff]  }
 0x2a7   :  { %5484 = vmatpush2.bf16.msra.mxu1 %v7197_v1  ;;  %v7248_v1 = vld [vmem:[%s10416_s7 + $0x738] ss:$28 sps:$4 sm:$0xff]  }
 0x2a8   :  { %5485 = vmatprep.subr.bf16.mxu1 %v7205_v12  ;;  %5525 = vmatpush2.bf16.msra.mxu0 %v7218_v5  ;;  %v7253_v12 = vld [vmem:[%s10416_s7 + $0x704] ss:$28 sps:$4 sm:$0xff]   ;;  %v7304_v5 = vld [vmem:[%s10416_s7 + $0xb2c] ss:$28 sps:$4 sm:$0xff]  }
 0x2a9   :  { %5526 = vmatprep.subr.bf16.mxu0 %v7223_v13  ;;  %v7251_v13 = vld [vmem:[%s10416_s7 + $0x700] ss:$28 sps:$4 sm:$0xff]  }
 0x2ab   :  { %5486 = vmatpush2.bf16.msra.mxu1 %v7203_v6  ;;  %v7302_v6 = vld [vmem:[%s10416_s7 + $0xb28] ss:$28 sps:$4 sm:$0xff]  }
 0x2ac   :  { %5487 = vmatprep.subr.bf16.mxu1 %v7211_v7  ;;  %5527 = vmatpush2.bf16.msra.mxu0 %v7221_v15  ;;  %v7310_v7 = vld [vmem:[%s10416_s7 + $0xaf4] ss:$28 sps:$4 sm:$0xff]   ;;  %v7254_v15 = vld [vmem:[%s10416_s7 + $0xa48] ss:$28 sps:$4 sm:$0xff]  }
 0x2ad   :  { %5528 = vmatprep.subr.bf16.mxu0 %v7226_v8  ;;  %v7308_v8 = vld [vmem:[%s10416_s7 + $0xaf0] ss:$28 sps:$4 sm:$0xff]  }
 0x2af   :  { %5488 = vmatpush2.bf16.msra.mxu1 %v7209_v3  ;;  %v7259_v3 = vld [vmem:[%s10416_s7 + $0xa14] ss:$28 sps:$4 sm:$0xff]  }
 0x2b0   :  { %5489 = vmatprep.subr.bf16.mxu1 %v7217_v10  ;;  %5529 = vmatpush2.bf16.msra.mxu0 %v7224_v11  ;;  %v7257_v10 = vld [vmem:[%s10416_s7 + $0xa10] ss:$28 sps:$4 sm:$0xff]   ;;  %v7314_v11 = vld [vmem:[%s10416_s7 + $0xab8] ss:$28 sps:$4 sm:$0xff]  }
 0x2b1   :  { %5530 = vmatprep.subr.bf16.mxu0 %v7229_v16  ;;  %v7262_v16 = vld [vmem:[%s10416_s7 + $0x9dc] ss:$28 sps:$4 sm:$0xff]  }
 0x2b3   :  { %5490 = vmatpush2.bf16.msra.mxu1 %v7215_v4  ;;  %v7322_v4 = vld [vmem:[%s10416_s7 + $0xa84] ss:$28 sps:$4 sm:$0xff]  }
 0x2b4   :  { %5531 = vmatpush2.bf16.msra.mxu0 %v7227_v18  ;;  %5541 = vmatprep.subr.bf16.mxu1 %v7232_v19  ;;  %v7320_v18 = vld [vmem:[%s10416_s7 + $0xa80] ss:$28 sps:$4 sm:$0xff]  }
 0x2b5   :  { %5582 = vmatprep.subr.bf16.mxu0 %v7280_v20  ;;  %v7265_v19 = vld [vmem:[%s10416_s7 + $0x9a4] ss:$28 sps:$4 sm:$0xff]   ;;  %v7328_v20 = vld [vmem:[%s10416_s7 + $0xdcc] ss:$28 sps:$4 sm:$0xff]  }
 0x2b6   :  { %v2378_v28 = vpop.f32.mrf.mxu1  ;;  %v2419_v31 = vpop.f32.mrf.mxu0  ;;  %5492 = vmatmul.mubr.bf16.vlgmr.msra.gmra.mxu1 %v9145_v24 }
 0x2b7   :  { %v2379_v32 = vadd.f32 %v2378_v28, %v953_v21  ;;  %5542 = vmatpush1.bf16.msra.mxu1 %v7230_v23  ;;  %v7263_v21 = vld [vmem:[%s10416_s7 + $0x9a0] ss:$28 sps:$4 sm:$0xff]   ;;  %v7326_v23 = vld [vmem:[%s10416_s7 + $0xdc8] ss:$28 sps:$4 sm:$0xff]  }
 0x2b8   :  { %v2380_v34 = vpop.f32.mrf.mxu1  ;;  %v2421_v35 = vpop.f32.mrf.mxu0  ;;  %5543 = vmatprep.subr.bf16.mxu1 %v7235_v25  ;;  %v7268_v25 = vld [vmem:[%s10416_s7 + $0x96c] ss:$28 sps:$4 sm:$0xff]  }
 0x2b9   :  { %v2420_v37 = vadd.f32 %v2419_v31, %v2379_v32  ;;  %v2381_v38 = vadd.f32 %v2380_v34, %v957_v26  ;;  %v7334_v26 = vld [vmem:[%s10416_s7 + $0xd94] ss:$28 sps:$4 sm:$0xff]   ;;  %v7266_v28 = vld [vmem:[%s10416_s7 + $0x968] ss:$28 sps:$4 sm:$0xff]  }
 0x2ba   :  { %v2382_v39 = vpop.f32.mrf.mxu1  ;;  %v2423_v40 = vpop.f32.mrf.mxu0  ;;  %v7332_v31 = vld [vmem:[%s10416_s7 + $0xd90] ss:$28 sps:$4 sm:$0xff]  }
 0x2bb   :  { %v2422_v41 = vadd.f32 %v2421_v35, %v2381_v38  ;;  %5544 = vmatpush1.bf16.msra.mxu1 %v7233_v33  ;;  %v2592_v43 = vmax.f32 %v2420_v37, 0.0  ;;  %v7271_v32 = vld [vmem:[%s10416_s7 + $0x934] ss:$28 sps:$4 sm:$0xff]   ;;  %v7340_v33 = vld [vmem:[%s10416_s7 + $0xd5c] ss:$28 sps:$4 sm:$0xff]  }
 0x2bc   :  { %v2383_v44 = vpop.f32.mrf.mxu1  ;;  %v2424_v45 = vpop.f32.mrf.mxu0  ;;  %5545 = vmatprep.subr.bf16.mxu1 %v7238_v36  ;;  %v7269_v34 = vld [vmem:[%s10416_s7 + $0x930] ss:$28 sps:$4 sm:$0xff]   ;;  %v7338_v35 = vld [vmem:[%s10416_s7 + $0xd58] ss:$28 sps:$4 sm:$0xff]   ;;  %v7346_v37 = vld [vmem:[%s10416_s7 + $0xd24] ss:$28 sps:$4 sm:$0xff]  }
 0x2bd   :  { %v2593_v47 = vmax.f32 %v2422_v41, 0.0  ;;  %v9173_v53 = vpack.c.bf16 %v2592_v43, %v2592_v43  ;;  %v7274_v36 = vld [vmem:[%s10416_s7 + $0x8fc] ss:$28 sps:$4 sm:$0xff]   ;;  %v7277_v40 = vld [vmem:[%s10416_s7 + $0x8c4] ss:$28 sps:$4 sm:$0xff]  }
 0x2be   :  { %v7272_v38 = vld [vmem:[%s10416_s7 + $0x8f8] ss:$28 sps:$4 sm:$0xff]   ;;  %v7344_v39 = vld [vmem:[%s10416_s7 + $0xd20] ss:$28 sps:$4 sm:$0xff]   ;;  %v7352_v41 = vld [vmem:[%s10416_s7 + $0xcec] ss:$28 sps:$4 sm:$0xff]  }
 0x2bf   :  { %v9165_v48 = vpack.c.bf16 %v2593_v47, %v2593_v47  ;;  %5546 = vmatpush1.bf16.msra.mxu1 %v7236_v42  ;;  %v960_v42 = vsub.s32 4, %v8118_v27  ;;  %v7275_v43 = vld [vmem:[%s10416_s7 + $0x8c0] ss:$28 sps:$4 sm:$0xff]   ;;  %v7350_v44 = vld [vmem:[%s10416_s7 + $0xce8] ss:$28 sps:$4 sm:$0xff]   ;;  %v964_v47 = vsub.s32 5, %v8118_v27 }
 0x2c0   :  { %5547 = vmatprep.subr.bf16.mxu1 %v7241_v46  ;;  %v7283_v45 = vld [vmem:[%s10416_s7 + $0x194] ss:$28 sps:$4 sm:$0xff]  }
 0x2c1   :  { %5532 = vmatprep.mubr.bf16.mxu0 %v9165_v48  ;;  %v7358_v46 = vld [vmem:[%s10416_s7 + $0xcb4] ss:$28 sps:$4 sm:$0xff]  }
 0x2c2   :  { %5533 = vmatmul.mubr.bf16.vlgmr.msra.gmra.mxu0 %v9173_v53 }
 0x2c3   :  { %5548 = vmatpush1.bf16.msra.mxu1 %v7239_v50  ;;  %5583 = vmatpush1.bf16.msra.mxu0 %v7278_v52  ;;  %v961_v50 = vrot.slane %v8934_v62, %v960_v42  ;;  %v7356_v52 = vld [vmem:[%s10416_s7 + $0xcb0] ss:$28 sps:$4 sm:$0xff]  }
 0x2c4   :  { %5549 = vmatprep.subr.bf16.mxu1 %v7244_v54  ;;  %5584 = vmatprep.subr.bf16.mxu0 %v7286_v55  ;;  %v7364_v54 = vld [vmem:[%s10416_s7 + $0xc7c] ss:$28 sps:$4 sm:$0xff]   ;;  %v965_v55 = vrot.slane %v8934_v62, %v964_v47 }
 0x2c7   :  { %5550 = vmatpush1.bf16.msra.mxu1 %v7242_v56  ;;  %5585 = vmatpush1.bf16.msra.mxu0 %v7284_v57 }
 0x2c8   :  { %5551 = vmatprep.subr.bf16.mxu1 %v7247_v58  ;;  %5586 = vmatprep.subr.bf16.mxu0 %v7292_v59  ;;  %v7362_v59 = vld [vmem:[%s10416_s7 + $0xc78] ss:$28 sps:$4 sm:$0xff]  }
 0x2cb   :  { %5552 = vmatpush1.bf16.msra.mxu1 %v7245_v60  ;;  %5587 = vmatpush1.bf16.msra.mxu0 %v7290_v61  ;;  %v7370_v61 = vld [vmem:[%s10416_s7 + $0xc44] ss:$28 sps:$4 sm:$0xff]  }
 0x2cc   :  { %5553 = vmatprep.subr.bf16.mxu1 %v7250_v63  ;;  %5588 = vmatprep.subr.bf16.mxu0 %v7298_v0 }
 0x2cf   :  { %5554 = vmatpush1.bf16.msra.mxu1 %v7248_v1  ;;  %5589 = vmatpush1.bf16.msra.mxu0 %v7296_v2 }
 0x2d0   :  { %5555 = vmatprep.subr.bf16.mxu1 %v7253_v12  ;;  %5590 = vmatprep.subr.bf16.mxu0 %v7304_v5 }
 0x2d3   :  { %5556 = vmatpush1.bf16.msra.mxu1 %v7251_v13  ;;  %5591 = vmatpush1.bf16.msra.mxu0 %v7302_v6  ;;  %v7368_v13 = vld [vmem:[%s10416_s7 + $0xc40] ss:$28 sps:$4 sm:$0xff]  }
 0x2d4   :  { %5557 = vmatprep.subr.bf16.mxu1 %v7256_v14  ;;  %5592 = vmatprep.subr.bf16.mxu0 %v7310_v7  ;;  %v7376_v7 = vld [vmem:[%s10416_s7 + $0x514] ss:$28 sps:$4 sm:$0xff]  }
 0x2d7   :  { %5558 = vmatpush2.bf16.msra.mxu1 %v7254_v15  ;;  %5593 = vmatpush1.bf16.msra.mxu0 %v7308_v8 }
 0x2d8   :  { %5559 = vmatprep.subr.bf16.mxu1 %v7259_v3  ;;  %5594 = vmatprep.subr.bf16.mxu0 %v7316_v9  ;;  %v7281_v9 = vld [vmem:[%s10416_s7 + $0x190] ss:$28 sps:$4 sm:$0xff]  }
 0x2db   :  { %5560 = vmatpush2.bf16.msra.mxu1 %v7257_v10  ;;  %5595 = vmatpush1.bf16.msra.mxu0 %v7314_v11  ;;  %v7289_v11 = vld [vmem:[%s10416_s7 + $0x15c] ss:$28 sps:$4 sm:$0xff]  }
 0x2dc   :  { %5561 = vmatprep.subr.bf16.mxu1 %v7262_v16  ;;  %5596 = vmatprep.subr.bf16.mxu0 %v7322_v4  ;;  %v7287_v16 = vld [vmem:[%s10416_s7 + $0x158] ss:$28 sps:$4 sm:$0xff]   ;;  %v7295_v4 = vld [vmem:[%s10416_s7 + $0x124] ss:$28 sps:$4 sm:$0xff]  }
 0x2df   :  { %5562 = vmatpush2.bf16.msra.mxu1 %v7260_v17  ;;  %5597 = vmatpush1.bf16.msra.mxu0 %v7320_v18  ;;  %v7293_v17 = vld [vmem:[%s10416_s7 + $0x120] ss:$28 sps:$4 sm:$0xff]   ;;  %v7301_v18 = vld [vmem:[%s10416_s7 + $0xec] ss:$28 sps:$4 sm:$0xff]  }
 0x2e0   :  { %5563 = vmatprep.subr.bf16.mxu1 %v7265_v19  ;;  %5598 = vmatprep.subr.bf16.mxu0 %v7328_v20  ;;  %v7299_v19 = vld [vmem:[%s10416_s7 + $0xe8] ss:$28 sps:$4 sm:$0xff]   ;;  %v7307_v20 = vld [vmem:[%s10416_s7 + $0xb4] ss:$28 sps:$4 sm:$0xff]  }
 0x2e3   :  { %5564 = vmatpush2.bf16.msra.mxu1 %v7263_v21  ;;  %5599 = vmatpush2.bf16.msra.mxu0 %v7326_v23  ;;  %v7305_v21 = vld [vmem:[%s10416_s7 + $0xb0] ss:$28 sps:$4 sm:$0xff]   ;;  %v7313_v23 = vld [vmem:[%s10416_s7 + $0x7c] ss:$28 sps:$4 sm:$0xff]  }
 0x2e4   :  { %5565 = vmatprep.subr.bf16.mxu1 %v7268_v25  ;;  %5600 = vmatprep.subr.bf16.mxu0 %v7334_v26  ;;  %v7311_v25 = vld [vmem:[%s10416_s7 + $0x78] ss:$28 sps:$4 sm:$0xff]   ;;  %v7319_v26 = vld [vmem:[%s10416_s7 + $0x44] ss:$28 sps:$4 sm:$0xff]  }
 0x2e7   :  { %5566 = vmatpush2.bf16.msra.mxu1 %v7266_v28  ;;  %5601 = vmatpush2.bf16.msra.mxu0 %v7332_v31  ;;  %v7317_v28 = vld [vmem:[%s10416_s7 + $0x40] ss:$28 sps:$4 sm:$0xff]   ;;  %v7325_v31 = vld [vmem:[%s10416_s7 + $0xc] ss:$28 sps:$4 sm:$0xff]  }
 0x2e8   :  { %5567 = vmatprep.subr.bf16.mxu1 %v7271_v32  ;;  %5602 = vmatprep.subr.bf16.mxu0 %v7340_v33  ;;  %v7323_v32 = vld [vmem:[%s10416_s7 + $0x8] ss:$28 sps:$4 sm:$0xff]   ;;  %v7331_v33 = vld [vmem:[%s10416_s7 + $0x354] ss:$28 sps:$4 sm:$0xff]  }
 0x2eb   :  { %5568 = vmatpush2.bf16.msra.mxu1 %v7269_v34  ;;  %5603 = vmatpush2.bf16.msra.mxu0 %v7338_v35  ;;  %v7329_v34 = vld [vmem:[%s10416_s7 + $0x350] ss:$28 sps:$4 sm:$0xff]   ;;  %v7337_v35 = vld [vmem:[%s10416_s7 + $0x31c] ss:$28 sps:$4 sm:$0xff]  }
 0x2ec   :  { %5569 = vmatprep.subr.bf16.mxu1 %v7274_v36  ;;  %5604 = vmatprep.subr.bf16.mxu0 %v7346_v37  ;;  %v7335_v36 = vld [vmem:[%s10416_s7 + $0x318] ss:$28 sps:$4 sm:$0xff]   ;;  %v7343_v37 = vld [vmem:[%s10416_s7 + $0x2e4] ss:$28 sps:$4 sm:$0xff]  }
 0x2ef   :  { %5570 = vmatpush2.bf16.msra.mxu1 %v7272_v38  ;;  %5605 = vmatpush2.bf16.msra.mxu0 %v7344_v39  ;;  %v7341_v38 = vld [vmem:[%s10416_s7 + $0x2e0] ss:$28 sps:$4 sm:$0xff]   ;;  %v7349_v39 = vld [vmem:[%s10416_s7 + $0x2ac] ss:$28 sps:$4 sm:$0xff]  }
 0x2f0   :  { %5571 = vmatprep.subr.bf16.mxu1 %v7277_v40  ;;  %5606 = vmatprep.subr.bf16.mxu0 %v7352_v41  ;;  %v7347_v40 = vld [vmem:[%s10416_s7 + $0x2a8] ss:$28 sps:$4 sm:$0xff]   ;;  %v7355_v41 = vld [vmem:[%s10416_s7 + $0x274] ss:$28 sps:$4 sm:$0xff]  }
 0x2f3   :  { %5572 = vmatpush2.bf16.msra.mxu1 %v7275_v43  ;;  %5607 = vmatpush2.bf16.msra.mxu0 %v7350_v44  ;;  %v7353_v43 = vld [vmem:[%s10416_s7 + $0x270] ss:$28 sps:$4 sm:$0xff]   ;;  %v968_v44 = vsub.s32 6, %v8118_v27 }
 0x2f4   :  { %5623 = vmatprep.subr.bf16.mxu1 %v7283_v45  ;;  %5608 = vmatprep.subr.bf16.mxu0 %v7358_v46  ;;  %v7361_v45 = vld [vmem:[%s10416_s7 + $0x23c] ss:$28 sps:$4 sm:$0xff]   ;;  %v972_v46 = vsub.s32 7, %v8118_v27 }
 0x2f6   :  { %v2460_v56 = vpop.f32.mrf.mxu1 }
 0x2f7   :  { %v2461_v57 = vadd.f32 %v2460_v56, %v961_v50  ;;  %v2501_v58 = vpop.f32.mrf.mxu0  ;;  %5609 = vmatpush2.bf16.msra.mxu0 %v7356_v52  ;;  %v7359_v50 = vld [vmem:[%s10416_s7 + $0x238] ss:$28 sps:$4 sm:$0xff]   ;;  %v969_v52 = vrot.slane %v8934_v62, %v968_v44 }
 0x2f8   :  { %v2462_v60 = vpop.f32.mrf.mxu1  ;;  %5610 = vmatprep.subr.bf16.mxu0 %v7364_v54  ;;  %v7367_v54 = vld [vmem:[%s10416_s7 + $0x204] ss:$28 sps:$4 sm:$0xff]  }
 0x2f9   :  { %v2502_v63 = vadd.f32 %v2501_v58, %v2461_v57  ;;  %v2463_v0 = vadd.f32 %v2462_v60, %v965_v55  ;;  %v2503_v1 = vpop.f32.mrf.mxu0  ;;  %v973_v55 = vrot.slane %v8934_v62, %v972_v46  ;;  %v7413_v46 = vld [vmem:[%s10416_s7 + $0x740] ss:$28 sps:$4 sm:$0xff]  }
 0x2fa   :  { %v2464_v2 = vpop.f32.mrf.mxu1 }
 0x2fb   :  { %v2504_v12 = vadd.f32 %v2503_v1, %v2463_v0  ;;  %v2505_v5 = vpop.f32.mrf.mxu0  ;;  %5611 = vmatpush2.bf16.msra.mxu0 %v7362_v59  ;;  %v2594_v6 = vmax.f32 %v2502_v63, 0.0  ;;  %v7365_v59 = vld [vmem:[%s10416_s7 + $0x200] ss:$28 sps:$4 sm:$0xff]  }
 0x2fc   :  { %v2465_v14 = vpop.f32.mrf.mxu1  ;;  %5612 = vmatprep.subr.bf16.mxu0 %v7370_v61  ;;  %v7373_v61 = vld [vmem:[%s10416_s7 + $0x1cc] ss:$28 sps:$4 sm:$0xff]  }
 0x2fd   :  { %v2595_v15 = vmax.f32 %v2504_v12, 0.0  ;;  %v2506_v8 = vpop.f32.mrf.mxu0  ;;  %v9358_v10 = vpack.c.bf16 %v2594_v6, %v2594_v6  ;;  %v7371_v5 = vld [vmem:[%s10416_s7 + $0x1c8] ss:$28 sps:$4 sm:$0xff]   ;;  %v7379_v14 = vld [vmem:[%s10416_s7 + $0x894] ss:$28 sps:$4 sm:$0xff]  }
 0x2ff   :  { %v9353_v3 = vpack.c.bf16 %v2595_v15, %v2595_v15  ;;  %5613 = vmatpush2.bf16.msra.mxu0 %v7368_v13 }
 0x300   :  { %5664 = vmatprep.subr.bf16.mxu0 %v7376_v7 }
 0x301   :  { %5573 = vmatprep.mubr.bf16.mxu1 %v9353_v3 }
 0x302   :  { %5574 = vmatmul.mubr.bf16.vlgmr.msra.gmra.mxu1 %v9358_v10 }
 0x303   :  { %5624 = vmatpush1.bf16.msra.mxu1 %v7281_v9  ;;  %5655 = vmatprep.mubr.bf16.mxu1 %v8977_v22  ;;  %v7374_v9 = vld [vmem:[%s10416_s7 + $0x510] ss:$28 sps:$4 sm:$0xff]  }
 0x304   :  { %5625 = vmatprep.subr.bf16.mxu1 %v7289_v11  ;;  %v7377_v11 = vld [vmem:[%s10416_s7 + $0x890] ss:$28 sps:$4 sm:$0xff]  }
 0x307   :  { %5626 = vmatpush1.bf16.msra.mxu1 %v7287_v16 }
 0x308   :  { %5627 = vmatprep.subr.bf16.mxu1 %v7295_v4  ;;  %v7382_v4 = vld [vmem:[%s10416_s7 + $0x4dc] ss:$28 sps:$4 sm:$0xff]  }
 0x30b   :  { %5628 = vmatpush1.bf16.msra.mxu1 %v7293_v17  ;;  %v7385_v17 = vld [vmem:[%s10416_s7 + $0x85c] ss:$28 sps:$4 sm:$0xff]  }
 0x30c   :  { %5629 = vmatprep.subr.bf16.mxu1 %v7301_v18  ;;  %v7380_v18 = vld [vmem:[%s10416_s7 + $0x4d8] ss:$28 sps:$4 sm:$0xff]  }
 0x30f   :  { %5630 = vmatpush1.bf16.msra.mxu1 %v7299_v19  ;;  %v7383_v19 = vld [vmem:[%s10416_s7 + $0x858] ss:$28 sps:$4 sm:$0xff]  }
 0x310   :  { %5631 = vmatprep.subr.bf16.mxu1 %v7307_v20  ;;  %v7388_v20 = vld [vmem:[%s10416_s7 + $0x4a4] ss:$28 sps:$4 sm:$0xff]  }
 0x313   :  { %5632 = vmatpush1.bf16.msra.mxu1 %v7305_v21  ;;  %v7391_v21 = vld [vmem:[%s10416_s7 + $0x824] ss:$28 sps:$4 sm:$0xff]  }
 0x314   :  { %5633 = vmatprep.subr.bf16.mxu1 %v7313_v23  ;;  %v7386_v23 = vld [vmem:[%s10416_s7 + $0x4a0] ss:$28 sps:$4 sm:$0xff]  }
 0x317   :  { %5634 = vmatpush1.bf16.msra.mxu1 %v7311_v25  ;;  %v7389_v25 = vld [vmem:[%s10416_s7 + $0x820] ss:$28 sps:$4 sm:$0xff]  }
 0x318   :  { %5635 = vmatprep.subr.bf16.mxu1 %v7319_v26  ;;  %v7394_v26 = vld [vmem:[%s10416_s7 + $0x46c] ss:$28 sps:$4 sm:$0xff]  }
 0x31b   :  { %5636 = vmatpush1.bf16.msra.mxu1 %v7317_v28  ;;  %v7397_v28 = vld [vmem:[%s10416_s7 + $0x7ec] ss:$28 sps:$4 sm:$0xff]  }
 0x31c   :  { %5637 = vmatprep.subr.bf16.mxu1 %v7325_v31  ;;  %v7392_v31 = vld [vmem:[%s10416_s7 + $0x468] ss:$28 sps:$4 sm:$0xff]  }
 0x31f   :  { %5638 = vmatpush1.bf16.msra.mxu1 %v7323_v32  ;;  %v7395_v32 = vld [vmem:[%s10416_s7 + $0x7e8] ss:$28 sps:$4 sm:$0xff]  }
 0x320   :  { %5639 = vmatprep.subr.bf16.mxu1 %v7331_v33  ;;  %v7400_v33 = vld [vmem:[%s10416_s7 + $0x434] ss:$28 sps:$4 sm:$0xff]  }
 0x323   :  { %5640 = vmatpush2.bf16.msra.mxu1 %v7329_v34  ;;  %v7403_v34 = vld [vmem:[%s10416_s7 + $0x7b4] ss:$28 sps:$4 sm:$0xff]  }
 0x324   :  { %5641 = vmatprep.subr.bf16.mxu1 %v7337_v35  ;;  %v7398_v35 = vld [vmem:[%s10416_s7 + $0x430] ss:$28 sps:$4 sm:$0xff]  }
 0x327   :  { %5642 = vmatpush2.bf16.msra.mxu1 %v7335_v36  ;;  %v7401_v36 = vld [vmem:[%s10416_s7 + $0x7b0] ss:$28 sps:$4 sm:$0xff]  }
 0x328   :  { %5643 = vmatprep.subr.bf16.mxu1 %v7343_v37  ;;  %v7406_v37 = vld [vmem:[%s10416_s7 + $0x3fc] ss:$28 sps:$4 sm:$0xff]  }
 0x32b   :  { %5644 = vmatpush2.bf16.msra.mxu1 %v7341_v38  ;;  %v7409_v38 = vld [vmem:[%s10416_s7 + $0x77c] ss:$28 sps:$4 sm:$0xff]  }
 0x32c   :  { %5645 = vmatprep.subr.bf16.mxu1 %v7349_v39  ;;  %v7404_v39 = vld [vmem:[%s10416_s7 + $0x3f8] ss:$28 sps:$4 sm:$0xff]  }
 0x32f   :  { %5646 = vmatpush2.bf16.msra.mxu1 %v7347_v40  ;;  %v7407_v40 = vld [vmem:[%s10416_s7 + $0x778] ss:$28 sps:$4 sm:$0xff]  }
 0x330   :  { %5647 = vmatprep.subr.bf16.mxu1 %v7355_v41  ;;  %v7412_v41 = vld [vmem:[%s10416_s7 + $0x3c4] ss:$28 sps:$4 sm:$0xff]  }
 0x333   :  { %5648 = vmatpush2.bf16.msra.mxu1 %v7353_v43  ;;  %v7415_v43 = vld [vmem:[%s10416_s7 + $0x744] ss:$28 sps:$4 sm:$0xff]  }
 0x334   :  { %5649 = vmatprep.subr.bf16.mxu1 %v7361_v45  ;;  %v7410_v45 = vld [vmem:[%s10416_s7 + $0x3c0] ss:$28 sps:$4 sm:$0xff]  }
 0x336   :  { %v2542_v56 = vpop.f32.mrf.mxu1 }
 0x337   :  { %v2543_v57 = vadd.f32 %v2542_v56, %v969_v52  ;;  %v2583_v58 = vpop.f32.mrf.mxu0  ;;  %5650 = vmatpush2.bf16.msra.mxu1 %v7359_v50  ;;  %v7418_v50 = vld [vmem:[%s10416_s7 + $0x38c] ss:$28 sps:$4 sm:$0xff]   ;;  %v7424_v56 = vld [vmem:[%s10416_s7 + $0x6d4] ss:$28 sps:$4 sm:$0xff]  }
 0x338   :  { %v2544_v60 = vpop.f32.mrf.mxu1  ;;  %5651 = vmatprep.subr.bf16.mxu1 %v7367_v54  ;;  %v7421_v52 = vld [vmem:[%s10416_s7 + $0x70c] ss:$28 sps:$4 sm:$0xff]  }
 0x339   :  { %v2584_v63 = vadd.f32 %v2583_v58, %v2543_v57  ;;  %v2545_v0 = vadd.f32 %v2544_v60, %v973_v55  ;;  %v2585_v1 = vpop.f32.mrf.mxu0  ;;  %v7416_v54 = vld [vmem:[%s10416_s7 + $0x388] ss:$28 sps:$4 sm:$0xff]   ;;  %v7427_v57 = vld [vmem:[%s10416_s7 + $0xa54] ss:$28 sps:$4 sm:$0xff]   ;;  %v7430_v60 = vld [vmem:[%s10416_s7 + $0x69c] ss:$28 sps:$4 sm:$0xff]  }
 0x33a   :  { %v2546_v2 = vpop.f32.mrf.mxu1  ;;  %v7419_v55 = vld [vmem:[%s10416_s7 + $0x708] ss:$28 sps:$4 sm:$0xff]   ;;  %v7422_v58 = vld [vmem:[%s10416_s7 + $0x6d0] ss:$28 sps:$4 sm:$0xff]  }
 0x33b   :  { %v2586_v12 = vadd.f32 %v2585_v1, %v2545_v0  ;;  %v2587_v62 = vpop.f32.mrf.mxu0  ;;  %5652 = vmatpush2.bf16.msra.mxu1 %v7365_v59  ;;  %v2596_v13 = vmax.f32 %v2584_v63, 0.0  ;;  %v7425_v59 = vld [vmem:[%s10416_s7 + $0xa50] ss:$28 sps:$4 sm:$0xff]   ;;  %v7428_v63 = vld [vmem:[%s10416_s7 + $0x698] ss:$28 sps:$4 sm:$0xff]  }
 0x33c   :  { %v2547_v6 = vpop.f32.mrf.mxu1  ;;  %5653 = vmatprep.subr.bf16.mxu1 %v7373_v61  ;;  %v7433_v61 = vld [vmem:[%s10416_s7 + $0xa1c] ss:$28 sps:$4 sm:$0xff]   ;;  %v7436_v1 = vld [vmem:[%s10416_s7 + $0x664] ss:$28 sps:$4 sm:$0xff]  }
 0x33d   :  { %v2597_v7 = vmax.f32 %v2586_v12, 0.0  ;;  %v2588_v15 = vpop.f32.mrf.mxu0  ;;  %v9470_v16 = vpack.c.bf16 %v2596_v13, %v2596_v13  ;;  %v7431_v0 = vld [vmem:[%s10416_s7 + $0xa18] ss:$28 sps:$4 sm:$0xff]   ;;  %v7439_v2 = vld [vmem:[%s10416_s7 + $0x9e4] ss:$28 sps:$4 sm:$0xff]  }
 0x33e   :  { %v7434_v12 = vld [vmem:[%s10416_s7 + $0x660] ss:$28 sps:$4 sm:$0xff]   ;;  %v7445_v13 = vld [vmem:[%s10416_s7 + $0x9ac] ss:$28 sps:$4 sm:$0xff]   ;;  %v7451_v15 = vld [vmem:[%s10416_s7 + $0x974] ss:$28 sps:$4 sm:$0xff]  }
 0x33f   :  { %v9462_v8 = vpack.c.bf16 %v2597_v7, %v2597_v7  ;;  %5654 = vmatpush2.bf16.msra.mxu1 %v7371_v5  ;;  %v7437_v62 = vld [vmem:[%s10416_s7 + $0x9e0] ss:$28 sps:$4 sm:$0xff]   ;;  %v7442_v5 = vld [vmem:[%s10416_s7 + $0x62c] ss:$28 sps:$4 sm:$0xff]   ;;  %v7448_v7 = vld [vmem:[%s10416_s7 + $0x5f4] ss:$28 sps:$4 sm:$0xff]  }
 0x340   :  { %5705 = vmatprep.subr.bf16.mxu1 %v7379_v14  ;;  %v7440_v6 = vld [vmem:[%s10416_s7 + $0x628] ss:$28 sps:$4 sm:$0xff]  }
 0x341   :  { %5614 = vmatprep.mubr.bf16.mxu0 %v9462_v8  ;;  %v7443_v14 = vld [vmem:[%s10416_s7 + $0x9a8] ss:$28 sps:$4 sm:$0xff]  }
 0x342   :  { %5656 = vmatmul.mubr.bf16.vlgmr.msra.gmra.mxu1 %v9145_v24  ;;  %5615 = vmatmul.mubr.bf16.vlgmr.msra.gmra.mxu0 %v9470_v16 }
 0x343   :  { %5665 = vmatpush1.bf16.msra.mxu0 %v7374_v9  ;;  %5706 = vmatpush1.bf16.msra.mxu1 %v7377_v11  ;;  %v7446_v9 = vld [vmem:[%s10416_s7 + $0x5f0] ss:$28 sps:$4 sm:$0xff]  }
 0x344   :  { %5737 = vmatprep.mubr.bf16.mxu1 %v9353_v3  ;;  %5696 = vmatprep.mubr.bf16.mxu0 %v9165_v48  ;;  %v7449_v11 = vld [vmem:[%s10416_s7 + $0x970] ss:$28 sps:$4 sm:$0xff]  }
 0x345   :  { %5666 = vmatprep.subr.bf16.mxu0 %v7382_v4  ;;  %5707 = vmatprep.subr.bf16.mxu1 %v7385_v17  ;;  %v7454_v4 = vld [vmem:[%s10416_s7 + $0x5bc] ss:$28 sps:$4 sm:$0xff]  }
 0x346   :  { %v7457_v17 = vld [vmem:[%s10416_s7 + $0x93c] ss:$28 sps:$4 sm:$0xff]  }
 0x347   :  { %5667 = vmatpush1.bf16.msra.mxu0 %v7380_v18  ;;  %5708 = vmatpush1.bf16.msra.mxu1 %v7383_v19  ;;  %v7452_v18 = vld [vmem:[%s10416_s7 + $0x5b8] ss:$28 sps:$4 sm:$0xff]  }
 0x348   :  { %5668 = vmatprep.subr.bf16.mxu0 %v7388_v20  ;;  %5709 = vmatprep.subr.bf16.mxu1 %v7391_v21  ;;  %v7455_v19 = vld [vmem:[%s10416_s7 + $0x938] ss:$28 sps:$4 sm:$0xff]   ;;  %v7460_v20 = vld [vmem:[%s10416_s7 + $0x584] ss:$28 sps:$4 sm:$0xff]  }
 0x349   :  { %v7463_v21 = vld [vmem:[%s10416_s7 + $0x904] ss:$28 sps:$4 sm:$0xff]  }
 0x34b   :  { %5669 = vmatpush1.bf16.msra.mxu0 %v7386_v23  ;;  %5710 = vmatpush1.bf16.msra.mxu1 %v7389_v25  ;;  %v7458_v25 = vld [vmem:[%s10416_s7 + $0x580] ss:$28 sps:$4 sm:$0xff]  }
 0x34c   :  { %5670 = vmatprep.subr.bf16.mxu0 %v7394_v26  ;;  %5711 = vmatprep.subr.bf16.mxu1 %v7397_v28  ;;  %v7461_v26 = vld [vmem:[%s10416_s7 + $0x900] ss:$28 sps:$4 sm:$0xff]  }
 0x34f   :  { %5671 = vmatpush1.bf16.msra.mxu0 %v7392_v31  ;;  %5712 = vmatpush1.bf16.msra.mxu1 %v7395_v32  ;;  %v7466_v31 = vld [vmem:[%s10416_s7 + $0x54c] ss:$28 sps:$4 sm:$0xff]  }
 0x350   :  { %5672 = vmatprep.subr.bf16.mxu0 %v7400_v33  ;;  %5713 = vmatprep.subr.bf16.mxu1 %v7403_v34  ;;  %v7469_v32 = vld [vmem:[%s10416_s7 + $0x8cc] ss:$28 sps:$4 sm:$0xff]   ;;  %v9654_v33 = vld [vmem:[%s10417_s8] sm:$0x7f] }
 0x353   :  { %5673 = vmatpush1.bf16.msra.mxu0 %v7398_v35  ;;  %5714 = vmatpush1.bf16.msra.mxu1 %v7401_v36  ;;  %v7464_v35 = vld [vmem:[%s10416_s7 + $0x548] ss:$28 sps:$4 sm:$0xff]  }
 0x354   :  { %5674 = vmatprep.subr.bf16.mxu0 %v7406_v37  ;;  %5715 = vmatprep.subr.bf16.mxu1 %v7409_v38  ;;  %v7467_v36 = vld [vmem:[%s10416_s7 + $0x8c8] ss:$28 sps:$4 sm:$0xff]   ;;  %v7472_v38 = vld [vmem:[%s10416_s7 + $0xc14] ss:$28 sps:$4 sm:$0xff]  }
 0x357   :  { %5675 = vmatpush1.bf16.msra.mxu0 %v7404_v39  ;;  %5716 = vmatpush1.bf16.msra.mxu1 %v7407_v40  ;;  %v7475_v39 = vld [vmem:[%s10416_s7 + $0x19c] ss:$28 sps:$4 sm:$0xff]   ;;  %v3123_v40 = vrot.slane %v9654_v33, %v8124_v29 }
 0x358   :  { %5676 = vmatprep.subr.bf16.mxu0 %v7412_v41  ;;  %5717 = vmatprep.subr.bf16.mxu1 %v7415_v43  ;;  %v3127_v41 = vrot.slane %v9654_v33, %v8127_v30  ;;  %v7470_v43 = vld [vmem:[%s10416_s7 + $0xc10] ss:$28 sps:$4 sm:$0xff]   ;;  %v7478_v29 = vld [vmem:[%s10416_s7 + $0xbdc] ss:$28 sps:$4 sm:$0xff]   ;;  %v7481_v30 = vld [vmem:[%s10416_s7 + $0x164] ss:$28 sps:$4 sm:$0xff]  }
 0x35b   :  { %5677 = vmatpush1.bf16.msra.mxu0 %v7410_v45  ;;  %5718 = vmatpush1.bf16.msra.mxu1 %v7413_v46  ;;  %v7473_v45 = vld [vmem:[%s10416_s7 + $0x198] ss:$28 sps:$4 sm:$0xff]  }
 0x35c   :  { %5678 = vmatprep.subr.bf16.mxu0 %v7418_v50  ;;  %5719 = vmatprep.subr.bf16.mxu1 %v7421_v52 }
 0x35f   :  { %5679 = vmatpush1.bf16.msra.mxu0 %v7416_v54  ;;  %5720 = vmatpush1.bf16.msra.mxu1 %v7419_v55  ;;  %v7476_v55 = vld [vmem:[%s10416_s7 + $0xbd8] ss:$28 sps:$4 sm:$0xff]  }
 0x360   :  { %5680 = vmatprep.subr.bf16.mxu0 %v7424_v56  ;;  %5721 = vmatprep.subr.bf16.mxu1 %v7427_v57  ;;  %v7479_v57 = vld [vmem:[%s10416_s7 + $0x160] ss:$28 sps:$4 sm:$0xff]  }
 0x363   :  { %5681 = vmatpush2.bf16.msra.mxu0 %v7422_v58  ;;  %5722 = vmatpush2.bf16.msra.mxu1 %v7425_v59  ;;  %v7484_v58 = vld [vmem:[%s10416_s7 + $0xba4] ss:$28 sps:$4 sm:$0xff]  }
 0x364   :  { %5682 = vmatprep.subr.bf16.mxu0 %v7430_v60  ;;  %5723 = vmatprep.subr.bf16.mxu1 %v7433_v61  ;;  %v7487_v60 = vld [vmem:[%s10416_s7 + $0x12c] ss:$28 sps:$4 sm:$0xff]  }
 0x367   :  { %5683 = vmatpush2.bf16.msra.mxu0 %v7428_v63  ;;  %5724 = vmatpush2.bf16.msra.mxu1 %v7431_v0  ;;  %v7482_v63 = vld [vmem:[%s10416_s7 + $0xba0] ss:$28 sps:$4 sm:$0xff]  }
 0x368   :  { %5684 = vmatprep.subr.bf16.mxu0 %v7436_v1  ;;  %5725 = vmatprep.subr.bf16.mxu1 %v7439_v2  ;;  %v7485_v1 = vld [vmem:[%s10416_s7 + $0x128] ss:$28 sps:$4 sm:$0xff]  }
 0x369   :  { %v7490_v2 = vld [vmem:[%s10416_s7 + $0xb6c] ss:$28 sps:$4 sm:$0xff]  }
 0x36b   :  { %5685 = vmatpush2.bf16.msra.mxu0 %v7434_v12  ;;  %5726 = vmatpush2.bf16.msra.mxu1 %v7437_v62  ;;  %v7493_v12 = vld [vmem:[%s10416_s7 + $0xf4] ss:$28 sps:$4 sm:$0xff]   ;;  %v7488_v62 = vld [vmem:[%s10416_s7 + $0xb68] ss:$28 sps:$4 sm:$0xff]  }
 0x36c   :  { %5686 = vmatprep.subr.bf16.mxu0 %v7442_v5  ;;  %5727 = vmatprep.subr.bf16.mxu1 %v7445_v13  ;;  %v7491_v5 = vld [vmem:[%s10416_s7 + $0xf0] ss:$28 sps:$4 sm:$0xff]  }
 0x36d   :  { %v7496_v13 = vld [vmem:[%s10416_s7 + $0xb34] ss:$28 sps:$4 sm:$0xff]  }
 0x36f   :  { %5687 = vmatpush2.bf16.msra.mxu0 %v7440_v6  ;;  %5728 = vmatpush2.bf16.msra.mxu1 %v7443_v14  ;;  %v7499_v6 = vld [vmem:[%s10416_s7 + $0xbc] ss:$28 sps:$4 sm:$0xff]   ;;  %v7494_v14 = vld [vmem:[%s10416_s7 + $0xb30] ss:$28 sps:$4 sm:$0xff]  }
 0x370   :  { %5688 = vmatprep.subr.bf16.mxu0 %v7448_v7  ;;  %5729 = vmatprep.subr.bf16.mxu1 %v7451_v15  ;;  %v7497_v7 = vld [vmem:[%s10416_s7 + $0xb8] ss:$28 sps:$4 sm:$0xff]  }
 0x371   :  { %v7502_v15 = vld [vmem:[%s10416_s7 + $0xafc] ss:$28 sps:$4 sm:$0xff]  }
 0x373   :  { %5689 = vmatpush2.bf16.msra.mxu0 %v7446_v9  ;;  %5730 = vmatpush2.bf16.msra.mxu1 %v7449_v11  ;;  %v7505_v9 = vld [vmem:[%s10416_s7 + $0x84] ss:$28 sps:$4 sm:$0xff]   ;;  %v7500_v11 = vld [vmem:[%s10416_s7 + $0xaf8] ss:$28 sps:$4 sm:$0xff]  }
 0x374   :  { %5690 = vmatprep.subr.bf16.mxu0 %v7454_v4  ;;  %5731 = vmatprep.subr.bf16.mxu1 %v7457_v17  ;;  %v7503_v4 = vld [vmem:[%s10416_s7 + $0x80] ss:$28 sps:$4 sm:$0xff]  }
 0x375   :  { %v7508_v17 = vld [vmem:[%s10416_s7 + $0xac4] ss:$28 sps:$4 sm:$0xff]  }
 0x376   :  { %v5493_v23 = vpop.f32.mrf.mxu1 }
 0x377   :  { %5691 = vmatpush2.bf16.msra.mxu0 %v7452_v18  ;;  %5732 = vmatpush2.bf16.msra.mxu1 %v7455_v19  ;;  %v5494_v46 = vadd.f32 %v5493_v23, %v3123_v40  ;;  %v7511_v18 = vld [vmem:[%s10416_s7 + $0x4c] ss:$28 sps:$4 sm:$0xff]   ;;  %v7506_v19 = vld [vmem:[%s10416_s7 + $0xac0] ss:$28 sps:$4 sm:$0xff]   ;;  %v7517_v23 = vld [vmem:[%s10416_s7 + $0x14] ss:$28 sps:$4 sm:$0xff]  }
 0x378   :  { %v5495_v28 = vpop.f32.mrf.mxu1  ;;  %5692 = vmatprep.subr.bf16.mxu0 %v7460_v20  ;;  %5733 = vmatprep.subr.bf16.mxu1 %v7463_v21  ;;  %v7509_v20 = vld [vmem:[%s10416_s7 + $0x48] ss:$28 sps:$4 sm:$0xff]  }
 0x379   :  { %v5496_v52 = vadd.f32 %v5495_v28, %v3127_v41  ;;  %v7514_v21 = vld [vmem:[%s10416_s7 + $0xa8c] ss:$28 sps:$4 sm:$0xff]   ;;  %v7520_v28 = vld [vmem:[%s10416_s7 + $0xdd4] ss:$28 sps:$4 sm:$0xff]   ;;  %v7530_v41 = vld [vmem:[%s10416_s7 + $0xd60] ss:$28 sps:$4 sm:$0xff]  }
 0x37a   :  { %v5497_v34 = vpop.f32.mrf.mxu1  ;;  %v7535_v40 = vld [vmem:[%s10416_s7 + $0x2ec] ss:$28 sps:$4 sm:$0xff]  }
 0x37b   :  { %5693 = vmatpush2.bf16.msra.mxu0 %v7458_v25  ;;  %5734 = vmatpush2.bf16.msra.mxu1 %v7461_v26  ;;  %v7512_v25 = vld [vmem:[%s10416_s7 + $0xa88] ss:$28 sps:$4 sm:$0xff]   ;;  %v7515_v26 = vld [vmem:[%s10416_s7 + $0x10] ss:$28 sps:$4 sm:$0xff]   ;;  %v7521_v34 = vld [vmem:[%s10416_s7 + $0x358] ss:$28 sps:$4 sm:$0xff]  }
 0x37c   :  { %v5498_v37 = vpop.f32.mrf.mxu1  ;;  %5694 = vmatprep.subr.bf16.mxu0 %v7466_v31  ;;  %5735 = vmatprep.subr.bf16.mxu1 %v7469_v32  ;;  %v7523_v31 = vld [vmem:[%s10416_s7 + $0x35c] ss:$28 sps:$4 sm:$0xff]   ;;  %v7518_v32 = vld [vmem:[%s10416_s7 + $0xdd0] ss:$28 sps:$4 sm:$0xff]  }
 0x37d   :  { %v7524_v37 = vld [vmem:[%s10416_s7 + $0xd98] ss:$28 sps:$4 sm:$0xff]  }
 0x37f   :  { %5695 = vmatpush2.bf16.msra.mxu0 %v7464_v35  ;;  %5736 = vmatpush2.bf16.msra.mxu1 %v7467_v36  ;;  %v7526_v35 = vld [vmem:[%s10416_s7 + $0xd9c] ss:$28 sps:$4 sm:$0xff]   ;;  %v7529_v36 = vld [vmem:[%s10416_s7 + $0x324] ss:$28 sps:$4 sm:$0xff]  }
 0x380   :  { %5746 = vmatprep.subr.bf16.mxu0 %v7472_v38  ;;  %5787 = vmatprep.subr.bf16.mxu1 %v7475_v39  ;;  %v7527_v38 = vld [vmem:[%s10416_s7 + $0x320] ss:$28 sps:$4 sm:$0xff]  }
 0x381   :  { %v7532_v39 = vld [vmem:[%s10416_s7 + $0xd64] ss:$28 sps:$4 sm:$0xff]  }
 0x382   :  { %5697 = vmatmul.mubr.bf16.vlgmr.msra.gmra.mxu0 %v9173_v53  ;;  %5738 = vmatmul.mubr.bf16.vlgmr.msra.gmra.mxu1 %v9358_v10  ;;  %v5534_v50 = vpop.f32.mrf.mxu0 }
 0x383   :  { %v9686_v54 = vadd.f32 %v5534_v50, %v5494_v46  ;;  %5747 = vmatpush1.bf16.msra.mxu0 %v7470_v43  ;;  %5778 = vmatprep.mubr.bf16.mxu0 %v9462_v8  ;;  %v7533_v43 = vld [vmem:[%s10416_s7 + $0x2e8] ss:$28 sps:$4 sm:$0xff]   ;;  %v7541_v46 = vld [vmem:[%s10416_s7 + $0x2b4] ss:$28 sps:$4 sm:$0xff]  }
 0x384   :  { %5788 = vmatpush1.bf16.msra.mxu1 %v7473_v45  ;;  %5819 = vmatprep.mubr.bf16.mxu1 %v8977_v22  ;;  %v5536_v56 = vpop.f32.mrf.mxu0  ;;  %v7538_v45 = vld [vmem:[%s10416_s7 + $0xd2c] ss:$28 sps:$4 sm:$0xff]   ;;  %v7544_v50 = vld [vmem:[%s10416_s7 + $0xcf4] ss:$28 sps:$4 sm:$0xff]  }
 0x385   :  { %v9699_v59 = vadd.f32 %v5536_v56, %v5496_v52  ;;  %5748 = vmatprep.subr.bf16.mxu0 %v7478_v29  ;;  %5789 = vmatprep.subr.bf16.mxu1 %v7481_v30  ;;  %v7536_v29 = vld [vmem:[%s10416_s7 + $0xd28] ss:$28 sps:$4 sm:$0xff]   ;;  %v7539_v30 = vld [vmem:[%s10416_s7 + $0x2b0] ss:$28 sps:$4 sm:$0xff]   ;;  %v7547_v52 = vld [vmem:[%s10416_s7 + $0x27c] ss:$28 sps:$4 sm:$0xff]  }
 0x386   :  { %v5538_v61 = vpop.f32.mrf.mxu0  ;;  %v7545_v56 = vld [vmem:[%s10416_s7 + $0x278] ss:$28 sps:$4 sm:$0xff]  }
 0x387   :  { %5749 = vmatpush1.bf16.msra.mxu0 %v7476_v55  ;;  %v7542_v55 = vld [vmem:[%s10416_s7 + $0xcf0] ss:$28 sps:$4 sm:$0xff]   ;;  %v7551_v61 = vld [vmem:[%s10416_s7 + $0x240] ss:$28 sps:$4 sm:$0xff]  }
 0x388   :  { %5790 = vmatpush1.bf16.msra.mxu1 %v7479_v57  ;;  %v5539_v0 = vpop.f32.mrf.mxu0  ;;  %5750 = vmatprep.subr.bf16.mxu0 %v7484_v58  ;;  %v7550_v57 = vld [vmem:[%s10416_s7 + $0xcbc] ss:$28 sps:$4 sm:$0xff]   ;;  %v7553_v58 = vld [vmem:[%s10416_s7 + $0x244] ss:$28 sps:$4 sm:$0xff]  }
 0x389   :  { %5791 = vmatprep.subr.bf16.mxu1 %v7487_v60  ;;  %v7548_v60 = vld [vmem:[%s10416_s7 + $0xcb8] ss:$28 sps:$4 sm:$0xff]   ;;  %v7559_v0 = vld [vmem:[%s10416_s7 + $0x20c] ss:$28 sps:$4 sm:$0xff]  }
 0x38b   :  { %5751 = vmatpush1.bf16.msra.mxu0 %v7482_v63  ;;  %v7556_v63 = vld [vmem:[%s10416_s7 + $0xc84] ss:$28 sps:$4 sm:$0xff]  }
 0x38c   :  { %5792 = vmatpush1.bf16.msra.mxu1 %v7485_v1  ;;  %5752 = vmatprep.subr.bf16.mxu0 %v7490_v2  ;;  %v7554_v1 = vld [vmem:[%s10416_s7 + $0xc80] ss:$28 sps:$4 sm:$0xff]   ;;  %v7557_v2 = vld [vmem:[%s10416_s7 + $0x208] ss:$28 sps:$4 sm:$0xff]  }
 0x38d   :  { %5793 = vmatprep.subr.bf16.mxu1 %v7493_v12  ;;  %v7562_v12 = vld [vmem:[%s10416_s7 + $0xc4c] ss:$28 sps:$4 sm:$0xff]  }
 0x38f   :  { %5753 = vmatpush1.bf16.msra.mxu0 %v7488_v62  ;;  %v7565_v62 = vld [vmem:[%s10416_s7 + $0x1d4] ss:$28 sps:$4 sm:$0xff]  }
 0x390   :  { %5794 = vmatpush1.bf16.msra.mxu1 %v7491_v5  ;;  %5754 = vmatprep.subr.bf16.mxu0 %v7496_v13  ;;  %v7560_v5 = vld [vmem:[%s10416_s7 + $0xc48] ss:$28 sps:$4 sm:$0xff]   ;;  %v7563_v13 = vld [vmem:[%s10416_s7 + $0x1d0] ss:$28 sps:$4 sm:$0xff]  }
 0x391   :  { %5795 = vmatprep.subr.bf16.mxu1 %v7499_v6  ;;  %v7568_v6 = vld [vmem:[%s10416_s7 + $0x51c] ss:$28 sps:$4 sm:$0xff]  }
 0x393   :  { %5755 = vmatpush1.bf16.msra.mxu0 %v7494_v14  ;;  %v7571_v14 = vld [vmem:[%s10416_s7 + $0x89c] ss:$28 sps:$4 sm:$0xff]  }
 0x394   :  { %5796 = vmatpush1.bf16.msra.mxu1 %v7497_v7  ;;  %5756 = vmatprep.subr.bf16.mxu0 %v7502_v15  ;;  %v7566_v7 = vld [vmem:[%s10416_s7 + $0x518] ss:$28 sps:$4 sm:$0xff]  }
 0x395   :  { %5797 = vmatprep.subr.bf16.mxu1 %v7505_v9  ;;  %v7569_v15 = vld [vmem:[%s10416_s7 + $0x898] ss:$28 sps:$4 sm:$0xff]   ;;  %v7574_v9 = vld [vmem:[%s10416_s7 + $0x4e4] ss:$28 sps:$4 sm:$0xff]  }
 0x397   :  { %5757 = vmatpush1.bf16.msra.mxu0 %v7500_v11 }
 0x398   :  { %5798 = vmatpush1.bf16.msra.mxu1 %v7503_v4  ;;  %5758 = vmatprep.subr.bf16.mxu0 %v7508_v17  ;;  %v7577_v4 = vld [vmem:[%s10416_s7 + $0x864] ss:$28 sps:$4 sm:$0xff]  }
 0x399   :  { %5799 = vmatprep.subr.bf16.mxu1 %v7511_v18  ;;  %v7572_v17 = vld [vmem:[%s10416_s7 + $0x4e0] ss:$28 sps:$4 sm:$0xff]  }
 0x39b   :  { %5759 = vmatpush1.bf16.msra.mxu0 %v7506_v19  ;;  %v7575_v19 = vld [vmem:[%s10416_s7 + $0x860] ss:$28 sps:$4 sm:$0xff]  }
 0x39c   :  { %5800 = vmatpush1.bf16.msra.mxu1 %v7509_v20  ;;  %5760 = vmatprep.subr.bf16.mxu0 %v7514_v21  ;;  %v7580_v20 = vld [vmem:[%s10416_s7 + $0x4ac] ss:$28 sps:$4 sm:$0xff]  }
 0x39d   :  { %5801 = vmatprep.subr.bf16.mxu1 %v7517_v23  ;;  %v7583_v21 = vld [vmem:[%s10416_s7 + $0x82c] ss:$28 sps:$4 sm:$0xff]  }
 0x39f   :  { %5761 = vmatpush1.bf16.msra.mxu0 %v7512_v25  ;;  %v7578_v25 = vld [vmem:[%s10416_s7 + $0x4a8] ss:$28 sps:$4 sm:$0xff]  }
 0x3a0   :  { %5802 = vmatpush1.bf16.msra.mxu1 %v7515_v26  ;;  %5762 = vmatprep.subr.bf16.mxu0 %v7520_v28  ;;  %v7581_v28 = vld [vmem:[%s10416_s7 + $0x828] ss:$28 sps:$4 sm:$0xff]  }
 0x3a1   :  { %5803 = vmatprep.subr.bf16.mxu1 %v7523_v31  ;;  %v7586_v31 = vld [vmem:[%s10416_s7 + $0x474] ss:$28 sps:$4 sm:$0xff]  }
 0x3a3   :  { %5763 = vmatpush2.bf16.msra.mxu0 %v7518_v32  ;;  %v7589_v32 = vld [vmem:[%s10416_s7 + $0x7f4] ss:$28 sps:$4 sm:$0xff]  }
 0x3a4   :  { %5804 = vmatpush2.bf16.msra.mxu1 %v7521_v34  ;;  %5764 = vmatprep.subr.bf16.mxu0 %v7526_v35  ;;  %v7584_v34 = vld [vmem:[%s10416_s7 + $0x470] ss:$28 sps:$4 sm:$0xff]  }
 0x3a5   :  { %5805 = vmatprep.subr.bf16.mxu1 %v7529_v36  ;;  %v7587_v35 = vld [vmem:[%s10416_s7 + $0x7f0] ss:$28 sps:$4 sm:$0xff]   ;;  %v7592_v36 = vld [vmem:[%s10416_s7 + $0x43c] ss:$28 sps:$4 sm:$0xff]  }
 0x3a7   :  { %5765 = vmatpush2.bf16.msra.mxu0 %v7524_v37  ;;  %v7595_v37 = vld [vmem:[%s10416_s7 + $0x7bc] ss:$28 sps:$4 sm:$0xff]  }
 0x3a8   :  { %5806 = vmatpush2.bf16.msra.mxu1 %v7527_v38  ;;  %5766 = vmatprep.subr.bf16.mxu0 %v7532_v39  ;;  %v7590_v38 = vld [vmem:[%s10416_s7 + $0x438] ss:$28 sps:$4 sm:$0xff]  }
 0x3a9   :  { %5807 = vmatprep.subr.bf16.mxu1 %v7535_v40  ;;  %v7593_v39 = vld [vmem:[%s10416_s7 + $0x7b8] ss:$28 sps:$4 sm:$0xff]   ;;  %v7598_v40 = vld [vmem:[%s10416_s7 + $0x404] ss:$28 sps:$4 sm:$0xff]  }
 0x3ab   :  { %5767 = vmatpush2.bf16.msra.mxu0 %v7530_v41  ;;  %v7601_v41 = vld [vmem:[%s10416_s7 + $0x784] ss:$28 sps:$4 sm:$0xff]  }
 0x3ac   :  { %5808 = vmatpush2.bf16.msra.mxu1 %v7533_v43  ;;  %5768 = vmatprep.subr.bf16.mxu0 %v7538_v45  ;;  %v7596_v43 = vld [vmem:[%s10416_s7 + $0x400] ss:$28 sps:$4 sm:$0xff]  }
 0x3ad   :  { %5809 = vmatprep.subr.bf16.mxu1 %v7541_v46  ;;  %v7599_v45 = vld [vmem:[%s10416_s7 + $0x780] ss:$28 sps:$4 sm:$0xff]   ;;  %v7604_v46 = vld [vmem:[%s10416_s7 + $0x3cc] ss:$28 sps:$4 sm:$0xff]  }
 0x3af   :  { %5769 = vmatpush2.bf16.msra.mxu0 %v7536_v29  ;;  %v7607_v29 = vld [vmem:[%s10416_s7 + $0x74c] ss:$28 sps:$4 sm:$0xff]  }
 0x3b0   :  { %5810 = vmatpush2.bf16.msra.mxu1 %v7539_v30  ;;  %5770 = vmatprep.subr.bf16.mxu0 %v7544_v50  ;;  %v7602_v30 = vld [vmem:[%s10416_s7 + $0x3c8] ss:$28 sps:$4 sm:$0xff]  }
 0x3b1   :  { %5811 = vmatprep.subr.bf16.mxu1 %v7547_v52  ;;  %v7605_v50 = vld [vmem:[%s10416_s7 + $0x748] ss:$28 sps:$4 sm:$0xff]   ;;  %v7610_v52 = vld [vmem:[%s10416_s7 + $0x394] ss:$28 sps:$4 sm:$0xff]  }
 0x3b3   :  { %5771 = vmatpush2.bf16.msra.mxu0 %v7542_v55  ;;  %v7613_v55 = vld [vmem:[%s10416_s7 + $0x714] ss:$28 sps:$4 sm:$0xff]  }
 0x3b4   :  { %5812 = vmatpush2.bf16.msra.mxu1 %v7545_v56  ;;  %5772 = vmatprep.subr.bf16.mxu0 %v7550_v57  ;;  %v7608_v56 = vld [vmem:[%s10416_s7 + $0x390] ss:$28 sps:$4 sm:$0xff]  }
 0x3b5   :  { %5813 = vmatprep.subr.bf16.mxu1 %v7553_v58  ;;  %v7611_v57 = vld [vmem:[%s10416_s7 + $0x710] ss:$28 sps:$4 sm:$0xff]   ;;  %v7616_v58 = vld [vmem:[%s10416_s7 + $0x6dc] ss:$28 sps:$4 sm:$0xff]  }
 0x3b7   :  { %5773 = vmatpush2.bf16.msra.mxu0 %v7548_v60  ;;  %v7619_v60 = vld [vmem:[%s10416_s7 + $0xa5c] ss:$28 sps:$4 sm:$0xff]  }
 0x3b8   :  { %5814 = vmatpush2.bf16.msra.mxu1 %v7551_v61  ;;  %5774 = vmatprep.subr.bf16.mxu0 %v7556_v63  ;;  %v7614_v61 = vld [vmem:[%s10416_s7 + $0x6d8] ss:$28 sps:$4 sm:$0xff]  }
 0x3b9   :  { %5815 = vmatprep.subr.bf16.mxu1 %v7559_v0  ;;  %v7617_v63 = vld [vmem:[%s10416_s7 + $0xa58] ss:$28 sps:$4 sm:$0xff]   ;;  %v7622_v0 = vld [vmem:[%s10416_s7 + $0x6a4] ss:$28 sps:$4 sm:$0xff]  }
 0x3bb   :  { %5775 = vmatpush2.bf16.msra.mxu0 %v7554_v1  ;;  %v7625_v1 = vld [vmem:[%s10416_s7 + $0xa24] ss:$28 sps:$4 sm:$0xff]  }
 0x3bc   :  { %5816 = vmatpush2.bf16.msra.mxu1 %v7557_v2  ;;  %5776 = vmatprep.subr.bf16.mxu0 %v7562_v12  ;;  %v7620_v2 = vld [vmem:[%s10416_s7 + $0x6a0] ss:$28 sps:$4 sm:$0xff]  }
 0x3bd   :  { %5817 = vmatprep.subr.bf16.mxu1 %v7565_v62  ;;  %v7623_v12 = vld [vmem:[%s10416_s7 + $0xa20] ss:$28 sps:$4 sm:$0xff]   ;;  %v7628_v62 = vld [vmem:[%s10416_s7 + $0x66c] ss:$28 sps:$4 sm:$0xff]  }
 0x3bf   :  { %5777 = vmatpush2.bf16.msra.mxu0 %v7560_v5  ;;  %v7631_v5 = vld [vmem:[%s10416_s7 + $0x9ec] ss:$28 sps:$4 sm:$0xff]  }
 0x3c0   :  { %5818 = vmatpush2.bf16.msra.mxu1 %v7563_v13  ;;  %5828 = vmatprep.subr.bf16.mxu0 %v7568_v6  ;;  %v7626_v13 = vld [vmem:[%s10416_s7 + $0x668] ss:$28 sps:$4 sm:$0xff]  }
 0x3c1   :  { %5869 = vmatprep.subr.bf16.mxu1 %v7571_v14  ;;  %v7629_v6 = vld [vmem:[%s10416_s7 + $0x9e8] ss:$28 sps:$4 sm:$0xff]   ;;  %v7634_v14 = vld [vmem:[%s10416_s7 + $0x634] ss:$28 sps:$4 sm:$0xff]  }
 0x3c2   :  { %5779 = vmatmul.mubr.bf16.vlgmr.msra.gmra.mxu0 %v9470_v16  ;;  %v9882_v11 = vpop.f32.mrf.mxu1 }
 0x3c3   :  { %5820 = vmatmul.mubr.bf16.vlgmr.msra.gmra.mxu1 %v9145_v24  ;;  %5829 = vmatpush1.bf16.msra.mxu0 %v7566_v7  ;;  %v7637_v7 = vld [vmem:[%s10416_s7 + $0x9b4] ss:$28 sps:$4 sm:$0xff]  }
 0x3c4   :  { %5860 = vmatprep.mubr.bf16.mxu0 %v9165_v48  ;;  %5870 = vmatpush1.bf16.msra.mxu1 %v7569_v15  ;;  %v9892_v18 = vpop.f32.mrf.mxu1  ;;  %v7632_v15 = vld [vmem:[%s10416_s7 + $0x630] ss:$28 sps:$4 sm:$0xff]  }
 0x3c5   :  { %5901 = vmatprep.mubr.bf16.mxu1 %v9353_v3  ;;  %5830 = vmatprep.subr.bf16.mxu0 %v7574_v9  ;;  %v7635_v9 = vld [vmem:[%s10416_s7 + $0x9b0] ss:$28 sps:$4 sm:$0xff]  }
 0x3c6   :  { %5871 = vmatprep.subr.bf16.mxu1 %v7577_v4  ;;  %v5579_v23 = vpop.f32.mrf.mxu1  ;;  %v7640_v4 = vld [vmem:[%s10416_s7 + $0x5fc] ss:$28 sps:$4 sm:$0xff]  }
 0x3c7   :  { %5831 = vmatpush1.bf16.msra.mxu0 %v7572_v17  ;;  %v7643_v17 = vld [vmem:[%s10416_s7 + $0x97c] ss:$28 sps:$4 sm:$0xff]   ;;  %v7649_v23 = vld [vmem:[%s10416_s7 + $0x944] ss:$28 sps:$4 sm:$0xff]  }
 0x3c8   :  { %5872 = vmatpush1.bf16.msra.mxu1 %v7575_v19  ;;  %v5580_v26 = vpop.f32.mrf.mxu1  ;;  %5832 = vmatprep.subr.bf16.mxu0 %v7580_v20  ;;  %v7638_v19 = vld [vmem:[%s10416_s7 + $0x5f8] ss:$28 sps:$4 sm:$0xff]  }
 0x3c9   :  { %5873 = vmatprep.subr.bf16.mxu1 %v7583_v21  ;;  %v7641_v20 = vld [vmem:[%s10416_s7 + $0x978] ss:$28 sps:$4 sm:$0xff]   ;;  %v7646_v21 = vld [vmem:[%s10416_s7 + $0x5c4] ss:$28 sps:$4 sm:$0xff]  }
 0x3ca   :  { %v7647_v26 = vld [vmem:[%s10416_s7 + $0x940] ss:$28 sps:$4 sm:$0xff]  }
 0x3cb   :  { %5833 = vmatpush1.bf16.msra.mxu0 %v7578_v25  ;;  %v7644_v25 = vld [vmem:[%s10416_s7 + $0x5c0] ss:$28 sps:$4 sm:$0xff]  }
 0x3cc   :  { %5874 = vmatpush1.bf16.msra.mxu1 %v7581_v28  ;;  %5834 = vmatprep.subr.bf16.mxu0 %v7586_v31  ;;  %v7652_v28 = vld [vmem:[%s10416_s7 + $0x58c] ss:$28 sps:$4 sm:$0xff]  }
 0x3cd   :  { %5875 = vmatprep.subr.bf16.mxu1 %v7589_v32  ;;  %v7655_v31 = vld [vmem:[%s10416_s7 + $0x90c] ss:$28 sps:$4 sm:$0xff]  }
 0x3ce   :  { %v7650_v32 = vld [vmem:[%s10416_s7 + $0x588] ss:$28 sps:$4 sm:$0xff]  }
 0x3cf   :  { %5835 = vmatpush1.bf16.msra.mxu0 %v7584_v34  ;;  %v7653_v34 = vld [vmem:[%s10416_s7 + $0x908] ss:$28 sps:$4 sm:$0xff]  }
 0x3d0   :  { %5876 = vmatpush1.bf16.msra.mxu1 %v7587_v35  ;;  %5836 = vmatprep.subr.bf16.mxu0 %v7592_v36  ;;  %v7658_v35 = vld [vmem:[%s10416_s7 + $0x554] ss:$28 sps:$4 sm:$0xff]  }
 0x3d1   :  { %5877 = vmatprep.subr.bf16.mxu1 %v7595_v37  ;;  %v7661_v36 = vld [vmem:[%s10416_s7 + $0x8d4] ss:$28 sps:$4 sm:$0xff]  }
 0x3d2   :  { %v7656_v37 = vld [vmem:[%s10416_s7 + $0x550] ss:$28 sps:$4 sm:$0xff]  }
 0x3d3   :  { %5837 = vmatpush1.bf16.msra.mxu0 %v7590_v38  ;;  %v7659_v38 = vld [vmem:[%s10416_s7 + $0x8d0] ss:$28 sps:$4 sm:$0xff]  }
 0x3d4   :  { %5878 = vmatpush1.bf16.msra.mxu1 %v7593_v39  ;;  %5838 = vmatprep.subr.bf16.mxu0 %v7598_v40  ;;  %v7664_v39 = vld [vmem:[%s10416_s7 + $0xc1c] ss:$28 sps:$4 sm:$0xff]  }
 0x3d5   :  { %5879 = vmatprep.subr.bf16.mxu1 %v7601_v41  ;;  %v7665_v40 = vld [vmem:[%s10416_s7 + $0x360] ss:$28 sps:$4 sm:$0xff]   ;;  %v7662_v41 = vld [vmem:[%s10416_s7 + $0xc18] ss:$28 sps:$4 sm:$0xff]  }
 0x3d7   :  { %5839 = vmatpush1.bf16.msra.mxu0 %v7596_v43  ;;  %v7666_v43 = vld [vmem:[%s10416_s7 + $0x1a0] ss:$28 sps:$4 sm:$0xff]  }
 0x3d8   :  { %5880 = vmatpush1.bf16.msra.mxu1 %v7599_v45  ;;  %5840 = vmatprep.subr.bf16.mxu0 %v7604_v46  ;;  %v5576_v45 = vadd.f32 %v9882_v11, %v9686_v54  ;;  %v7669_v46 = vld [vmem:[%s10416_s7 + $0xbe4] ss:$28 sps:$4 sm:$0xff]  }
 0x3d9   :  { %5881 = vmatprep.subr.bf16.mxu1 %v7607_v29  ;;  %v7667_v11 = vld [vmem:[%s10416_s7 + $0xbe0] ss:$28 sps:$4 sm:$0xff]  }
 0x3db   :  { %5841 = vmatpush1.bf16.msra.mxu0 %v7602_v30 }
 0x3dc   :  { %5882 = vmatpush1.bf16.msra.mxu1 %v7605_v50  ;;  %5842 = vmatprep.subr.bf16.mxu0 %v7610_v52  ;;  %v7670_v50 = vld [vmem:[%s10416_s7 + $0x328] ss:$28 sps:$4 sm:$0xff]   ;;  %v5578_v52 = vadd.f32 %v9892_v18, %v9699_v59 }
 0x3dd   :  { %5883 = vmatprep.subr.bf16.mxu1 %v7613_v55  ;;  %v7674_v59 = vld [vmem:[%s10416_s7 + $0xbac] ss:$28 sps:$4 sm:$0xff]  }
 0x3df   :  { %5843 = vmatpush1.bf16.msra.mxu0 %v7608_v56 }
 0x3e0   :  { %5884 = vmatpush1.bf16.msra.mxu1 %v7611_v57  ;;  %5844 = vmatprep.subr.bf16.mxu0 %v7616_v58  ;;  %v7671_v57 = vld [vmem:[%s10416_s7 + $0x168] ss:$28 sps:$4 sm:$0xff]   ;;  %v7675_v58 = vld [vmem:[%s10416_s7 + $0x2f0] ss:$28 sps:$4 sm:$0xff]  }
 0x3e1   :  { %5885 = vmatprep.subr.bf16.mxu1 %v7619_v60 }
 0x3e3   :  { %5845 = vmatpush2.bf16.msra.mxu0 %v7614_v61 }
 0x3e4   :  { %5886 = vmatpush2.bf16.msra.mxu1 %v7617_v63  ;;  %5846 = vmatprep.subr.bf16.mxu0 %v7622_v0  ;;  %v7672_v63 = vld [vmem:[%s10416_s7 + $0xba8] ss:$28 sps:$4 sm:$0xff]  }
 0x3e5   :  { %5887 = vmatprep.subr.bf16.mxu1 %v7625_v1 }
 0x3e7   :  { %5847 = vmatpush2.bf16.msra.mxu0 %v7620_v2  ;;  %v7679_v2 = vld [vmem:[%s10416_s7 + $0xb74] ss:$28 sps:$4 sm:$0xff]  }
 0x3e8   :  { %5888 = vmatpush2.bf16.msra.mxu1 %v7623_v12  ;;  %5848 = vmatprep.subr.bf16.mxu0 %v7628_v62  ;;  %v7680_v12 = vld [vmem:[%s10416_s7 + $0x2b8] ss:$28 sps:$4 sm:$0xff]   ;;  %v7677_v62 = vld [vmem:[%s10416_s7 + $0xb70] ss:$28 sps:$4 sm:$0xff]  }
 0x3e9   :  { %5889 = vmatprep.subr.bf16.mxu1 %v7631_v5  ;;  %v7681_v5 = vld [vmem:[%s10416_s7 + $0xf8] ss:$28 sps:$4 sm:$0xff]  }
 0x3eb   :  { %5849 = vmatpush2.bf16.msra.mxu0 %v7626_v13  ;;  %v7684_v13 = vld [vmem:[%s10416_s7 + $0xb3c] ss:$28 sps:$4 sm:$0xff]  }
 0x3ec   :  { %5890 = vmatpush2.bf16.msra.mxu1 %v7629_v6  ;;  %5850 = vmatprep.subr.bf16.mxu0 %v7634_v14  ;;  %v7685_v6 = vld [vmem:[%s10416_s7 + $0x280] ss:$28 sps:$4 sm:$0xff]   ;;  %v7682_v14 = vld [vmem:[%s10416_s7 + $0xb38] ss:$28 sps:$4 sm:$0xff]  }
 0x3ed   :  { %5891 = vmatprep.subr.bf16.mxu1 %v7637_v7  ;;  %v7686_v7 = vld [vmem:[%s10416_s7 + $0xc0] ss:$28 sps:$4 sm:$0xff]  }
 0x3ef   :  { %5851 = vmatpush2.bf16.msra.mxu0 %v7632_v15  ;;  %v7689_v15 = vld [vmem:[%s10416_s7 + $0xb04] ss:$28 sps:$4 sm:$0xff]  }
 0x3f0   :  { %5892 = vmatpush2.bf16.msra.mxu1 %v7635_v9  ;;  %5852 = vmatprep.subr.bf16.mxu0 %v7640_v4  ;;  %v7690_v9 = vld [vmem:[%s10416_s7 + $0x248] ss:$28 sps:$4 sm:$0xff]  }
 0x3f1   :  { %5893 = vmatprep.subr.bf16.mxu1 %v7643_v17  ;;  %v7687_v17 = vld [vmem:[%s10416_s7 + $0xb00] ss:$28 sps:$4 sm:$0xff]  }
 0x3f3   :  { %5853 = vmatpush2.bf16.msra.mxu0 %v7638_v19 }
 0x3f4   :  { %5894 = vmatpush2.bf16.msra.mxu1 %v7641_v20  ;;  %5854 = vmatprep.subr.bf16.mxu0 %v7646_v21  ;;  %v7691_v20 = vld [vmem:[%s10416_s7 + $0x88] ss:$28 sps:$4 sm:$0xff]  }
 0x3f5   :  { %5895 = vmatprep.subr.bf16.mxu1 %v7649_v23  ;;  %v7694_v21 = vld [vmem:[%s10416_s7 + $0xacc] ss:$28 sps:$4 sm:$0xff]  }
 0x3f6   :  { %v7695_v23 = vld [vmem:[%s10416_s7 + $0x210] ss:$28 sps:$4 sm:$0xff]  }
 0x3f7   :  { %5855 = vmatpush2.bf16.msra.mxu0 %v7644_v25  ;;  %v7692_v25 = vld [vmem:[%s10416_s7 + $0xac8] ss:$28 sps:$4 sm:$0xff]  }
 0x3f8   :  { %5896 = vmatpush2.bf16.msra.mxu1 %v7647_v26  ;;  %5856 = vmatprep.subr.bf16.mxu0 %v7652_v28  ;;  %v7696_v26 = vld [vmem:[%s10416_s7 + $0x50] ss:$28 sps:$4 sm:$0xff]  }
 0x3f9   :  { %5897 = vmatprep.subr.bf16.mxu1 %v7655_v31  ;;  %v7699_v28 = vld [vmem:[%s10416_s7 + $0xa94] ss:$28 sps:$4 sm:$0xff]  }
 0x3fa   :  { %v7700_v31 = vld [vmem:[%s10416_s7 + $0x1d8] ss:$28 sps:$4 sm:$0xff]  }
 0x3fb   :  { %5857 = vmatpush2.bf16.msra.mxu0 %v7650_v32  ;;  %v7697_v32 = vld [vmem:[%s10416_s7 + $0xa90] ss:$28 sps:$4 sm:$0xff]  }
 0x3fc   :  { %5898 = vmatpush2.bf16.msra.mxu1 %v7653_v34  ;;  %5858 = vmatprep.subr.bf16.mxu0 %v7658_v35  ;;  %v7701_v34 = vld [vmem:[%s10416_s7 + $0x18] ss:$28 sps:$4 sm:$0xff]  }
 0x3fd   :  { %5899 = vmatprep.subr.bf16.mxu1 %v7661_v36  ;;  %v7704_v35 = vld [vmem:[%s10416_s7 + $0xddc] ss:$28 sps:$4 sm:$0xff]  }
 0x3fe   :  { %v7705_v36 = vld [vmem:[%s10416_s7 + $0xa60] ss:$28 sps:$4 sm:$0xff]  }
 0x3ff   :  { %5859 = vmatpush2.bf16.msra.mxu0 %v7656_v37  ;;  %v7702_v37 = vld [vmem:[%s10416_s7 + $0xdd8] ss:$28 sps:$4 sm:$0xff]  }
 0x400   :  { %5900 = vmatpush2.bf16.msra.mxu1 %v7659_v38  ;;  %5910 = vmatprep.subr.bf16.mxu0 %v7664_v39  ;;  %v7706_v38 = vld [vmem:[%s10416_s7 + $0x8a0] ss:$28 sps:$4 sm:$0xff]  }
 0x401   :  { %6924 = vmatprep.subr.bf16.mxu1 %v7665_v40  ;;  %v7709_v39 = vld [vmem:[%s10416_s7 + $0xda4] ss:$28 sps:$4 sm:$0xff]  }
 0x402   :  { %v10083_v29 = vpop.f32.mrf.mxu1  ;;  %5861 = vmatmul.mubr.bf16.vlgmr.msra.gmra.mxu0 %v9173_v53  ;;  %v5616_v30 = vpop.f32.mrf.mxu0  ;;  %v7710_v40 = vld [vmem:[%s10416_s7 + $0xa28] ss:$28 sps:$4 sm:$0xff]  }
 0x403   :  { %5902 = vmatmul.mubr.bf16.vlgmr.msra.gmra.mxu1 %v9358_v10  ;;  %v5617_v54 = vadd.f32 %v5616_v30, %v5576_v45  ;;  %5911 = vmatpush1.bf16.msra.mxu0 %v7662_v41  ;;  %v7707_v41 = vld [vmem:[%s10416_s7 + $0xda0] ss:$28 sps:$4 sm:$0xff]   ;;  %v7714_v45 = vld [vmem:[%s10416_s7 + $0xd6c] ss:$28 sps:$4 sm:$0xff]   ;;  %v7719_v30 = vld [vmem:[%s10416_s7 + $0xd34] ss:$28 sps:$4 sm:$0xff]  }
 0x404   :  { %5942 = vmatprep.mubr.bf16.mxu0 %v9462_v8  ;;  %6925 = vmatpush3.bf16.msra.mxu1 %v7666_v43  ;;  %v10096_v55 = vpop.f32.mrf.mxu1  ;;  %v5618_v56 = vpop.f32.mrf.mxu0  ;;  %v7711_v43 = vld [vmem:[%s10416_s7 + $0x868] ss:$28 sps:$4 sm:$0xff]  }
 0x405   :  { %7774 = vtanh.f32 %v5617_v54  ;;  %5983 = vmatprep.mubr.bf16.mxu1 %v8977_v22  ;;  %v5619_v18 = vadd.f32 %v5618_v56, %v5578_v52  ;;  %5912 = vmatprep.subr.bf16.mxu0 %v7669_v46  ;;  %v7676_v22 = vld [vmem:[%s10416_s7 + $0x130] ss:$28 sps:$4 sm:$0xff]   ;;  %v7712_v46 = vld [vmem:[%s10416_s7 + $0xd68] ss:$28 sps:$4 sm:$0xff]   ;;  %v7721_v54 = vld [vmem:[%s10416_s7 + $0x7f8] ss:$28 sps:$4 sm:$0xff]  }
 0x406   :  { %v5661_v60 = vpop.f32.mrf.mxu1  ;;  %6926 = vmatprep.subr.bf16.mxu1 %v7670_v50  ;;  %v5620_v61 = vpop.f32.mrf.mxu0  ;;  %v7720_v50 = vld [vmem:[%s10416_s7 + $0x9b8] ss:$28 sps:$4 sm:$0xff]   ;;  %v7717_v52 = vld [vmem:[%s10416_s7 + $0xd30] ss:$28 sps:$4 sm:$0xff]   ;;  %v7725_v56 = vld [vmem:[%s10416_s7 + $0x980] ss:$28 sps:$4 sm:$0xff]  }
 0x407   :  { %7776 = vtanh.f32 %v5619_v18  ;;  %5913 = vmatpush1.bf16.msra.mxu0 %v7667_v11  ;;  %v7724_v11 = vld [vmem:[%s10416_s7 + $0xcfc] ss:$28 sps:$4 sm:$0xff]   ;;  %v7729_v18 = vld [vmem:[%s10416_s7 + $0xcc4] ss:$28 sps:$4 sm:$0xff]  }
 0x408   :  { %6927 = vmatpush3.bf16.msra.mxu1 %v7671_v57  ;;  %v5662_v0 = vpop.f32.mrf.mxu1  ;;  %v5621_v1 = vpop.f32.mrf.mxu0  ;;  %5914 = vmatprep.subr.bf16.mxu0 %v7674_v59  ;;  %v7722_v57 = vld [vmem:[%s10416_s7 + $0xcf8] ss:$28 sps:$4 sm:$0xff]   ;;  %v7726_v59 = vld [vmem:[%s10416_s7 + $0x7c0] ss:$28 sps:$4 sm:$0xff]   ;;  %v7731_v61 = vld [vmem:[%s10416_s7 + $0x788] ss:$28 sps:$4 sm:$0xff]  }
 0x409   :  { %6928 = vmatprep.subr.bf16.mxu1 %v7675_v58  ;;  %v7730_v58 = vld [vmem:[%s10416_s7 + $0x948] ss:$28 sps:$4 sm:$0xff]   ;;  %v7727_v60 = vld [vmem:[%s10416_s7 + $0xcc0] ss:$28 sps:$4 sm:$0xff]   ;;  %v7735_v0 = vld [vmem:[%s10416_s7 + $0x910] ss:$28 sps:$4 sm:$0xff]  }
 0x40a   :  { %v7732_v1 = vld [vmem:[%s10416_s7 + $0xc88] ss:$28 sps:$4 sm:$0xff]  }
 0x40b   :  { %5915 = vmatpush1.bf16.msra.mxu0 %v7672_v63  ;;  %v7734_v63 = vld [vmem:[%s10416_s7 + $0xc8c] ss:$28 sps:$4 sm:$0xff]  }
 0x40c   :  { %6929 = vmatpush3.bf16.msra.mxu1 %v7676_v22  ;;  %5916 = vmatprep.subr.bf16.mxu0 %v7679_v2  ;;  %v7736_v22 = vld [vmem:[%s10416_s7 + $0x750] ss:$28 sps:$4 sm:$0xff]  }
 0x40d   :  { %6930 = vmatprep.subr.bf16.mxu1 %v7680_v12  ;;  %v7739_v2 = vld [vmem:[%s10416_s7 + $0xc54] ss:$28 sps:$4 sm:$0xff]  }
 0x40e   :  { %v7740_v12 = vld [vmem:[%s10416_s7 + $0x8d8] ss:$28 sps:$4 sm:$0xff]  }
 0x40f   :  { %5917 = vmatpush1.bf16.msra.mxu0 %v7677_v62  ;;  %v7737_v62 = vld [vmem:[%s10416_s7 + $0xc50] ss:$28 sps:$4 sm:$0xff]  }
 0x410   :  { %6931 = vmatpush3.bf16.msra.mxu1 %v7681_v5  ;;  %5918 = vmatprep.subr.bf16.mxu0 %v7684_v13  ;;  %v7741_v5 = vld [vmem:[%s10416_s7 + $0x718] ss:$28 sps:$4 sm:$0xff]   ;;  %v7742_v13 = vld [vmem:[%s10416_s7 + $0x6e0] ss:$28 sps:$4 sm:$0xff]  }
 0x411   :  { %6932 = vmatprep.subr.bf16.mxu1 %v7685_v6  ;;  %v7743_v6 = vld [vmem:[%s10416_s7 + $0x520] ss:$28 sps:$4 sm:$0xff]  }
 0x412   :  { %v7775_v4 = vpop.eup %7774 }
 0x413   :  { %6118 = vst [vmem:[#allocation2] sm:$0xff] %v7775_v4  ;;  %5919 = vmatpush1.bf16.msra.mxu0 %v7682_v14  ;;  %v7744_v14 = vld [vmem:[%s10416_s7 + $0x6a8] ss:$28 sps:$4 sm:$0xff]  }
 0x414   :  { %v7777_v19 = vpop.eup %7776  ;;  %6933 = vmatpush3.bf16.msra.mxu1 %v7686_v7  ;;  %5920 = vmatprep.subr.bf16.mxu0 %v7689_v15 }
 0x415   :  { %6119 = vst [vmem:[#allocation2 + $0x8] sm:$0xff] %v7777_v19  ;;  %6934 = vmatprep.subr.bf16.mxu1 %v7690_v9  ;;  %v7745_v9 = vld [vmem:[%s10416_s7 + $0x4e8] ss:$28 sps:$4 sm:$0xff]   ;;  %v7746_v19 = vld [vmem:[%s10416_s7 + $0x670] ss:$28 sps:$4 sm:$0xff]  }
 0x417   :  { %5921 = vmatpush1.bf16.msra.mxu0 %v7687_v17 }
 0x418   :  { %6935 = vmatpush3.bf16.msra.mxu1 %v7691_v20  ;;  %5922 = vmatprep.subr.bf16.mxu0 %v7694_v21 }
 0x419   :  { %6936 = vmatprep.subr.bf16.mxu1 %v7695_v23 }
 0x41b   :  { %5923 = vmatpush1.bf16.msra.mxu0 %v7692_v25 }
 0x41c   :  { %6937 = vmatpush3.bf16.msra.mxu1 %v7696_v26  ;;  %5924 = vmatprep.subr.bf16.mxu0 %v7699_v28  ;;  %v7749_v26 = vld [vmem:[%s10416_s7 + $0x478] ss:$28 sps:$4 sm:$0xff]   ;;  %v7750_v28 = vld [vmem:[%s10416_s7 + $0x600] ss:$28 sps:$4 sm:$0xff]  }
 0x41d   :  { %6938 = vmatprep.subr.bf16.mxu1 %v7700_v31  ;;  %v7751_v31 = vld [vmem:[%s10416_s7 + $0x440] ss:$28 sps:$4 sm:$0xff]  }
 0x41f   :  { %5925 = vmatpush1.bf16.msra.mxu0 %v7697_v32  ;;  %v7752_v32 = vld [vmem:[%s10416_s7 + $0x5c8] ss:$28 sps:$4 sm:$0xff]  }
 0x420   :  { %6939 = vmatpush3.bf16.msra.mxu1 %v7701_v34  ;;  %5926 = vmatprep.subr.bf16.mxu0 %v7704_v35  ;;  %v7753_v34 = vld [vmem:[%s10416_s7 + $0x408] ss:$28 sps:$4 sm:$0xff]   ;;  %v7754_v35 = vld [vmem:[%s10416_s7 + $0x590] ss:$28 sps:$4 sm:$0xff]  }
 0x421   :  { %6968 = vmatprep.subr.bf16.mxu1 %v7705_v36  ;;  %v7755_v36 = vld [vmem:[%s10416_s7 + $0x3d0] ss:$28 sps:$4 sm:$0xff]  }
 0x423   :  { %5984 = vmatmul.mubr.bf16.vlgmr.msra.gmra.mxu1 %v9145_v24  ;;  %5927 = vmatpush2.bf16.msra.mxu0 %v7702_v37  ;;  %v7715_v24 = vld [vmem:[%s10416_s7 + $0x9f0] ss:$28 sps:$4 sm:$0xff]   ;;  %v7756_v37 = vld [vmem:[%s10416_s7 + $0x558] ss:$28 sps:$4 sm:$0xff]  }
 0x424   :  { %6969 = vmatpush3.bf16.msra.mxu1 %v7706_v38  ;;  %6063 = vmatprep.mubr.bf16.mxu1 %v9353_v3  ;;  %v7716_v3 = vld [vmem:[%s10416_s7 + $0x830] ss:$28 sps:$4 sm:$0xff]   ;;  %v7757_v38 = vld [vmem:[%s10416_s7 + $0x398] ss:$28 sps:$4 sm:$0xff]  }
 0x425   :  { %5928 = vmatprep.subr.bf16.mxu0 %v7709_v39  ;;  %6970 = vmatprep.subr.bf16.mxu1 %v7710_v40  ;;  %v7758_v39 = vld [vmem:[%s10416_s7 + $0xde0] ss:$28 sps:$4 sm:$0xff]  }
 0x426   :  { %v7759_v40 = vld [vmem:[%s10416_s7 + $0xc20] ss:$28 sps:$4 sm:$0xff]  }
 0x427   :  { %5929 = vmatpush2.bf16.msra.mxu0 %v7707_v41  ;;  %v7760_v41 = vld [vmem:[%s10416_s7 + $0xda8] ss:$28 sps:$4 sm:$0xff]  }
 0x428   :  { %6971 = vmatpush3.bf16.msra.mxu1 %v7711_v43  ;;  %5930 = vmatprep.subr.bf16.mxu0 %v7714_v45  ;;  %v7761_v43 = vld [vmem:[%s10416_s7 + $0xbe8] ss:$28 sps:$4 sm:$0xff]   ;;  %v7762_v45 = vld [vmem:[%s10416_s7 + $0xd70] ss:$28 sps:$4 sm:$0xff]  }
 0x429   :  { %6972 = vmatprep.subr.bf16.mxu1 %v7715_v24  ;;  %v7763_v24 = vld [vmem:[%s10416_s7 + $0xbb0] ss:$28 sps:$4 sm:$0xff]  }
 0x42b   :  { %5931 = vmatpush2.bf16.msra.mxu0 %v7712_v46  ;;  %v7766_v46 = vld [vmem:[%s10416_s7 + $0xd00] ss:$28 sps:$4 sm:$0xff]  }
 0x42c   :  { %6973 = vmatpush3.bf16.msra.mxu1 %v7716_v3  ;;  %5932 = vmatprep.subr.bf16.mxu0 %v7719_v30  ;;  %v7767_v3 = vld [vmem:[%s10416_s7 + $0xb40] ss:$28 sps:$4 sm:$0xff]   ;;  %v7768_v30 = vld [vmem:[%s10416_s7 + $0xcc8] ss:$28 sps:$4 sm:$0xff]  }
 0x42d   :  { %6974 = vmatprep.subr.bf16.mxu1 %v7720_v50  ;;  %v7769_v50 = vld [vmem:[%s10416_s7 + $0xb08] ss:$28 sps:$4 sm:$0xff]  }
 0x42f   :  { %5933 = vmatpush2.bf16.msra.mxu0 %v7717_v52  ;;  %v7770_v52 = vld [vmem:[%s10416_s7 + $0xc90] ss:$28 sps:$4 sm:$0xff]  }
 0x430   :  { %6975 = vmatpush3.bf16.msra.mxu1 %v7721_v54  ;;  %5934 = vmatprep.subr.bf16.mxu0 %v7724_v11  ;;  %v3131_v54 = vrot.slane %v9654_v33, %v8324_v49  ;;  %v7771_v11 = vld [vmem:[%s10416_s7 + $0xad0] ss:$28 sps:$4 sm:$0xff]   ;;  %v7773_v33 = vld [vmem:[%s10416_s7 + $0xa98] ss:$28 sps:$4 sm:$0xff]  }
 0x431   :  { %6976 = vmatprep.subr.bf16.mxu1 %v7725_v56  ;;  %v7772_v56 = vld [vmem:[%s10416_s7 + $0xc58] ss:$28 sps:$4 sm:$0xff]  }
 0x432   :  { %v5658_v49 = vadd.f32 %v10083_v29, %v3131_v54 }
 0x433   :  { %5935 = vmatpush2.bf16.msra.mxu0 %v7722_v57  ;;  %v10383_v57 = vld [vmem:[%s10417_s8] sm:$0x7f] }
 0x434   :  { %6977 = vmatpush3.bf16.msra.mxu1 %v7726_v59  ;;  %5936 = vmatprep.subr.bf16.mxu0 %v7729_v18  ;;  %v3135_v59 = vrot.slane %v10383_v57, %v8330_v51 }
 0x435   :  { %6978 = vmatprep.subr.bf16.mxu1 %v7730_v58 }
 0x436   :  { %v5660_v18 = vadd.f32 %v10096_v55, %v3135_v59 }
 0x437   :  { %5937 = vmatpush2.bf16.msra.mxu0 %v7727_v60 }
 0x438   :  { %6979 = vmatpush3.bf16.msra.mxu1 %v7731_v61  ;;  %5938 = vmatprep.subr.bf16.mxu0 %v7734_v63 }
 0x439   :  { %6980 = vmatprep.subr.bf16.mxu1 %v7735_v0 }
 0x43b   :  { %5939 = vmatpush2.bf16.msra.mxu0 %v7732_v1 }
 0x43c   :  { %6981 = vmatpush3.bf16.msra.mxu1 %v7736_v22  ;;  %5940 = vmatprep.subr.bf16.mxu0 %v7739_v2 }
 0x43d   :  { %6982 = vmatprep.subr.bf16.mxu1 %v7740_v12 }
 0x43f   :  { %5941 = vmatpush2.bf16.msra.mxu0 %v7737_v62 }
 0x440   :  { %6983 = vmatpush3.bf16.msra.mxu1 %v7741_v5  ;;  %6946 = vmatprep.subr.bf16.mxu0 %v7742_v13 }
 0x442   :  { %v10281_v7 = vpop.f32.mrf.mxu0  ;;  %v10283_v15 = vpop.f32.mrf.mxu1  ;;  %5943 = vmatmul.mubr.bf16.vlgmr.msra.gmra.mxu0 %v9470_v16 }
 0x443   :  { %6064 = vmatmul.mubr.bf16.vlgmr.msra.gmra.mxu1 %v9358_v10  ;;  %6947 = vmatpush3.bf16.msra.mxu0 %v7743_v6  ;;  %v7747_v10 = vld [vmem:[%s10416_s7 + $0x4b0] ss:$28 sps:$4 sm:$0xff]   ;;  %v5699_v58 = vadd.f32 %v10281_v7, %v5658_v49 }
 0x444   :  { %6023 = vmatprep.mubr.bf16.mxu0 %v9165_v48  ;;  %v10291_v4 = vpop.f32.mrf.mxu0  ;;  %v10293_v17 = vpop.f32.mrf.mxu1  ;;  %6948 = vmatprep.subr.bf16.mxu0 %v7744_v14  ;;  %v7748_v48 = vld [vmem:[%s10416_s7 + $0x638] ss:$28 sps:$4 sm:$0xff]  }
 0x445   :  { %v5701_v60 = vadd.f32 %v10291_v4, %v5660_v18  ;;  %v5740_v61 = vadd.f32 %v10283_v15, %v5699_v58 }
 0x446   :  { %v5702_v20 = vpop.f32.mrf.mxu0  ;;  %v5743_v21 = vpop.f32.mrf.mxu1 }
 0x447   :  { %6949 = vmatpush3.bf16.msra.mxu0 %v7745_v9  ;;  %v5742_v51 = vadd.f32 %v10293_v17, %v5701_v60 }
 0x448   :  { %v5703_v23 = vpop.f32.mrf.mxu0  ;;  %v5744_v25 = vpop.f32.mrf.mxu1  ;;  %6950 = vmatprep.subr.bf16.mxu0 %v7746_v19 }
 0x44b   :  { %6951 = vmatpush3.bf16.msra.mxu0 %v7747_v10 }
 0x44c   :  { %6952 = vmatprep.subr.bf16.mxu0 %v7748_v48  ;;  %v3139_v48 = vrot.slane %v10383_v57, %v960_v42 }
 0x44f   :  { %6953 = vmatpush3.bf16.msra.mxu0 %v7749_v26  ;;  %v3143_v26 = vrot.slane %v10383_v57, %v964_v47 }
 0x450   :  { %6954 = vmatprep.subr.bf16.mxu0 %v7750_v28 }
 0x453   :  { %6955 = vmatpush3.bf16.msra.mxu0 %v7751_v31 }
 0x454   :  { %6956 = vmatprep.subr.bf16.mxu0 %v7752_v32 }
 0x457   :  { %6957 = vmatpush3.bf16.msra.mxu0 %v7753_v34 }
 0x458   :  { %6958 = vmatprep.subr.bf16.mxu0 %v7754_v35 }
 0x45b   :  { %6959 = vmatpush3.bf16.msra.mxu0 %v7755_v36 }
 0x45c   :  { %6960 = vmatprep.subr.bf16.mxu0 %v7756_v37 }
 0x45f   :  { %6961 = vmatpush3.bf16.msra.mxu0 %v7757_v38 }
 0x460   :  { %6990 = vmatprep.subr.bf16.mxu0 %v7758_v39 }
 0x462   :  { %6024 = vmatmul.mubr.bf16.vlgmr.msra.gmra.mxu0 %v9173_v53  ;;  %v7764_v53 = vld [vmem:[%s10416_s7 + $0xd38] ss:$28 sps:$4 sm:$0xff]  }
 0x463   :  { %6991 = vmatpush3.bf16.msra.mxu0 %v7759_v40  ;;  %6103 = vmatprep.mubr.bf16.mxu0 %v9462_v8  ;;  %v7765_v8 = vld [vmem:[%s10416_s7 + $0xb78] ss:$28 sps:$4 sm:$0xff]   ;;  %s7812_s7 = smov [#allocation2]  }
 0x464   :  { %6992 = vmatprep.subr.bf16.mxu0 %v7760_v41  ;;  %s6132_s8 = sshll.u32 %s7812_s7, 4  ;;  %s6133_s8 = int_to_ptr.vmem [resolvable:$true] %s6132_s8 }
 0x465   :  { %s7789_s20 = scalar_lea.vmem %s6133_s8, 896  ;;  %p7794_p1 = scmp.lt.s32.totalorder %s6133_s8, %s6133_s8 }
 0x466   :  { %p7790_p0 = scmp.ne.s32.totalorder %s6133_s8, %s7789_s20  ;;  %p7795_p2 = scmp.lt.s32.totalorder %s7789_s20, %s7789_s20 }
 0x467   :  { %6993 = vmatpush3.bf16.msra.mxu0 %v7761_v43 }
 0x468   :  { %6994 = vmatprep.subr.bf16.mxu0 %v7762_v45  ;;  %p7796_p3 = por %p7795_p2, %p7794_p1 }
 0x46a   :  { %p7797_p4 = pnand %p7796_p3, %p7790_p0 }
 0x46b   :  { %6995 = vmatpush3.bf16.msra.mxu0 %v7763_v24 }
 0x46c   :  { %6996 = vmatprep.subr.bf16.mxu0 %v7764_v53 }
 0x46f   :  { %6997 = vmatpush3.bf16.msra.mxu0 %v7765_v8 }
 0x470   :  { %6998 = vmatprep.subr.bf16.mxu0 %v7766_v46 }
 0x473   :  { %6999 = vmatpush3.bf16.msra.mxu0 %v7767_v3 }
 0x474   :  { %7000 = vmatprep.subr.bf16.mxu0 %v7768_v30 }
 0x477   :  { %7001 = vmatpush3.bf16.msra.mxu0 %v7769_v50 }
 0x478   :  { %7002 = vmatprep.subr.bf16.mxu0 %v7770_v52  ;;  %v3147_v52 = vrot.slane %v10383_v57, %v968_v44 }
 0x47b   :  { %7003 = vmatpush3.bf16.msra.mxu0 %v7771_v11 }
 0x47c   :  { %7004 = vmatprep.subr.bf16.mxu0 %v7772_v56 }
 0x47f   :  { %7005 = vmatpush3.bf16.msra.mxu0 %v7773_v33 }
 0x482   :  { %v5780_v63 = vpop.f32.mrf.mxu0  ;;  %6104 = vmatmul.mubr.bf16.vlgmr.msra.gmra.mxu0 %v9470_v16 }
 0x483   :  { %v5781_v29 = vadd.f32 %v5780_v63, %v5740_v61  ;;  %v5821_v0 = vpop.f32.mrf.mxu1 }
 0x484   :  { %v5782_v1 = vpop.f32.mrf.mxu0  ;;  %v5822_v28 = vadd.f32 %v5821_v0, %v3139_v48 }
 0x485   :  { %7778 = vtanh.f32 %v5781_v29  ;;  %v5783_v22 = vadd.f32 %v5782_v1, %v5742_v51  ;;  %v5823_v2 = vpop.f32.mrf.mxu1 }
 0x486   :  { %v5784_v12 = vpop.f32.mrf.mxu0  ;;  %v5824_v31 = vadd.f32 %v5823_v2, %v3143_v26 }
 0x487   :  { %7780 = vtanh.f32 %v5783_v22  ;;  %v5825_v55 = vpop.f32.mrf.mxu1 }
 0x488   :  { %v5785_v62 = vpop.f32.mrf.mxu0 }
 0x489   :  { %v5826_v5 = vpop.f32.mrf.mxu1 }
 0x492   :  { %v7779_v13 = vpop.eup %7778 }
 0x493   :  { %6120 = vst [vmem:[#allocation2 + $0x10] sm:$0xff] %v7779_v13 }
 0x494   :  { %v7781_v6 = vpop.eup %7780 }
 0x495   :  { %6121 = vst [vmem:[#allocation2 + $0x18] sm:$0xff] %v7781_v6 }
 0x4c2   :  { %v5862_v14 = vpop.f32.mrf.mxu0 }
 0x4c3   :  { %v5903_v7 = vpop.f32.mrf.mxu1  ;;  %v5863_v32 = vadd.f32 %v5862_v14, %v5822_v28 }
 0x4c4   :  { %v5864_v16 = vpop.f32.mrf.mxu0 }
 0x4c5   :  { %v5905_v15 = vpop.f32.mrf.mxu1  ;;  %v5865_v34 = vadd.f32 %v5864_v16, %v5824_v31  ;;  %v5904_v35 = vadd.f32 %v5903_v7, %v5863_v32 }
 0x4c6   :  { %v5866_v9 = vpop.f32.mrf.mxu0 }
 0x4c7   :  { %v5907_v4 = vpop.f32.mrf.mxu1  ;;  %v5906_v37 = vadd.f32 %v5905_v15, %v5865_v34 }
 0x4c8   :  { %v5867_v17 = vpop.f32.mrf.mxu0 }
 0x4c9   :  { %v5908_v19 = vpop.f32.mrf.mxu1 }
 0x4e3   :  { %v6940_v20 = vpop.f32.mrf.mxu1 }
 0x4e5   :  { %v6941_v21 = vpop.f32.mrf.mxu1 }
 0x4e6   :  { %v6942_v10 = vadd.f32 %v6941_v21, %v6940_v20 }
 0x4e7   :  { %v6943_v23 = vpop.f32.mrf.mxu1 }
 0x4e8   :  { %v5986_v11 = vadd.f32 %v6942_v10, %v3147_v52 }
 0x4e9   :  { %v6944_v25 = vpop.f32.mrf.mxu1 }
 0x502   :  { %v5944_v36 = vpop.f32.mrf.mxu0 }
 0x503   :  { %v5945_v38 = vadd.f32 %v5944_v36, %v5904_v35  ;;  %v6984_v39 = vpop.f32.mrf.mxu1 }
 0x504   :  { %v5946_v40 = vpop.f32.mrf.mxu0 }
 0x505   :  { %7782 = vtanh.f32 %v5945_v38  ;;  %v5947_v41 = vadd.f32 %v5946_v40, %v5906_v37  ;;  %v6985_v43 = vpop.f32.mrf.mxu1 }
 0x506   :  { %v5948_v45 = vpop.f32.mrf.mxu0  ;;  %v6986_v49 = vadd.f32 %v6985_v43, %v6984_v39 }
 0x507   :  { %7784 = vtanh.f32 %v5947_v41  ;;  %v6987_v42 = vpop.f32.mrf.mxu1 }
 0x508   :  { %v5949_v24 = vpop.f32.mrf.mxu0 }
 0x509   :  { %v6988_v53 = vpop.f32.mrf.mxu1 }
 0x512   :  { %v7783_v8 = vpop.eup %7782 }
 0x513   :  { %6122 = vst [vmem:[#allocation2 + $0x20] sm:$0xff] %v7783_v8 }
 0x514   :  { %v7785_v47 = vpop.eup %7784 }
 0x515   :  { %6123 = vst [vmem:[#allocation2 + $0x28] sm:$0xff] %v7785_v47 }
 0x522   :  { %v6962_v46 = vpop.f32.mrf.mxu0 }
 0x524   :  { %v6963_v3 = vpop.f32.mrf.mxu0 }
 0x525   :  { %v6964_v54 = vadd.f32 %v6963_v3, %v6962_v46 }
 0x526   :  { %v6965_v30 = vpop.f32.mrf.mxu0 }
 0x527   :  { %v6026_v56 = vadd.f32 %v6964_v54, %v5986_v11 }
 0x528   :  { %v6966_v50 = vpop.f32.mrf.mxu0 }
 0x529   :  { %v6066_v18 = vadd.f32 %v6986_v49, %v6026_v56 }
 0x542   :  { %v7006_v59 = vpop.f32.mrf.mxu0 }
 0x544   :  { %v7007_v33 = vpop.f32.mrf.mxu0 }
 0x545   :  { %v7008_v58 = vadd.f32 %v7007_v33, %v7006_v59 }
 0x546   :  { %v7009_v60 = vpop.f32.mrf.mxu0 }
 0x547   :  { %v6106_v61 = vadd.f32 %v7008_v58, %v6066_v18 }
 0x548   :  { %v7010_v63 = vpop.f32.mrf.mxu0 }
 0x549   :  { %7786 = vtanh.f32 %v6106_v61 }
 0x556   :  { %v7787_v51 = vpop.eup %7786 }
 0x557   :  { %6125 = vst.msk [vmem:[#allocation2 + $0x30] sm:$0xff] %vm6124_vm0, %v7787_v51 }
 0x558   :  { %7800 = shalt.err (!%p7797_p4)
}
 0x559   :  { %6135 = dma.vmem_to_hbm [thread:$0]  %s6133_s8, 896, %s10418_s9, [#allocation3]  }
 0x55a   :  { %7809 = dma.done.wait [#allocation3], 896  }
 0x55b   :  { %7810 = vsyncadd [#allocation3], 4294966400 }
 0x55c   :  { %6139 = vsyncpa [#allocation3], 1 }

</bundles_post_ra>
